<compile_context>
chip_gen: v7x
topology: tpu7x:2x2x1
jax: 0.10.0
libtpu: 0.0.40
codegen_flags: <defaults>
</compile_context>

<pallas_src>
import math

import jax
import jax.numpy as jnp
from jax.experimental import pallas as pl
from jax.experimental.pallas import tpu as pltpu

# ----- tiny synthetic BERT config ------------------------------------------
B, S = 2, 8                  # batch, sequence length
H = 32                       # hidden size
NUM_HEADS = 4
HEAD_DIM = H // NUM_HEADS    # 8
FFN = 64                     # intermediate size
NUM_LAYERS = 2
VOCAB = 128                  # multiple of 128 -> lane-dense one-hot gather
MAX_POS = 16
CLS_HIDDEN = 256             # classifier hidden width (nn.Linear(H, 256))
LN_EPS = 1e-12
OUT_LANES = 128              # lane-dense output slab width

# ----- packed-slab layout (every param gets a 128-lane-aligned block) --------
BLK = 128
# wmat: (NUM_LAYERS+1, WMAT_ROWS, NBLK_W*128) f32
QKV_NBLK = 3 * NUM_HEADS     # blocks 0..11: q0..q3 | k0..k3 | v0..v3
WO_BLK = QKV_NBLK            # 12
W1_BLK = WO_BLK + 1          # 13
W2_BLK = W1_BLK + 1          # 14  (uses rows 0:FFN)
NBLK_W = W2_BLK + 1          # 15
WMAT_ROWS = max(H, FFN)      # 64
WP_BLK = 0                   # head row: pooler weight
WC1_BLK = 1                  # head row: classifier Linear(H,256), spans 2 blocks
# fvec: (NUM_LAYERS+1, 1, NBLK_F*128) f32
BO_BLK = QKV_NBLK            # blocks 0..11 mirror the qkv output layout (bias)
B1_BLK = BO_BLK + 1
B2_BLK = B1_BLK + 1
LN1G_BLK = B2_BLK + 1
LN1B_BLK = LN1G_BLK + 1
LN2G_BLK = LN1B_BLK + 1
LN2B_BLK = LN2G_BLK + 1
NBLK_F = LN2B_BLK + 1        # 19
EMBG_BLK, EMBB_BLK, BP_BLK = 0, 1, 2         # head row of fvec
BC1_BLK = 3                                   # spans 2 blocks
WC2_BLK = 5                                   # final (256,1) weight as a row, 2 blocks
BC2_BLK = 7
HEAD_ROW = NUM_LAYERS        # index of pooler/classifier entry in packed slabs


# ----- in-kernel math helpers ------------------------------------------------
def _layernorm(x, gamma, beta):
    # f32 elementwise math (v5e VPU has no bf16)
    mean = jnp.mean(x, axis=-1, keepdims=True)
    var = jnp.mean((x - mean) ** 2, axis=-1, keepdims=True)
    return (x - mean) * jax.lax.rsqrt(var + LN_EPS) * gamma + beta


def _gelu(x):
    # TODO(synk): HF BERT uses exact erf GELU; tanh approximation kept here.
    c = math.sqrt(2.0 / math.pi)
    return 0.5 * x * (1.0 + jnp.tanh(c * (x + 0.044715 * x * x * x)))


def _full_spec(shape):
    # whole-array block (shapes are tiny, so no tiling needed)
    return pl.BlockSpec(shape, lambda *_: (0,) * len(shape))


# ----- fused forward kernel ---------------------------------------------------
def _bert_forward_kernel(ids_ref, mask_ref, embtab_ref, wmat_ref, fvec_ref,
                         out_ref):
    # --- token embedding gather fused in-kernel: one-hot x table on the MXU --
    ids = ids_ref[...]                                              # (B, S) i32
    vocab_iota = jax.lax.broadcasted_iota(jnp.int32, (B, S, VOCAB), 2)
    onehot = (vocab_iota == ids[..., None]).astype(jnp.float32)     # (B,S,VOCAB)
    word = jnp.dot(onehot.reshape(B * S, VOCAB), embtab_ref[0:VOCAB, :],
                   preferred_element_type=jnp.float32)              # (B*S, H)
    # position + segment-0 type embedding (pre-summed at init, rows VOCAB:VOCAB+S)
    # TODO(synk): token_type_ids assumed all-zero (segment 0 only).
    pos_type = embtab_ref[VOCAB:VOCAB + S, :]                       # (S, H)
    emb = word + jnp.broadcast_to(pos_type[None], (B, S, H)).reshape(B * S, H)

    x = _layernorm(emb,
                   fvec_ref[HEAD_ROW, :, EMBG_BLK * BLK:EMBG_BLK * BLK + H],
                   fvec_ref[HEAD_ROW, :, EMBB_BLK * BLK:EMBB_BLK * BLK + H])

    # --- additive key mask, broadcast ONCE to the batched-heads score shape --
    # Note: only keys are masked; padded query rows produce garbage context,
    # harmless because only the CLS token feeds the classifier head.
    neg_row = (1.0 - mask_ref[...].astype(jnp.float32)) * -1e9      # (B, S)
    neg_bss = jnp.broadcast_to(neg_row[:, None, :], (B, S, S))
    neg_full = jnp.broadcast_to(
        neg_bss[None], (NUM_HEADS, B, S, S)).reshape(NUM_HEADS * B, S, S)

    scale = 1.0 / math.sqrt(HEAD_DIM)

    # --- encoder layers: static unroll, per-layer slices of the packed slabs -
    for l in range(NUM_LAYERS):
        w_qkv = wmat_ref[l, :H, :QKV_NBLK * BLK]                    # (H, 1536)
        b_qkv = fvec_ref[l, :, :QKV_NBLK * BLK]                     # (1, 1536)
        w_o = wmat_ref[l, :H, WO_BLK * BLK:WO_BLK * BLK + H]
        b_o = fvec_ref[l, :, BO_BLK * BLK:BO_BLK * BLK + H]
        w_1 = wmat_ref[l, :H, W1_BLK * BLK:W1_BLK * BLK + FFN]
        b_1 = fvec_ref[l, :, B1_BLK * BLK:B1_BLK * BLK + FFN]
        w_2 = wmat_ref[l, :FFN, W2_BLK * BLK:W2_BLK * BLK + H]
        b_2 = fvec_ref[l, :, B2_BLK * BLK:B2_BLK * BLK + H]
        ln1_g = fvec_ref[l, :, LN1G_BLK * BLK:LN1G_BLK * BLK + H]
        ln1_b = fvec_ref[l, :, LN1B_BLK * BLK:LN1B_BLK * BLK + H]
        ln2_g = fvec_ref[l, :, LN2G_BLK * BLK:LN2G_BLK * BLK + H]
        ln2_b = fvec_ref[l, :, LN2B_BLK * BLK:LN2B_BLK * BLK + H]

        # fused QKV projection; every head's q/k/v lands in its OWN 128-lane
        # block, so all later slices are lane-tile aligned (no XLU rotates).
        qkv = jnp.dot(x, w_qkv, preferred_element_type=jnp.float32) + b_qkv

        def heads(part, qkv=qkv):
            # gather all heads of one part into the einsum batch axis:
            # (NUM_HEADS*B, S, HEAD_DIM), batch index g = h*B + b
            return jnp.concatenate(
                [qkv[:, (part * NUM_HEADS + h) * BLK:
                        (part * NUM_HEADS + h) * BLK + HEAD_DIM
                     ].reshape(B, S, HEAD_DIM)
                 for h in range(NUM_HEADS)], axis=0)

        qh, kh, vh = heads(0), heads(1), heads(2)

        # all heads in a single pair of batched rank-3 contractions, one softmax
        s = jnp.einsum('gqd,gkd->gqk', qh, kh,
                       preferred_element_type=jnp.float32) * scale + neg_full
        s = s - jnp.max(s, axis=-1, keepdims=True)
        p = jnp.exp(s)
        p = p * pl.reciprocal(jnp.sum(p, axis=-1, keepdims=True), approx=True)
        ctx = jnp.einsum('gqk,gkd->gqd', p, vh,
                         preferred_element_type=jnp.float32)        # (NH*B,S,HD)

        # back to (B*S, H) and ONE full-Wo projection
        ctx_flat = jnp.concatenate(
            [ctx[h * B:(h + 1) * B].reshape(B * S, HEAD_DIM)
             for h in range(NUM_HEADS)], axis=-1)                   # (B*S, H)
        attn = jnp.dot(ctx_flat, w_o, preferred_element_type=jnp.float32) + b_o

        x1 = _layernorm(x + attn, ln1_g, ln1_b)

        # feed-forward
        hdn = _gelu(jnp.dot(x1, w_1, preferred_element_type=jnp.float32) + b_1)
        ffn = jnp.dot(hdn, w_2, preferred_element_type=jnp.float32) + b_2
        x = _layernorm(x1 + ffn, ln2_g, ln2_b)

    # --- pooler + classifier head (fused; dropout = identity in eval) --------
    w_p = wmat_ref[HEAD_ROW, :H, WP_BLK * BLK:WP_BLK * BLK + H]
    w_c1 = wmat_ref[HEAD_ROW, :H, WC1_BLK * BLK:WC1_BLK * BLK + CLS_HIDDEN]
    b_p = fvec_ref[HEAD_ROW, :, BP_BLK * BLK:BP_BLK * BLK + H]
    b_c1 = fvec_ref[HEAD_ROW, :, BC1_BLK * BLK:BC1_BLK * BLK + CLS_HIDDEN]
    wc2r = fvec_ref[HEAD_ROW, :, WC2_BLK * BLK:WC2_BLK * BLK + CLS_HIDDEN]
    b_c2 = fvec_ref[HEAD_ROW, :, BC2_BLK * BLK:BC2_BLK * BLK + 1]

    cls = x.reshape(B, S, H)[:, 0, :]                               # (B, H)
    pooled = jnp.tanh(jnp.dot(cls, w_p, preferred_element_type=jnp.float32)
                      + b_p)                                        # (B, H)
    hc = jnp.maximum(
        jnp.dot(pooled, w_c1, preferred_element_type=jnp.float32) + b_c1, 0.0)
    # lane-dense final projection: VPU multiply-reduce against a (1,256) row
    logit = jnp.sum(hc * wc2r, axis=-1, keepdims=True) + b_c2       # (B, 1)
    out_ref[...] = jnp.broadcast_to(logit, out_ref.shape)           # (B, 128)


# ----- deterministic parameter init + packing ---------------------------------
def init_params(key):
    ks = iter(jax.random.split(key, 32))

    def dense(shape, std=0.02):
        return jax.random.normal(next(ks), shape, jnp.float32) * std

    def xavier(shape):
        fan_in, fan_out = shape
        lim = math.sqrt(6.0 / (fan_in + fan_out))
        return jax.random.uniform(next(ks), shape, jnp.float32, -lim, lim)

    # embeddings; position + segment-0 type embeddings are pre-summed
    word_emb = dense((VOCAB, H))
    pos_emb = dense((MAX_POS, H))
    type_emb = dense((2, H))
    pos_type = pos_emb[:S] + type_emb[0][None, :]
    embtab = jnp.concatenate([word_emb, pos_type], axis=0)          # (VOCAB+S, H)

    wmat = jnp.zeros((NUM_LAYERS + 1, WMAT_ROWS, NBLK_W * BLK), jnp.float32)
    fvec = jnp.zeros((NUM_LAYERS + 1, 1, NBLK_F * BLK), jnp.float32)

    for l in range(NUM_LAYERS):
        wq, wk, wv, wo = dense((H, H)), dense((H, H)), dense((H, H)), dense((H, H))
        w1, w2 = dense((H, FFN)), dense((FFN, H))
        bqkv = dense((3 * H,))
        bo, b1, b2 = dense((H,)), dense((FFN,)), dense((H,))
        for part, w in enumerate((wq, wk, wv)):
            for h in range(NUM_HEADS):
                blk = part * NUM_HEADS + h
                wmat = wmat.at[l, 0:H, blk * BLK:blk * BLK + HEAD_DIM].set(
                    w[:, h * HEAD_DIM:(h + 1) * HEAD_DIM])
                fvec = fvec.at[l, 0, blk * BLK:blk * BLK + HEAD_DIM].set(
                    bqkv[part * H + h * HEAD_DIM:part * H + (h + 1) * HEAD_DIM])
        wmat = wmat.at[l, 0:H, WO_BLK * BLK:WO_BLK * BLK + H].set(wo)
        wmat = wmat.at[l, 0:H, W1_BLK * BLK:W1_BLK * BLK + FFN].set(w1)
        wmat = wmat.at[l, 0:FFN, W2_BLK * BLK:W2_BLK * BLK + H].set(w2)
        fvec = fvec.at[l, 0, BO_BLK * BLK:BO_BLK * BLK + H].set(bo)
        fvec = fvec.at[l, 0, B1_BLK * BLK:B1_BLK * BLK + FFN].set(b1)
        fvec = fvec.at[l, 0, B2_BLK * BLK:B2_BLK * BLK + H].set(b2)
        fvec = fvec.at[l, 0, LN1G_BLK * BLK:LN1G_BLK * BLK + H].set(1.0)
        fvec = fvec.at[l, 0, LN2G_BLK * BLK:LN2G_BLK * BLK + H].set(1.0)

    # pooler + classifier head (classifier: xavier weights, zero biases)
    wp, bp = dense((H, H)), dense((H,))
    wc1 = xavier((H, CLS_HIDDEN))
    wc2 = xavier((CLS_HIDDEN, 1))
    wmat = wmat.at[HEAD_ROW, 0:H, WP_BLK * BLK:WP_BLK * BLK + H].set(wp)
    wmat = wmat.at[HEAD_ROW, 0:H,
                   WC1_BLK * BLK:WC1_BLK * BLK + CLS_HIDDEN].set(wc1)
    fvec = fvec.at[HEAD_ROW, 0, EMBG_BLK * BLK:EMBG_BLK * BLK + H].set(1.0)
    fvec = fvec.at[HEAD_ROW, 0, BP_BLK * BLK:BP_BLK * BLK + H].set(bp)
    fvec = fvec.at[HEAD_ROW, 0,
                   WC2_BLK * BLK:WC2_BLK * BLK + CLS_HIDDEN].set(wc2[:, 0])
    # bc1 / bc2 / emb LN beta stay zero.

    return {'embtab': embtab, 'wmat': wmat, 'fvec': fvec}


# ----- full forward pass -------------------------------------------------------
def bert_classifier_forward(params, input_ids, attention_mask):
    # No external glue ops: ids / mask go straight into the kernel; the token
    # embedding gather happens inside (one-hot x table on the MXU).
    args = (input_ids.astype(jnp.int32), attention_mask.astype(jnp.int32),
            params['embtab'], params['wmat'], params['fvec'])

    out = pl.pallas_call(
        _bert_forward_kernel,
        out_shape=jax.ShapeDtypeStruct((B, OUT_LANES), jnp.float32),
        grid=(1,),
        in_specs=[_full_spec(a.shape) for a in args],
        out_specs=_full_spec((B, OUT_LANES)),
        compiler_params=pltpu.CompilerParams(
            dimension_semantics=("arbitrary",)),
    )(*args)
    # logit is broadcast across the 128 output lanes; read lane 0 only.
    return out[:, 0]                                                # (B,) logits


if __name__ == "__main__":
    key = jax.random.PRNGKey(0)
    k_param, k_ids = jax.random.split(key)

    params = init_params(k_param)
    input_ids = jax.random.randint(k_ids, (B, S), 0, VOCAB, dtype=jnp.int32)
    attention_mask = jnp.array([[1] * S,
                                [1] * (S - 3) + [0] * 3], dtype=jnp.int32)

    fwd = jax.jit(bert_classifier_forward)
    logits = fwd(params, input_ids, attention_mask)
    jax.block_until_ready(logits)
    assert logits.shape == (B,)
    assert bool(jnp.all(jnp.isfinite(logits)))
    print("KERNEL_OK")
</pallas_src>

<mosaic_0001>
module attributes {stable_mosaic.version = 11 : i64} {
  func.func @_bert_forward_kernel(%arg0: i32, %arg1: memref<2x8xi32, #tpu.memory_space<vmem>>, %arg2: memref<2x8xi32, #tpu.memory_space<vmem>>, %arg3: memref<136x32xf32, #tpu.memory_space<vmem>>, %arg4: memref<3x64x1920xf32, #tpu.memory_space<vmem>>, %arg5: memref<3x1x2432xf32, #tpu.memory_space<vmem>>, %arg6: memref<2x128xf32, #tpu.memory_space<vmem>>) attributes {dimension_semantics = [#tpu.dimension_semantics<arbitrary>], iteration_bounds = array<i64: 1>, scalar_prefetch = 0 : i64, scratch_operands = 0 : i64, tpu.core_type = #tpu.core_type<tc>, window_params = [{pipeline_mode = #tpu.pipeline_mode<synchronous>, transform_indices = @transform_0, window_bounds = array<i64: 2, 8>}, {pipeline_mode = #tpu.pipeline_mode<synchronous>, transform_indices = @transform_1, window_bounds = array<i64: 2, 8>}, {pipeline_mode = #tpu.pipeline_mode<synchronous>, transform_indices = @transform_2, window_bounds = array<i64: 136, 32>}, {pipeline_mode = #tpu.pipeline_mode<synchronous>, transform_indices = @transform_3, window_bounds = array<i64: 3, 64, 1920>}, {pipeline_mode = #tpu.pipeline_mode<synchronous>, transform_indices = @transform_4, window_bounds = array<i64: 3, 1, 2432>}, {pipeline_mode = #tpu.pipeline_mode<synchronous>, transform_indices = @transform_5, window_bounds = array<i64: 2, 128>}]} {
    %c0 = arith.constant 0 : index
    %c0_0 = arith.constant 0 : index
    %0 = vector.load %arg1[%c0, %c0_0] : memref<2x8xi32, #tpu.memory_space<vmem>>, vector<2x8xi32>
    %1 = tpu.iota {dimensions = array<i32: 2>} : vector<2x8x128xi32>
    %2 = vector.shape_cast %0 : vector<2x8xi32> to vector<2x8x1xi32>
    %3 = vector.broadcast %2 : vector<2x8x1xi32> to vector<2x8x128xi32>
    %4 = arith.cmpi eq, %1, %3 : vector<2x8x128xi32>
    %5 = arith.extui %4 : vector<2x8x128xi1> to vector<2x8x128xi32>
    %6 = arith.sitofp %5 : vector<2x8x128xi32> to vector<2x8x128xf32>
    %7 = vector.shape_cast %6 : vector<2x8x128xf32> to vector<16x128xf32>
    %c0_1 = arith.constant 0 : index
    %c0_2 = arith.constant 0 : index
    %8 = vector.load %arg3[%c0_1, %c0_2] : memref<136x32xf32, #tpu.memory_space<vmem>>, vector<128x32xf32>
    %cst = arith.constant dense<0.000000e+00> : vector<16x32xf32>
    %9 = tpu.matmul %7, %8, %cst {dimension_numbers = #tpu.dot_dimension_numbers<[1], [0], [0], [1], [0, 0, 1, 1], [], []>} : vector<16x128xf32>, vector<128x32xf32>, vector<16x32xf32> -> vector<16x32xf32>
    %c128 = arith.constant 128 : index
    %c0_3 = arith.constant 0 : index
    %10 = vector.load %arg3[%c128, %c0_3] : memref<136x32xf32, #tpu.memory_space<vmem>>, vector<8x32xf32>
    %11 = vector.shape_cast %10 : vector<8x32xf32> to vector<1x8x32xf32>
    %12 = vector.shape_cast %11 : vector<1x8x32xf32> to vector<1x8x32xf32>
    %13 = vector.broadcast %12 : vector<1x8x32xf32> to vector<2x8x32xf32>
    %14 = vector.shape_cast %13 : vector<2x8x32xf32> to vector<16x32xf32>
    %15 = arith.addf %9, %14 : vector<16x32xf32>
    %c2 = arith.constant 2 : index
    %c0_4 = arith.constant 0 : index
    %c0_5 = arith.constant 0 : index
    %16 = vector.load %arg5[%c2, %c0_4, %c0_5] : memref<3x1x2432xf32, #tpu.memory_space<vmem>>, vector<1x1x32xf32>
    %17 = vector.shape_cast %16 : vector<1x1x32xf32> to vector<1x32xf32>
    %c2_6 = arith.constant 2 : index
    %c0_7 = arith.constant 0 : index
    %c128_8 = arith.constant 128 : index
    %18 = vector.load %arg5[%c2_6, %c0_7, %c128_8] : memref<3x1x2432xf32, #tpu.memory_space<vmem>>, vector<1x1x32xf32>
    %19 = vector.shape_cast %18 : vector<1x1x32xf32> to vector<1x32xf32>
    %cst_9 = arith.constant dense<0.000000e+00> : vector<16xf32>
    %20 = vector.multi_reduction <add>, %15, %cst_9 [1] : vector<16x32xf32> to vector<16xf32>
    %21 = vector.shape_cast %20 : vector<16xf32> to vector<16x1xf32>
    %cst_10 = arith.constant 3.200000e+01 : f32
    %22 = vector.broadcast %cst_10 : f32 to vector<16x1xf32>
    %23 = arith.divf %21, %22 : vector<16x1xf32>
    %24 = vector.broadcast %23 : vector<16x1xf32> to vector<16x32xf32>
    %25 = arith.subf %15, %24 : vector<16x32xf32>
    %26 = arith.mulf %25, %25 : vector<16x32xf32>
    %cst_11 = arith.constant dense<0.000000e+00> : vector<16xf32>
    %27 = vector.multi_reduction <add>, %26, %cst_11 [1] : vector<16x32xf32> to vector<16xf32>
    %28 = vector.shape_cast %27 : vector<16xf32> to vector<16x1xf32>
    %cst_12 = arith.constant 3.200000e+01 : f32
    %29 = vector.broadcast %cst_12 : f32 to vector<16x1xf32>
    %30 = arith.divf %28, %29 : vector<16x1xf32>
    %31 = vector.broadcast %23 : vector<16x1xf32> to vector<16x32xf32>
    %32 = arith.subf %15, %31 : vector<16x32xf32>
    %cst_13 = arith.constant 9.99999996E-13 : f32
    %33 = vector.broadcast %cst_13 : f32 to vector<16x1xf32>
    %34 = arith.addf %30, %33 : vector<16x1xf32>
    %35 = math.rsqrt %34 : vector<16x1xf32>
    %36 = vector.broadcast %35 : vector<16x1xf32> to vector<16x32xf32>
    %37 = arith.mulf %32, %36 : vector<16x32xf32>
    %38 = vector.broadcast %17 : vector<1x32xf32> to vector<16x32xf32>
    %39 = arith.mulf %37, %38 : vector<16x32xf32>
    %40 = vector.broadcast %19 : vector<1x32xf32> to vector<16x32xf32>
    %41 = arith.addf %39, %40 : vector<16x32xf32>
    %c0_14 = arith.constant 0 : index
    %c0_15 = arith.constant 0 : index
    %42 = vector.load %arg2[%c0_14, %c0_15] : memref<2x8xi32, #tpu.memory_space<vmem>>, vector<2x8xi32>
    %43 = arith.sitofp %42 : vector<2x8xi32> to vector<2x8xf32>
    %cst_16 = arith.constant 1.000000e+00 : f32
    %44 = vector.broadcast %cst_16 : f32 to vector<2x8xf32>
    %45 = arith.subf %44, %43 : vector<2x8xf32>
    %cst_17 = arith.constant -1.000000e+09 : f32
    %46 = vector.broadcast %cst_17 : f32 to vector<2x8xf32>
    %47 = arith.mulf %45, %46 : vector<2x8xf32>
    %48 = vector.shape_cast %47 : vector<2x8xf32> to vector<2x1x8xf32>
    %49 = vector.shape_cast %48 : vector<2x1x8xf32> to vector<2x1x8xf32>
    %50 = vector.broadcast %49 : vector<2x1x8xf32> to vector<2x8x8xf32>
    %51 = vector.shape_cast %50 : vector<2x8x8xf32> to vector<1x2x8x8xf32>
    %52 = vector.shape_cast %51 : vector<1x2x8x8xf32> to vector<1x2x8x8xf32>
    %53 = vector.broadcast %52 : vector<1x2x8x8xf32> to vector<4x2x8x8xf32>
    %54 = vector.shape_cast %53 : vector<4x2x8x8xf32> to vector<8x8x8xf32>
    %c0_18 = arith.constant 0 : index
    %c0_19 = arith.constant 0 : index
    %c0_20 = arith.constant 0 : index
    %55 = vector.load %arg4[%c0_18, %c0_19, %c0_20] : memref<3x64x1920xf32, #tpu.memory_space<vmem>>, vector<1x32x1536xf32>
    %56 = vector.shape_cast %55 : vector<1x32x1536xf32> to vector<32x1536xf32>
    %c0_21 = arith.constant 0 : index
    %c0_22 = arith.constant 0 : index
    %c0_23 = arith.constant 0 : index
    %57 = vector.load %arg5[%c0_21, %c0_22, %c0_23] : memref<3x1x2432xf32, #tpu.memory_space<vmem>>, vector<1x1x1536xf32>
    %58 = vector.shape_cast %57 : vector<1x1x1536xf32> to vector<1x1536xf32>
    %c0_24 = arith.constant 0 : index
    %c0_25 = arith.constant 0 : index
    %c1536 = arith.constant 1536 : index
    %59 = vector.load %arg4[%c0_24, %c0_25, %c1536] : memref<3x64x1920xf32, #tpu.memory_space<vmem>>, vector<1x32x32xf32>
    %60 = vector.shape_cast %59 : vector<1x32x32xf32> to vector<32x32xf32>
    %c0_26 = arith.constant 0 : index
    %c0_27 = arith.constant 0 : index
    %c1536_28 = arith.constant 1536 : index
    %61 = vector.load %arg5[%c0_26, %c0_27, %c1536_28] : memref<3x1x2432xf32, #tpu.memory_space<vmem>>, vector<1x1x32xf32>
    %62 = vector.shape_cast %61 : vector<1x1x32xf32> to vector<1x32xf32>
    %c0_29 = arith.constant 0 : index
    %c0_30 = arith.constant 0 : index
    %c1664 = arith.constant 1664 : index
    %63 = vector.load %arg4[%c0_29, %c0_30, %c1664] : memref<3x64x1920xf32, #tpu.memory_space<vmem>>, vector<1x32x64xf32>
    %64 = vector.shape_cast %63 : vector<1x32x64xf32> to vector<32x64xf32>
    %c0_31 = arith.constant 0 : index
    %c0_32 = arith.constant 0 : index
    %c1664_33 = arith.constant 1664 : index
    %65 = vector.load %arg5[%c0_31, %c0_32, %c1664_33] : memref<3x1x2432xf32, #tpu.memory_space<vmem>>, vector<1x1x64xf32>
    %66 = vector.shape_cast %65 : vector<1x1x64xf32> to vector<1x64xf32>
    %c0_34 = arith.constant 0 : index
    %c0_35 = arith.constant 0 : index
    %c1792 = arith.constant 1792 : index
    %67 = vector.load %arg4[%c0_34, %c0_35, %c1792] : memref<3x64x1920xf32, #tpu.memory_space<vmem>>, vector<1x64x32xf32>
    %68 = vector.shape_cast %67 : vector<1x64x32xf32> to vector<64x32xf32>
    %c0_36 = arith.constant 0 : index
    %c0_37 = arith.constant 0 : index
    %c1792_38 = arith.constant 1792 : index
    %69 = vector.load %arg5[%c0_36, %c0_37, %c1792_38] : memref<3x1x2432xf32, #tpu.memory_space<vmem>>, vector<1x1x32xf32>
    %70 = vector.shape_cast %69 : vector<1x1x32xf32> to vector<1x32xf32>
    %c0_39 = arith.constant 0 : index
    %c0_40 = arith.constant 0 : index
    %c1920 = arith.constant 1920 : index
    %71 = vector.load %arg5[%c0_39, %c0_40, %c1920] : memref<3x1x2432xf32, #tpu.memory_space<vmem>>, vector<1x1x32xf32>
    %72 = vector.shape_cast %71 : vector<1x1x32xf32> to vector<1x32xf32>
    %c0_41 = arith.constant 0 : index
    %c0_42 = arith.constant 0 : index
    %c2048 = arith.constant 2048 : index
    %73 = vector.load %arg5[%c0_41, %c0_42, %c2048] : memref<3x1x2432xf32, #tpu.memory_space<vmem>>, vector<1x1x32xf32>
    %74 = vector.shape_cast %73 : vector<1x1x32xf32> to vector<1x32xf32>
    %c0_43 = arith.constant 0 : index
    %c0_44 = arith.constant 0 : index
    %c2176 = arith.constant 2176 : index
    %75 = vector.load %arg5[%c0_43, %c0_44, %c2176] : memref<3x1x2432xf32, #tpu.memory_space<vmem>>, vector<1x1x32xf32>
    %76 = vector.shape_cast %75 : vector<1x1x32xf32> to vector<1x32xf32>
    %c0_45 = arith.constant 0 : index
    %c0_46 = arith.constant 0 : index
    %c2304 = arith.constant 2304 : index
    %77 = vector.load %arg5[%c0_45, %c0_46, %c2304] : memref<3x1x2432xf32, #tpu.memory_space<vmem>>, vector<1x1x32xf32>
    %78 = vector.shape_cast %77 : vector<1x1x32xf32> to vector<1x32xf32>
    %cst_47 = arith.constant dense<0.000000e+00> : vector<16x1536xf32>
    %79 = tpu.matmul %41, %56, %cst_47 {dimension_numbers = #tpu.dot_dimension_numbers<[1], [0], [0], [1], [0, 0, 1, 1], [], []>} : vector<16x32xf32>, vector<32x1536xf32>, vector<16x1536xf32> -> vector<16x1536xf32>
    %80 = vector.broadcast %58 : vector<1x1536xf32> to vector<16x1536xf32>
    %81 = arith.addf %79, %80 : vector<16x1536xf32>
    %82 = vector.extract_strided_slice %81 {offsets = [0, 0], sizes = [16, 8], strides = [1, 1]} : vector<16x1536xf32> to vector<16x8xf32>
    %83 = vector.shape_cast %82 : vector<16x8xf32> to vector<2x8x8xf32>
    %84 = vector.extract_strided_slice %81 {offsets = [0, 128], sizes = [16, 8], strides = [1, 1]} : vector<16x1536xf32> to vector<16x8xf32>
    %85 = vector.shape_cast %84 : vector<16x8xf32> to vector<2x8x8xf32>
    %86 = vector.extract_strided_slice %81 {offsets = [0, 256], sizes = [16, 8], strides = [1, 1]} : vector<16x1536xf32> to vector<16x8xf32>
    %87 = vector.shape_cast %86 : vector<16x8xf32> to vector<2x8x8xf32>
    %88 = vector.extract_strided_slice %81 {offsets = [0, 384], sizes = [16, 8], strides = [1, 1]} : vector<16x1536xf32> to vector<16x8xf32>
    %89 = vector.shape_cast %88 : vector<16x8xf32> to vector<2x8x8xf32>
    %90 = tpu.concatenate %83, %85, %87, %89 in 0 : vector<2x8x8xf32>, vector<2x8x8xf32>, vector<2x8x8xf32>, vector<2x8x8xf32> -> vector<8x8x8xf32>
    %91 = vector.extract_strided_slice %81 {offsets = [0, 512], sizes = [16, 8], strides = [1, 1]} : vector<16x1536xf32> to vector<16x8xf32>
    %92 = vector.shape_cast %91 : vector<16x8xf32> to vector<2x8x8xf32>
    %93 = vector.extract_strided_slice %81 {offsets = [0, 640], sizes = [16, 8], strides = [1, 1]} : vector<16x1536xf32> to vector<16x8xf32>
    %94 = vector.shape_cast %93 : vector<16x8xf32> to vector<2x8x8xf32>
    %95 = vector.extract_strided_slice %81 {offsets = [0, 768], sizes = [16, 8], strides = [1, 1]} : vector<16x1536xf32> to vector<16x8xf32>
    %96 = vector.shape_cast %95 : vector<16x8xf32> to vector<2x8x8xf32>
    %97 = vector.extract_strided_slice %81 {offsets = [0, 896], sizes = [16, 8], strides = [1, 1]} : vector<16x1536xf32> to vector<16x8xf32>
    %98 = vector.shape_cast %97 : vector<16x8xf32> to vector<2x8x8xf32>
    %99 = tpu.concatenate %92, %94, %96, %98 in 0 : vector<2x8x8xf32>, vector<2x8x8xf32>, vector<2x8x8xf32>, vector<2x8x8xf32> -> vector<8x8x8xf32>
    %100 = vector.extract_strided_slice %81 {offsets = [0, 1024], sizes = [16, 8], strides = [1, 1]} : vector<16x1536xf32> to vector<16x8xf32>
    %101 = vector.shape_cast %100 : vector<16x8xf32> to vector<2x8x8xf32>
    %102 = vector.extract_strided_slice %81 {offsets = [0, 1152], sizes = [16, 8], strides = [1, 1]} : vector<16x1536xf32> to vector<16x8xf32>
    %103 = vector.shape_cast %102 : vector<16x8xf32> to vector<2x8x8xf32>
    %104 = vector.extract_strided_slice %81 {offsets = [0, 1280], sizes = [16, 8], strides = [1, 1]} : vector<16x1536xf32> to vector<16x8xf32>
    %105 = vector.shape_cast %104 : vector<16x8xf32> to vector<2x8x8xf32>
    %106 = vector.extract_strided_slice %81 {offsets = [0, 1408], sizes = [16, 8], strides = [1, 1]} : vector<16x1536xf32> to vector<16x8xf32>
    %107 = vector.shape_cast %106 : vector<16x8xf32> to vector<2x8x8xf32>
    %108 = tpu.concatenate %101, %103, %105, %107 in 0 : vector<2x8x8xf32>, vector<2x8x8xf32>, vector<2x8x8xf32>, vector<2x8x8xf32> -> vector<8x8x8xf32>
    "tpu.trace_start"() <{level = 10 : i32, message = "gqd,gkd->gqk"}> : () -> ()
    %cst_48 = arith.constant dense<0.000000e+00> : vector<8x8x8xf32>
    %109 = tpu.matmul %90, %99, %cst_48 {dimension_numbers = #tpu.dot_dimension_numbers<[2], [2], [1], [1], [0, 0, 0, 1, 1, 1], [0], [0]>} : vector<8x8x8xf32>, vector<8x8x8xf32>, vector<8x8x8xf32> -> vector<8x8x8xf32>
    "tpu.trace_stop"() : () -> ()
    %cst_49 = arith.constant 0.353553385 : f32
    %110 = vector.broadcast %cst_49 : f32 to vector<8x8x8xf32>
    %111 = arith.mulf %109, %110 : vector<8x8x8xf32>
    %112 = arith.addf %111, %54 : vector<8x8x8xf32>
    %cst_50 = arith.constant dense<0xFF800000> : vector<8x8xf32>
    %113 = vector.multi_reduction <maximumf>, %112, %cst_50 [2] : vector<8x8x8xf32> to vector<8x8xf32>
    %114 = vector.shape_cast %113 : vector<8x8xf32> to vector<8x8x1xf32>
    %115 = vector.broadcast %114 : vector<8x8x1xf32> to vector<8x8x8xf32>
    %116 = arith.subf %112, %115 : vector<8x8x8xf32>
    %117 = math.exp %116 : vector<8x8x8xf32>
    %cst_51 = arith.constant dense<0.000000e+00> : vector<8x8xf32>
    %118 = vector.multi_reduction <add>, %117, %cst_51 [2] : vector<8x8x8xf32> to vector<8x8xf32>
    %119 = vector.shape_cast %118 : vector<8x8xf32> to vector<8x8x1xf32>
    %120 = tpu.reciprocal %119 {approx = true} : vector<8x8x1xf32> -> vector<8x8x1xf32>
    %121 = vector.broadcast %120 : vector<8x8x1xf32> to vector<8x8x8xf32>
    %122 = arith.mulf %117, %121 : vector<8x8x8xf32>
    "tpu.trace_start"() <{level = 10 : i32, message = "gqk,gkd->gqd"}> : () -> ()
    %cst_52 = arith.constant dense<0.000000e+00> : vector<8x8x8xf32>
    %123 = tpu.matmul %122, %108, %cst_52 {dimension_numbers = #tpu.dot_dimension_numbers<[2], [1], [1], [2], [0, 0, 0, 1, 1, 2], [0], [0]>} : vector<8x8x8xf32>, vector<8x8x8xf32>, vector<8x8x8xf32> -> vector<8x8x8xf32>
    "tpu.trace_stop"() : () -> ()
    %124 = vector.extract_strided_slice %123 {offsets = [0, 0, 0], sizes = [2, 8, 8], strides = [1, 1, 1]} : vector<8x8x8xf32> to vector<2x8x8xf32>
    %125 = vector.shape_cast %124 : vector<2x8x8xf32> to vector<16x8xf32>
    %126 = vector.extract_strided_slice %123 {offsets = [2, 0, 0], sizes = [2, 8, 8], strides = [1, 1, 1]} : vector<8x8x8xf32> to vector<2x8x8xf32>
    %127 = vector.shape_cast %126 : vector<2x8x8xf32> to vector<16x8xf32>
    %128 = vector.extract_strided_slice %123 {offsets = [4, 0, 0], sizes = [2, 8, 8], strides = [1, 1, 1]} : vector<8x8x8xf32> to vector<2x8x8xf32>
    %129 = vector.shape_cast %128 : vector<2x8x8xf32> to vector<16x8xf32>
    %130 = vector.extract_strided_slice %123 {offsets = [6, 0, 0], sizes = [2, 8, 8], strides = [1, 1, 1]} : vector<8x8x8xf32> to vector<2x8x8xf32>
    %131 = vector.shape_cast %130 : vector<2x8x8xf32> to vector<16x8xf32>
    %132 = tpu.concatenate %125, %127, %129, %131 in 1 : vector<16x8xf32>, vector<16x8xf32>, vector<16x8xf32>, vector<16x8xf32> -> vector<16x32xf32>
    %cst_53 = arith.constant dense<0.000000e+00> : vector<16x32xf32>
    %133 = tpu.matmul %132, %60, %cst_53 {dimension_numbers = #tpu.dot_dimension_numbers<[1], [0], [0], [1], [0, 0, 1, 1], [], []>} : vector<16x32xf32>, vector<32x32xf32>, vector<16x32xf32> -> vector<16x32xf32>
    %134 = vector.broadcast %62 : vector<1x32xf32> to vector<16x32xf32>
    %135 = arith.addf %133, %134 : vector<16x32xf32>
    %136 = arith.addf %41, %135 : vector<16x32xf32>
    %cst_54 = arith.constant dense<0.000000e+00> : vector<16xf32>
    %137 = vector.multi_reduction <add>, %136, %cst_54 [1] : vector<16x32xf32> to vector<16xf32>
    %138 = vector.shape_cast %137 : vector<16xf32> to vector<16x1xf32>
    %cst_55 = arith.constant 3.200000e+01 : f32
    %139 = vector.broadcast %cst_55 : f32 to vector<16x1xf32>
    %140 = arith.divf %138, %139 : vector<16x1xf32>
    %141 = vector.broadcast %140 : vector<16x1xf32> to vector<16x32xf32>
    %142 = arith.subf %136, %141 : vector<16x32xf32>
    %143 = arith.mulf %142, %142 : vector<16x32xf32>
    %cst_56 = arith.constant dense<0.000000e+00> : vector<16xf32>
    %144 = vector.multi_reduction <add>, %143, %cst_56 [1] : vector<16x32xf32> to vector<16xf32>
    %145 = vector.shape_cast %144 : vector<16xf32> to vector<16x1xf32>
    %cst_57 = arith.constant 3.200000e+01 : f32
    %146 = vector.broadcast %cst_57 : f32 to vector<16x1xf32>
    %147 = arith.divf %145, %146 : vector<16x1xf32>
    %148 = vector.broadcast %140 : vector<16x1xf32> to vector<16x32xf32>
    %149 = arith.subf %136, %148 : vector<16x32xf32>
    %cst_58 = arith.constant 9.99999996E-13 : f32
    %150 = vector.broadcast %cst_58 : f32 to vector<16x1xf32>
    %151 = arith.addf %147, %150 : vector<16x1xf32>
    %152 = math.rsqrt %151 : vector<16x1xf32>
    %153 = vector.broadcast %152 : vector<16x1xf32> to vector<16x32xf32>
    %154 = arith.mulf %149, %153 : vector<16x32xf32>
    %155 = vector.broadcast %72 : vector<1x32xf32> to vector<16x32xf32>
    %156 = arith.mulf %154, %155 : vector<16x32xf32>
    %157 = vector.broadcast %74 : vector<1x32xf32> to vector<16x32xf32>
    %158 = arith.addf %156, %157 : vector<16x32xf32>
    %cst_59 = arith.constant dense<0.000000e+00> : vector<16x64xf32>
    %159 = tpu.matmul %158, %64, %cst_59 {dimension_numbers = #tpu.dot_dimension_numbers<[1], [0], [0], [1], [0, 0, 1, 1], [], []>} : vector<16x32xf32>, vector<32x64xf32>, vector<16x64xf32> -> vector<16x64xf32>
    %160 = vector.broadcast %66 : vector<1x64xf32> to vector<16x64xf32>
    %161 = arith.addf %159, %160 : vector<16x64xf32>
    %cst_60 = arith.constant 5.000000e-01 : f32
    %162 = vector.broadcast %cst_60 : f32 to vector<16x64xf32>
    %163 = arith.mulf %162, %161 : vector<16x64xf32>
    %cst_61 = arith.constant 4.471500e-02 : f32
    %164 = vector.broadcast %cst_61 : f32 to vector<16x64xf32>
    %165 = arith.mulf %164, %161 : vector<16x64xf32>
    %166 = arith.mulf %165, %161 : vector<16x64xf32>
    %167 = arith.mulf %166, %161 : vector<16x64xf32>
    %168 = arith.addf %161, %167 : vector<16x64xf32>
    %cst_62 = arith.constant 0.797884583 : f32
    %169 = vector.broadcast %cst_62 : f32 to vector<16x64xf32>
    %170 = arith.mulf %169, %168 : vector<16x64xf32>
    %171 = math.tanh %170 : vector<16x64xf32>
    %cst_63 = arith.constant 1.000000e+00 : f32
    %172 = vector.broadcast %cst_63 : f32 to vector<16x64xf32>
    %173 = arith.addf %172, %171 : vector<16x64xf32>
    %174 = arith.mulf %163, %173 : vector<16x64xf32>
    %cst_64 = arith.constant dense<0.000000e+00> : vector<16x32xf32>
    %175 = tpu.matmul %174, %68, %cst_64 {dimension_numbers = #tpu.dot_dimension_numbers<[1], [0], [0], [1], [0, 0, 1, 1], [], []>} : vector<16x64xf32>, vector<64x32xf32>, vector<16x32xf32> -> vector<16x32xf32>
    %176 = vector.broadcast %70 : vector<1x32xf32> to vector<16x32xf32>
    %177 = arith.addf %175, %176 : vector<16x32xf32>
    %178 = arith.addf %158, %177 : vector<16x32xf32>
    %cst_65 = arith.constant dense<0.000000e+00> : vector<16xf32>
    %179 = vector.multi_reduction <add>, %178, %cst_65 [1] : vector<16x32xf32> to vector<16xf32>
    %180 = vector.shape_cast %179 : vector<16xf32> to vector<16x1xf32>
    %cst_66 = arith.constant 3.200000e+01 : f32
    %181 = vector.broadcast %cst_66 : f32 to vector<16x1xf32>
    %182 = arith.divf %180, %181 : vector<16x1xf32>
    %183 = vector.broadcast %182 : vector<16x1xf32> to vector<16x32xf32>
    %184 = arith.subf %178, %183 : vector<16x32xf32>
    %185 = arith.mulf %184, %184 : vector<16x32xf32>
    %cst_67 = arith.constant dense<0.000000e+00> : vector<16xf32>
    %186 = vector.multi_reduction <add>, %185, %cst_67 [1] : vector<16x32xf32> to vector<16xf32>
    %187 = vector.shape_cast %186 : vector<16xf32> to vector<16x1xf32>
    %cst_68 = arith.constant 3.200000e+01 : f32
    %188 = vector.broadcast %cst_68 : f32 to vector<16x1xf32>
    %189 = arith.divf %187, %188 : vector<16x1xf32>
    %190 = vector.broadcast %182 : vector<16x1xf32> to vector<16x32xf32>
    %191 = arith.subf %178, %190 : vector<16x32xf32>
    %cst_69 = arith.constant 9.99999996E-13 : f32
    %192 = vector.broadcast %cst_69 : f32 to vector<16x1xf32>
    %193 = arith.addf %189, %192 : vector<16x1xf32>
    %194 = math.rsqrt %193 : vector<16x1xf32>
    %195 = vector.broadcast %194 : vector<16x1xf32> to vector<16x32xf32>
    %196 = arith.mulf %191, %195 : vector<16x32xf32>
    %197 = vector.broadcast %76 : vector<1x32xf32> to vector<16x32xf32>
    %198 = arith.mulf %196, %197 : vector<16x32xf32>
    %199 = vector.broadcast %78 : vector<1x32xf32> to vector<16x32xf32>
    %200 = arith.addf %198, %199 : vector<16x32xf32>
    %c1 = arith.constant 1 : index
    %c0_70 = arith.constant 0 : index
    %c0_71 = arith.constant 0 : index
    %201 = vector.load %arg4[%c1, %c0_70, %c0_71] : memref<3x64x1920xf32, #tpu.memory_space<vmem>>, vector<1x32x1536xf32>
    %202 = vector.shape_cast %201 : vector<1x32x1536xf32> to vector<32x1536xf32>
    %c1_72 = arith.constant 1 : index
    %c0_73 = arith.constant 0 : index
    %c0_74 = arith.constant 0 : index
    %203 = vector.load %arg5[%c1_72, %c0_73, %c0_74] : memref<3x1x2432xf32, #tpu.memory_space<vmem>>, vector<1x1x1536xf32>
    %204 = vector.shape_cast %203 : vector<1x1x1536xf32> to vector<1x1536xf32>
    %c1_75 = arith.constant 1 : index
    %c0_76 = arith.constant 0 : index
    %c1536_77 = arith.constant 1536 : index
    %205 = vector.load %arg4[%c1_75, %c0_76, %c1536_77] : memref<3x64x1920xf32, #tpu.memory_space<vmem>>, vector<1x32x32xf32>
    %206 = vector.shape_cast %205 : vector<1x32x32xf32> to vector<32x32xf32>
    %c1_78 = arith.constant 1 : index
    %c0_79 = arith.constant 0 : index
    %c1536_80 = arith.constant 1536 : index
    %207 = vector.load %arg5[%c1_78, %c0_79, %c1536_80] : memref<3x1x2432xf32, #tpu.memory_space<vmem>>, vector<1x1x32xf32>
    %208 = vector.shape_cast %207 : vector<1x1x32xf32> to vector<1x32xf32>
    %c1_81 = arith.constant 1 : index
    %c0_82 = arith.constant 0 : index
    %c1664_83 = arith.constant 1664 : index
    %209 = vector.load %arg4[%c1_81, %c0_82, %c1664_83] : memref<3x64x1920xf32, #tpu.memory_space<vmem>>, vector<1x32x64xf32>
    %210 = vector.shape_cast %209 : vector<1x32x64xf32> to vector<32x64xf32>
    %c1_84 = arith.constant 1 : index
    %c0_85 = arith.constant 0 : index
    %c1664_86 = arith.constant 1664 : index
    %211 = vector.load %arg5[%c1_84, %c0_85, %c1664_86] : memref<3x1x2432xf32, #tpu.memory_space<vmem>>, vector<1x1x64xf32>
    %212 = vector.shape_cast %211 : vector<1x1x64xf32> to vector<1x64xf32>
    %c1_87 = arith.constant 1 : index
    %c0_88 = arith.constant 0 : index
    %c1792_89 = arith.constant 1792 : index
    %213 = vector.load %arg4[%c1_87, %c0_88, %c1792_89] : memref<3x64x1920xf32, #tpu.memory_space<vmem>>, vector<1x64x32xf32>
    %214 = vector.shape_cast %213 : vector<1x64x32xf32> to vector<64x32xf32>
    %c1_90 = arith.constant 1 : index
    %c0_91 = arith.constant 0 : index
    %c1792_92 = arith.constant 1792 : index
    %215 = vector.load %arg5[%c1_90, %c0_91, %c1792_92] : memref<3x1x2432xf32, #tpu.memory_space<vmem>>, vector<1x1x32xf32>
    %216 = vector.shape_cast %215 : vector<1x1x32xf32> to vector<1x32xf32>
    %c1_93 = arith.constant 1 : index
    %c0_94 = arith.constant 0 : index
    %c1920_95 = arith.constant 1920 : index
    %217 = vector.load %arg5[%c1_93, %c0_94, %c1920_95] : memref<3x1x2432xf32, #tpu.memory_space<vmem>>, vector<1x1x32xf32>
    %218 = vector.shape_cast %217 : vector<1x1x32xf32> to vector<1x32xf32>
    %c1_96 = arith.constant 1 : index
    %c0_97 = arith.constant 0 : index
    %c2048_98 = arith.constant 2048 : index
    %219 = vector.load %arg5[%c1_96, %c0_97, %c2048_98] : memref<3x1x2432xf32, #tpu.memory_space<vmem>>, vector<1x1x32xf32>
    %220 = vector.shape_cast %219 : vector<1x1x32xf32> to vector<1x32xf32>
    %c1_99 = arith.constant 1 : index
    %c0_100 = arith.constant 0 : index
    %c2176_101 = arith.constant 2176 : index
    %221 = vector.load %arg5[%c1_99, %c0_100, %c2176_101] : memref<3x1x2432xf32, #tpu.memory_space<vmem>>, vector<1x1x32xf32>
    %222 = vector.shape_cast %221 : vector<1x1x32xf32> to vector<1x32xf32>
    %c1_102 = arith.constant 1 : index
    %c0_103 = arith.constant 0 : index
    %c2304_104 = arith.constant 2304 : index
    %223 = vector.load %arg5[%c1_102, %c0_103, %c2304_104] : memref<3x1x2432xf32, #tpu.memory_space<vmem>>, vector<1x1x32xf32>
    %224 = vector.shape_cast %223 : vector<1x1x32xf32> to vector<1x32xf32>
    %cst_105 = arith.constant dense<0.000000e+00> : vector<16x1536xf32>
    %225 = tpu.matmul %200, %202, %cst_105 {dimension_numbers = #tpu.dot_dimension_numbers<[1], [0], [0], [1], [0, 0, 1, 1], [], []>} : vector<16x32xf32>, vector<32x1536xf32>, vector<16x1536xf32> -> vector<16x1536xf32>
    %226 = vector.broadcast %204 : vector<1x1536xf32> to vector<16x1536xf32>
    %227 = arith.addf %225, %226 : vector<16x1536xf32>
    %228 = vector.extract_strided_slice %227 {offsets = [0, 0], sizes = [16, 8], strides = [1, 1]} : vector<16x1536xf32> to vector<16x8xf32>
    %229 = vector.shape_cast %228 : vector<16x8xf32> to vector<2x8x8xf32>
    %230 = vector.extract_strided_slice %227 {offsets = [0, 128], sizes = [16, 8], strides = [1, 1]} : vector<16x1536xf32> to vector<16x8xf32>
    %231 = vector.shape_cast %230 : vector<16x8xf32> to vector<2x8x8xf32>
    %232 = vector.extract_strided_slice %227 {offsets = [0, 256], sizes = [16, 8], strides = [1, 1]} : vector<16x1536xf32> to vector<16x8xf32>
    %233 = vector.shape_cast %232 : vector<16x8xf32> to vector<2x8x8xf32>
    %234 = vector.extract_strided_slice %227 {offsets = [0, 384], sizes = [16, 8], strides = [1, 1]} : vector<16x1536xf32> to vector<16x8xf32>
    %235 = vector.shape_cast %234 : vector<16x8xf32> to vector<2x8x8xf32>
    %236 = tpu.concatenate %229, %231, %233, %235 in 0 : vector<2x8x8xf32>, vector<2x8x8xf32>, vector<2x8x8xf32>, vector<2x8x8xf32> -> vector<8x8x8xf32>
    %237 = vector.extract_strided_slice %227 {offsets = [0, 512], sizes = [16, 8], strides = [1, 1]} : vector<16x1536xf32> to vector<16x8xf32>
    %238 = vector.shape_cast %237 : vector<16x8xf32> to vector<2x8x8xf32>
    %239 = vector.extract_strided_slice %227 {offsets = [0, 640], sizes = [16, 8], strides = [1, 1]} : vector<16x1536xf32> to vector<16x8xf32>
    %240 = vector.shape_cast %239 : vector<16x8xf32> to vector<2x8x8xf32>
    %241 = vector.extract_strided_slice %227 {offsets = [0, 768], sizes = [16, 8], strides = [1, 1]} : vector<16x1536xf32> to vector<16x8xf32>
    %242 = vector.shape_cast %241 : vector<16x8xf32> to vector<2x8x8xf32>
    %243 = vector.extract_strided_slice %227 {offsets = [0, 896], sizes = [16, 8], strides = [1, 1]} : vector<16x1536xf32> to vector<16x8xf32>
    %244 = vector.shape_cast %243 : vector<16x8xf32> to vector<2x8x8xf32>
    %245 = tpu.concatenate %238, %240, %242, %244 in 0 : vector<2x8x8xf32>, vector<2x8x8xf32>, vector<2x8x8xf32>, vector<2x8x8xf32> -> vector<8x8x8xf32>
    %246 = vector.extract_strided_slice %227 {offsets = [0, 1024], sizes = [16, 8], strides = [1, 1]} : vector<16x1536xf32> to vector<16x8xf32>
    %247 = vector.shape_cast %246 : vector<16x8xf32> to vector<2x8x8xf32>
    %248 = vector.extract_strided_slice %227 {offsets = [0, 1152], sizes = [16, 8], strides = [1, 1]} : vector<16x1536xf32> to vector<16x8xf32>
    %249 = vector.shape_cast %248 : vector<16x8xf32> to vector<2x8x8xf32>
    %250 = vector.extract_strided_slice %227 {offsets = [0, 1280], sizes = [16, 8], strides = [1, 1]} : vector<16x1536xf32> to vector<16x8xf32>
    %251 = vector.shape_cast %250 : vector<16x8xf32> to vector<2x8x8xf32>
    %252 = vector.extract_strided_slice %227 {offsets = [0, 1408], sizes = [16, 8], strides = [1, 1]} : vector<16x1536xf32> to vector<16x8xf32>
    %253 = vector.shape_cast %252 : vector<16x8xf32> to vector<2x8x8xf32>
    %254 = tpu.concatenate %247, %249, %251, %253 in 0 : vector<2x8x8xf32>, vector<2x8x8xf32>, vector<2x8x8xf32>, vector<2x8x8xf32> -> vector<8x8x8xf32>
    "tpu.trace_start"() <{level = 10 : i32, message = "gqd,gkd->gqk"}> : () -> ()
    %cst_106 = arith.constant dense<0.000000e+00> : vector<8x8x8xf32>
    %255 = tpu.matmul %236, %245, %cst_106 {dimension_numbers = #tpu.dot_dimension_numbers<[2], [2], [1], [1], [0, 0, 0, 1, 1, 1], [0], [0]>} : vector<8x8x8xf32>, vector<8x8x8xf32>, vector<8x8x8xf32> -> vector<8x8x8xf32>
    "tpu.trace_stop"() : () -> ()
    %cst_107 = arith.constant 0.353553385 : f32
    %256 = vector.broadcast %cst_107 : f32 to vector<8x8x8xf32>
    %257 = arith.mulf %255, %256 : vector<8x8x8xf32>
    %258 = arith.addf %257, %54 : vector<8x8x8xf32>
    %cst_108 = arith.constant dense<0xFF800000> : vector<8x8xf32>
    %259 = vector.multi_reduction <maximumf>, %258, %cst_108 [2] : vector<8x8x8xf32> to vector<8x8xf32>
    %260 = vector.shape_cast %259 : vector<8x8xf32> to vector<8x8x1xf32>
    %261 = vector.broadcast %260 : vector<8x8x1xf32> to vector<8x8x8xf32>
    %262 = arith.subf %258, %261 : vector<8x8x8xf32>
    %263 = math.exp %262 : vector<8x8x8xf32>
    %cst_109 = arith.constant dense<0.000000e+00> : vector<8x8xf32>
    %264 = vector.multi_reduction <add>, %263, %cst_109 [2] : vector<8x8x8xf32> to vector<8x8xf32>
    %265 = vector.shape_cast %264 : vector<8x8xf32> to vector<8x8x1xf32>
    %266 = tpu.reciprocal %265 {approx = true} : vector<8x8x1xf32> -> vector<8x8x1xf32>
    %267 = vector.broadcast %266 : vector<8x8x1xf32> to vector<8x8x8xf32>
    %268 = arith.mulf %263, %267 : vector<8x8x8xf32>
    "tpu.trace_start"() <{level = 10 : i32, message = "gqk,gkd->gqd"}> : () -> ()
    %cst_110 = arith.constant dense<0.000000e+00> : vector<8x8x8xf32>
    %269 = tpu.matmul %268, %254, %cst_110 {dimension_numbers = #tpu.dot_dimension_numbers<[2], [1], [1], [2], [0, 0, 0, 1, 1, 2], [0], [0]>} : vector<8x8x8xf32>, vector<8x8x8xf32>, vector<8x8x8xf32> -> vector<8x8x8xf32>
    "tpu.trace_stop"() : () -> ()
    %270 = vector.extract_strided_slice %269 {offsets = [0, 0, 0], sizes = [2, 8, 8], strides = [1, 1, 1]} : vector<8x8x8xf32> to vector<2x8x8xf32>
    %271 = vector.shape_cast %270 : vector<2x8x8xf32> to vector<16x8xf32>
    %272 = vector.extract_strided_slice %269 {offsets = [2, 0, 0], sizes = [2, 8, 8], strides = [1, 1, 1]} : vector<8x8x8xf32> to vector<2x8x8xf32>
    %273 = vector.shape_cast %272 : vector<2x8x8xf32> to vector<16x8xf32>
    %274 = vector.extract_strided_slice %269 {offsets = [4, 0, 0], sizes = [2, 8, 8], strides = [1, 1, 1]} : vector<8x8x8xf32> to vector<2x8x8xf32>
    %275 = vector.shape_cast %274 : vector<2x8x8xf32> to vector<16x8xf32>
    %276 = vector.extract_strided_slice %269 {offsets = [6, 0, 0], sizes = [2, 8, 8], strides = [1, 1, 1]} : vector<8x8x8xf32> to vector<2x8x8xf32>
    %277 = vector.shape_cast %276 : vector<2x8x8xf32> to vector<16x8xf32>
    %278 = tpu.concatenate %271, %273, %275, %277 in 1 : vector<16x8xf32>, vector<16x8xf32>, vector<16x8xf32>, vector<16x8xf32> -> vector<16x32xf32>
    %cst_111 = arith.constant dense<0.000000e+00> : vector<16x32xf32>
    %279 = tpu.matmul %278, %206, %cst_111 {dimension_numbers = #tpu.dot_dimension_numbers<[1], [0], [0], [1], [0, 0, 1, 1], [], []>} : vector<16x32xf32>, vector<32x32xf32>, vector<16x32xf32> -> vector<16x32xf32>
    %280 = vector.broadcast %208 : vector<1x32xf32> to vector<16x32xf32>
    %281 = arith.addf %279, %280 : vector<16x32xf32>
    %282 = arith.addf %200, %281 : vector<16x32xf32>
    %cst_112 = arith.constant dense<0.000000e+00> : vector<16xf32>
    %283 = vector.multi_reduction <add>, %282, %cst_112 [1] : vector<16x32xf32> to vector<16xf32>
    %284 = vector.shape_cast %283 : vector<16xf32> to vector<16x1xf32>
    %cst_113 = arith.constant 3.200000e+01 : f32
    %285 = vector.broadcast %cst_113 : f32 to vector<16x1xf32>
    %286 = arith.divf %284, %285 : vector<16x1xf32>
    %287 = vector.broadcast %286 : vector<16x1xf32> to vector<16x32xf32>
    %288 = arith.subf %282, %287 : vector<16x32xf32>
    %289 = arith.mulf %288, %288 : vector<16x32xf32>
    %cst_114 = arith.constant dense<0.000000e+00> : vector<16xf32>
    %290 = vector.multi_reduction <add>, %289, %cst_114 [1] : vector<16x32xf32> to vector<16xf32>
    %291 = vector.shape_cast %290 : vector<16xf32> to vector<16x1xf32>
    %cst_115 = arith.constant 3.200000e+01 : f32
    %292 = vector.broadcast %cst_115 : f32 to vector<16x1xf32>
    %293 = arith.divf %291, %292 : vector<16x1xf32>
    %294 = vector.broadcast %286 : vector<16x1xf32> to vector<16x32xf32>
    %295 = arith.subf %282, %294 : vector<16x32xf32>
    %cst_116 = arith.constant 9.99999996E-13 : f32
    %296 = vector.broadcast %cst_116 : f32 to vector<16x1xf32>
    %297 = arith.addf %293, %296 : vector<16x1xf32>
    %298 = math.rsqrt %297 : vector<16x1xf32>
    %299 = vector.broadcast %298 : vector<16x1xf32> to vector<16x32xf32>
    %300 = arith.mulf %295, %299 : vector<16x32xf32>
    %301 = vector.broadcast %218 : vector<1x32xf32> to vector<16x32xf32>
    %302 = arith.mulf %300, %301 : vector<16x32xf32>
    %303 = vector.broadcast %220 : vector<1x32xf32> to vector<16x32xf32>
    %304 = arith.addf %302, %303 : vector<16x32xf32>
    %cst_117 = arith.constant dense<0.000000e+00> : vector<16x64xf32>
    %305 = tpu.matmul %304, %210, %cst_117 {dimension_numbers = #tpu.dot_dimension_numbers<[1], [0], [0], [1], [0, 0, 1, 1], [], []>} : vector<16x32xf32>, vector<32x64xf32>, vector<16x64xf32> -> vector<16x64xf32>
    %306 = vector.broadcast %212 : vector<1x64xf32> to vector<16x64xf32>
    %307 = arith.addf %305, %306 : vector<16x64xf32>
    %cst_118 = arith.constant 5.000000e-01 : f32
    %308 = vector.broadcast %cst_118 : f32 to vector<16x64xf32>
    %309 = arith.mulf %308, %307 : vector<16x64xf32>
    %cst_119 = arith.constant 4.471500e-02 : f32
    %310 = vector.broadcast %cst_119 : f32 to vector<16x64xf32>
    %311 = arith.mulf %310, %307 : vector<16x64xf32>
    %312 = arith.mulf %311, %307 : vector<16x64xf32>
    %313 = arith.mulf %312, %307 : vector<16x64xf32>
    %314 = arith.addf %307, %313 : vector<16x64xf32>
    %cst_120 = arith.constant 0.797884583 : f32
    %315 = vector.broadcast %cst_120 : f32 to vector<16x64xf32>
    %316 = arith.mulf %315, %314 : vector<16x64xf32>
    %317 = math.tanh %316 : vector<16x64xf32>
    %cst_121 = arith.constant 1.000000e+00 : f32
    %318 = vector.broadcast %cst_121 : f32 to vector<16x64xf32>
    %319 = arith.addf %318, %317 : vector<16x64xf32>
    %320 = arith.mulf %309, %319 : vector<16x64xf32>
    %cst_122 = arith.constant dense<0.000000e+00> : vector<16x32xf32>
    %321 = tpu.matmul %320, %214, %cst_122 {dimension_numbers = #tpu.dot_dimension_numbers<[1], [0], [0], [1], [0, 0, 1, 1], [], []>} : vector<16x64xf32>, vector<64x32xf32>, vector<16x32xf32> -> vector<16x32xf32>
    %322 = vector.broadcast %216 : vector<1x32xf32> to vector<16x32xf32>
    %323 = arith.addf %321, %322 : vector<16x32xf32>
    %324 = arith.addf %304, %323 : vector<16x32xf32>
    %cst_123 = arith.constant dense<0.000000e+00> : vector<16xf32>
    %325 = vector.multi_reduction <add>, %324, %cst_123 [1] : vector<16x32xf32> to vector<16xf32>
    %326 = vector.shape_cast %325 : vector<16xf32> to vector<16x1xf32>
    %cst_124 = arith.constant 3.200000e+01 : f32
    %327 = vector.broadcast %cst_124 : f32 to vector<16x1xf32>
    %328 = arith.divf %326, %327 : vector<16x1xf32>
    %329 = vector.broadcast %328 : vector<16x1xf32> to vector<16x32xf32>
    %330 = arith.subf %324, %329 : vector<16x32xf32>
    %331 = arith.mulf %330, %330 : vector<16x32xf32>
    %cst_125 = arith.constant dense<0.000000e+00> : vector<16xf32>
    %332 = vector.multi_reduction <add>, %331, %cst_125 [1] : vector<16x32xf32> to vector<16xf32>
    %333 = vector.shape_cast %332 : vector<16xf32> to vector<16x1xf32>
    %cst_126 = arith.constant 3.200000e+01 : f32
    %334 = vector.broadcast %cst_126 : f32 to vector<16x1xf32>
    %335 = arith.divf %333, %334 : vector<16x1xf32>
    %336 = vector.broadcast %328 : vector<16x1xf32> to vector<16x32xf32>
    %337 = arith.subf %324, %336 : vector<16x32xf32>
    %cst_127 = arith.constant 9.99999996E-13 : f32
    %338 = vector.broadcast %cst_127 : f32 to vector<16x1xf32>
    %339 = arith.addf %335, %338 : vector<16x1xf32>
    %340 = math.rsqrt %339 : vector<16x1xf32>
    %341 = vector.broadcast %340 : vector<16x1xf32> to vector<16x32xf32>
    %342 = arith.mulf %337, %341 : vector<16x32xf32>
    %343 = vector.broadcast %222 : vector<1x32xf32> to vector<16x32xf32>
    %344 = arith.mulf %342, %343 : vector<16x32xf32>
    %345 = vector.broadcast %224 : vector<1x32xf32> to vector<16x32xf32>
    %346 = arith.addf %344, %345 : vector<16x32xf32>
    %c2_128 = arith.constant 2 : index
    %c0_129 = arith.constant 0 : index
    %c0_130 = arith.constant 0 : index
    %347 = vector.load %arg4[%c2_128, %c0_129, %c0_130] : memref<3x64x1920xf32, #tpu.memory_space<vmem>>, vector<1x32x32xf32>
    %348 = vector.shape_cast %347 : vector<1x32x32xf32> to vector<32x32xf32>
    %c2_131 = arith.constant 2 : index
    %c0_132 = arith.constant 0 : index
    %c128_133 = arith.constant 128 : index
    %349 = vector.load %arg4[%c2_131, %c0_132, %c128_133] : memref<3x64x1920xf32, #tpu.memory_space<vmem>>, vector<1x32x256xf32>
    %350 = vector.shape_cast %349 : vector<1x32x256xf32> to vector<32x256xf32>
    %c2_134 = arith.constant 2 : index
    %c0_135 = arith.constant 0 : index
    %c256 = arith.constant 256 : index
    %351 = vector.load %arg5[%c2_134, %c0_135, %c256] : memref<3x1x2432xf32, #tpu.memory_space<vmem>>, vector<1x1x32xf32>
    %352 = vector.shape_cast %351 : vector<1x1x32xf32> to vector<1x32xf32>
    %c2_136 = arith.constant 2 : index
    %c0_137 = arith.constant 0 : index
    %c384 = arith.constant 384 : index
    %353 = vector.load %arg5[%c2_136, %c0_137, %c384] : memref<3x1x2432xf32, #tpu.memory_space<vmem>>, vector<1x1x256xf32>
    %354 = vector.shape_cast %353 : vector<1x1x256xf32> to vector<1x256xf32>
    %c2_138 = arith.constant 2 : index
    %c0_139 = arith.constant 0 : index
    %c640 = arith.constant 640 : index
    %355 = vector.load %arg5[%c2_138, %c0_139, %c640] : memref<3x1x2432xf32, #tpu.memory_space<vmem>>, vector<1x1x256xf32>
    %356 = vector.shape_cast %355 : vector<1x1x256xf32> to vector<1x256xf32>
    %c2_140 = arith.constant 2 : index
    %c0_141 = arith.constant 0 : index
    %c896 = arith.constant 896 : index
    %357 = vector.load %arg5[%c2_140, %c0_141, %c896] : memref<3x1x2432xf32, #tpu.memory_space<vmem>>, vector<1x1x1xf32>
    %358 = vector.shape_cast %357 : vector<1x1x1xf32> to vector<1x1xf32>
    %359 = vector.shape_cast %346 : vector<16x32xf32> to vector<2x8x32xf32>
    %360 = vector.extract_strided_slice %359 {offsets = [0, 0, 0], sizes = [2, 1, 32], strides = [1, 1, 1]} : vector<2x8x32xf32> to vector<2x1x32xf32>
    %361 = vector.shape_cast %360 : vector<2x1x32xf32> to vector<2x32xf32>
    %cst_142 = arith.constant dense<0.000000e+00> : vector<2x32xf32>
    %362 = tpu.matmul %361, %348, %cst_142 {dimension_numbers = #tpu.dot_dimension_numbers<[1], [0], [0], [1], [0, 0, 1, 1], [], []>} : vector<2x32xf32>, vector<32x32xf32>, vector<2x32xf32> -> vector<2x32xf32>
    %363 = vector.broadcast %352 : vector<1x32xf32> to vector<2x32xf32>
    %364 = arith.addf %362, %363 : vector<2x32xf32>
    %365 = math.tanh %364 : vector<2x32xf32>
    %cst_143 = arith.constant dense<0.000000e+00> : vector<2x256xf32>
    %366 = tpu.matmul %365, %350, %cst_143 {dimension_numbers = #tpu.dot_dimension_numbers<[1], [0], [0], [1], [0, 0, 1, 1], [], []>} : vector<2x32xf32>, vector<32x256xf32>, vector<2x256xf32> -> vector<2x256xf32>
    %367 = vector.broadcast %354 : vector<1x256xf32> to vector<2x256xf32>
    %368 = arith.addf %366, %367 : vector<2x256xf32>
    %cst_144 = arith.constant 0.000000e+00 : f32
    %369 = vector.broadcast %cst_144 : f32 to vector<2x256xf32>
    %370 = arith.maximumf %368, %369 : vector<2x256xf32>
    %371 = vector.broadcast %356 : vector<1x256xf32> to vector<2x256xf32>
    %372 = arith.mulf %370, %371 : vector<2x256xf32>
    %cst_145 = arith.constant dense<0.000000e+00> : vector<2xf32>
    %373 = vector.multi_reduction <add>, %372, %cst_145 [1] : vector<2x256xf32> to vector<2xf32>
    %374 = vector.shape_cast %373 : vector<2xf32> to vector<2x1xf32>
    %375 = vector.broadcast %358 : vector<1x1xf32> to vector<2x1xf32>
    %376 = arith.addf %374, %375 : vector<2x1xf32>
    %377 = vector.shape_cast %376 : vector<2x1xf32> to vector<2x1xf32>
    %378 = vector.broadcast %377 : vector<2x1xf32> to vector<2x128xf32>
    %c0_146 = arith.constant 0 : index
    %c0_147 = arith.constant 0 : index
    %379 = vector.load %arg6[%c0_146, %c0_147] : memref<2x128xf32, #tpu.memory_space<vmem>>, vector<2x128xf32>
    tpu.vector_store %arg6[%c0_146, %c0_147], %378 {strides = array<i32>} : memref<2x128xf32, #tpu.memory_space<vmem>>, vector<2x128xf32>,
    return
  }
  func.func @transform_0(%arg0: i32) -> (i32, i32) {
    %c0_i32 = arith.constant 0 : i32
    %c0_i32_0 = arith.constant 0 : i32
    %c0_i32_1 = arith.constant 0 : i32
    return %c0_i32, %c0_i32_0 : i32, i32
  }
  func.func @transform_1(%arg0: i32) -> (i32, i32) {
    %c0_i32 = arith.constant 0 : i32
    %c0_i32_0 = arith.constant 0 : i32
    %c0_i32_1 = arith.constant 0 : i32
    return %c0_i32, %c0_i32_0 : i32, i32
  }
  func.func @transform_2(%arg0: i32) -> (i32, i32) {
    %c0_i32 = arith.constant 0 : i32
    %c0_i32_0 = arith.constant 0 : i32
    %c0_i32_1 = arith.constant 0 : i32
    return %c0_i32, %c0_i32_0 : i32, i32
  }
  func.func @transform_3(%arg0: i32) -> (i32, i32, i32) {
    %c0_i32 = arith.constant 0 : i32
    %c0_i32_0 = arith.constant 0 : i32
    %c0_i32_1 = arith.constant 0 : i32
    %c0_i32_2 = arith.constant 0 : i32
    return %c0_i32, %c0_i32_0, %c0_i32_1 : i32, i32, i32
  }
  func.func @transform_4(%arg0: i32) -> (i32, i32, i32) {
    %c0_i32 = arith.constant 0 : i32
    %c0_i32_0 = arith.constant 0 : i32
    %c0_i32_1 = arith.constant 0 : i32
    %c0_i32_2 = arith.constant 0 : i32
    return %c0_i32, %c0_i32_0, %c0_i32_1 : i32, i32, i32
  }
  func.func @transform_5(%arg0: i32) -> (i32, i32) {
    %c0_i32 = arith.constant 0 : i32
    %c0_i32_0 = arith.constant 0 : i32
    %c0_i32_1 = arith.constant 0 : i32
    return %c0_i32, %c0_i32_0 : i32, i32
  }
}

</mosaic_0001>

<bundles_post_ra>
// kernel: bert_classifier_forward.1
= control target key start
LH: loop header
LB: loop body
LE: loop exit
PB: predicated region body
PF: predicated region fallthrough
CT: control target
= control target key end

     0   :  { %10 = vsyncpa [#allocation3], 0  ;;  %s6639_s0 = inlined_call_operand.hbm [shape: s32[2,8], index: 0, kind: input, shape index: {}]   ;;  %s6640_s1 = inlined_call_operand.hbm [shape: s32[2,8], index: 1, kind: input, shape index: {}]   ;;  %s6641_s2 = inlined_call_operand.vmem [shape: f32[136,32], index: 2, kind: input, shape index: {}]   ;;  %s6642_s3 = inlined_call_operand.hbm [shape: f32[3,64,1920], index: 3, kind: input, shape index: {}]   ;;  %s6643_s4 = inlined_call_operand.hbm [shape: f32[3,1,2432], index: 4, kind: input, shape index: {}]   ;;  %s6644_s5 = inlined_call_operand.vmem [shape: f32[2,128], index: 5, kind: output, shape index: {}]  }
   0x1   :  { %11 = vsyncpa [#allocation5], 0 }
   0x2   :  { %12 = vsyncpa [#allocation8], 0  ;;  %s6034_s18 = smov [#allocation4]   ;;  %s6035_s20 = smov [#allocation2]  }
   0x3   :  { %s29_s19 = sshll.u32 %s6034_s18, 4  ;;  %s19_s21 = sshll.u32 %s6035_s20, 4  ;;  %s30_s19 = int_to_ptr.vmem [resolvable:$true] %s29_s19  ;;  %s20_s21 = int_to_ptr.vmem [resolvable:$true] %s19_s21 }
   0x4   :  { %s5940_s24 = scalar_lea.hbm %s6640_s1, 32 }
   0x5   :  { %p5941_p0 = scmp.ne.s32.totalorder %s6640_s1, %s5940_s24  ;;  %p5944_p1 = scmp.lt.u32.totalorder %s5940_s24, %s6640_s1 }
   0x7   :  { %p5946_p2 = pnand %p5944_p1, %p5941_p0 }
   0x9   :  { %5949 = shalt.err (!%p5946_p2)
}
   0xa   :  { %s5950_s29 = scalar_lea.vmem %s30_s19, 32  ;;  %p5955_p4 = scmp.lt.s32.totalorder %s30_s19, %s30_s19 }
   0xb   :  { %p5951_p3 = scmp.ne.s32.totalorder %s30_s19, %s5950_s29  ;;  %p5956_p5 = scmp.lt.s32.totalorder %s5950_s29, %s5950_s29 }
   0xd   :  { %p5957_p6 = por %p5956_p5, %p5955_p4 }
   0xf   :  { %p5958_p7 = pnand %p5957_p6, %p5951_p3 }
  0x11   :  { %5961 = shalt.err (!%p5958_p7)
}
  0x12   :  { %32 = dma.hbm_to_vmem [thread:$0]  %s6640_s1, 32, %s30_s19, [#allocation5]  }
  0x13   :  { %s5962_s9 = scalar_lea.hbm %s6639_s0, 32 }
  0x14   :  { %p5963_p8 = scmp.ne.s32.totalorder %s6639_s0, %s5962_s9  ;;  %p5966_p9 = scmp.lt.u32.totalorder %s5962_s9, %s6639_s0 }
  0x16   :  { %p5968_p10 = pnand %p5966_p9, %p5963_p8 }
  0x18   :  { %5971 = shalt.err (!%p5968_p10)
}
  0x19   :  { %s5972_s14 = scalar_lea.vmem %s20_s21, 32  ;;  %p5977_p12 = scmp.lt.s32.totalorder %s20_s21, %s20_s21 }
  0x1a   :  { %p5973_p11 = scmp.ne.s32.totalorder %s20_s21, %s5972_s14  ;;  %p5978_p13 = scmp.lt.s32.totalorder %s5972_s14, %s5972_s14 }
  0x1c   :  { %p5979_p0 = por %p5978_p13, %p5977_p12 }
  0x1e   :  { %p5980_p1 = pnand %p5979_p0, %p5973_p11 }
  0x20   :  { %5983 = shalt.err (!%p5980_p1)
}
  0x21   :  { %22 = dma.hbm_to_vmem [thread:$0]  %s6639_s0, 32, %s20_s21, [#allocation3]  }
  0x22   :  { %s6036_s16 = smov [#allocation6]   ;;  %s5984_s20 = scalar_lea.hbm %s6642_s3, 46080 }
  0x23   :  { %s40_s17 = sshll.u32 %s6036_s16, 4  ;;  %p5985_p2 = scmp.ne.s32.totalorder %s6642_s3, %s5984_s20  ;;  %s41_s17 = int_to_ptr.vmem [resolvable:$true] %s40_s17 }
  0x24   :  { %p5988_p3 = scmp.lt.u32.totalorder %s5984_s20, %s6642_s3 }
  0x26   :  { %p5990_p4 = pnand %p5988_p3, %p5985_p2 }
  0x28   :  { %5993 = shalt.err (!%p5990_p4)
}
  0x29   :  { %s5994_s26 = scalar_lea.vmem %s41_s17, 46080  ;;  %p5999_p6 = scmp.lt.s32.totalorder %s41_s17, %s41_s17 }
  0x2a   :  { %p5995_p5 = scmp.ne.s32.totalorder %s41_s17, %s5994_s26  ;;  %p6000_p7 = scmp.lt.s32.totalorder %s5994_s26, %s5994_s26 }
  0x2c   :  { %p6001_p8 = por %p6000_p7, %p5999_p6 }
  0x2e   :  { %p6002_p9 = pnand %p6001_p8, %p5995_p5 }
  0x30   :  { %6005 = shalt.err (!%p6002_p9)
}
  0x31   :  { %s6037_s0 = smov 1920   ;;  %s6038_s21 = smov 120  }
  0x32   :  { %46 = dma.hbm_to_vmem [thread:$0]  %s6642_s3, 46080, %s41_s17, [#allocation5], %s6037_s0, %s6037_s0, %s6038_s21  }
  0x33   :  { %s6039_s29 = smov [#allocation7]   ;;  %s6006_s8 = scalar_lea.hbm %s6643_s4, 912 }
  0x34   :  { %s52_s30 = sshll.u32 %s6039_s29, 4  ;;  %p6007_p10 = scmp.ne.s32.totalorder %s6643_s4, %s6006_s8  ;;  %s53_s30 = int_to_ptr.vmem [resolvable:$true] %s52_s30 }
  0x35   :  { %p6010_p11 = scmp.lt.u32.totalorder %s6006_s8, %s6643_s4 }
  0x37   :  { %p6012_p12 = pnand %p6010_p11, %p6007_p10 }
  0x39   :  { %6015 = shalt.err (!%p6012_p12)
}
  0x3a   :  { %s6016_s13 = scalar_lea.vmem %s53_s30, 912  ;;  %s6020_s3 = scalar_lea.vmem %s53_s30, 928 }
  0x3b   :  { %p6017_p13 = scmp.ne.s32.totalorder %s53_s30, %s6016_s13  ;;  %p6021_p0 = scmp.lt.s32.totalorder %s53_s30, %s53_s30 }
  0x3c   :  { %p6022_p1 = scmp.lt.s32.totalorder %s6020_s3, %s6016_s13 }
  0x3e   :  { %p6023_p2 = por %p6022_p1, %p6021_p0 }
  0x40   :  { %p6024_p3 = pnand %p6023_p2, %p6017_p13 }
  0x42   :  { %6027 = shalt.err (!%p6024_p3)
}
  0x43   :  { %s6040_s14 = smov 304   ;;  %s6041_s1 = smov 19  }
  0x44   :  { %58 = dma.hbm_to_vmem [thread:$0]  %s6643_s4, 912, %s53_s30, [#allocation8], %s6040_s14, %s6040_s14, %s6041_s1  }
  0x45   :  { %6028 = dma.done.wait [#allocation3], 32  }
  0x46   :  { %6029 = vsyncadd [#allocation3], 4294967264 }
  0x47   :  { %6030 = dma.done.wait [#allocation5], 46112  }
  0x48   :  { %6031 = vsyncadd [#allocation5], 4294921184 }
  0x49   :  { %6032 = dma.done.wait [#allocation8], 912  }
  0x4a   :  { %6033 = vsyncadd [#allocation8], 4294966384  ;;  %v72_v0 = vlaneseq  ;;  %v71_v4 = vld [vmem:[#allocation2] sm:$0x3]  ;;  %v95_v6 = vld [vmem:[%s6641_s2 + $0x8] sm:$0xff]  ;;  %v6042_v33 = vmov 1.0  }
  0x4b   :  { %v94_v5 = vld [vmem:[%s6641_s2] sm:$0xff]  ;;  %v96_v9 = vld [vmem:[%s6641_s2 + $0x10] sm:$0xff]  ;;  %v97_v10 = vld [vmem:[%s6641_s2 + $0x18] sm:$0xff]  ;;  %vm189_vm2 = vcmask 261120   ;;  %vm6044_vm3 = vmmov 0   ;;  %vm873_vm4 = vcmask 64512  }
  0x4c   :  { %v6129_v1 = vshrl.u32 %v72_v0, 7  ;;  %v5622_v8 = vpack.c.bf16 %v95_v6, %v94_v5  ;;  %v5626_v11 = vpack.c.bf16 %v97_v10, %v96_v9  ;;  %v98_v12 = vld [vmem:[%s6641_s2 + $0x20] sm:$0xff]  ;;  %v99_v13 = vld [vmem:[%s6641_s2 + $0x28] sm:$0xff]  ;;  %v100_v16 = vld [vmem:[%s6641_s2 + $0x30] sm:$0xff]  ;;  %v73_v31 = vand.u32 127, %v72_v0  ;;  %s6047_s22 = smov 16  }
  0x4d   :  { %v5630_v15 = vpack.c.bf16 %v99_v13, %v98_v12  ;;  %v101_v17 = vld [vmem:[%s6641_s2 + $0x38] sm:$0xff]  ;;  %v102_v19 = vld [vmem:[%s6641_s2 + $0x40] sm:$0xff]  ;;  %v103_v20 = vld [vmem:[%s6641_s2 + $0x48] sm:$0xff]  ;;  %s6048_s23 = smov 24   ;;  %vm2196_vm5 = vcmask 130048   ;;  %vm2199_vm6 = vcmask 195584  }
  0x4e   :  { %v6132_v2 = vsub.s32 0, %v6129_v1  ;;  %v6135_v3 = vsub.s32 1, %v6129_v1  ;;  %5623 = vmatprep.subr.bf16.mxu0 %v5622_v8  ;;  %v5634_v18 = vpack.c.bf16 %v101_v17, %v100_v16  ;;  %v5638_v21 = vpack.c.bf16 %v103_v20, %v102_v19  ;;  %v104_v22 = vld [vmem:[%s6641_s2 + $0x50] sm:$0xff]  ;;  %v105_v23 = vld [vmem:[%s6641_s2 + $0x58] sm:$0xff]  ;;  %v106_v25 = vld [vmem:[%s6641_s2 + $0x60] sm:$0xff] }
  0x4f   :  { %5625 = vmatpush3.bf16.msra.mxu0 %v5622_v8  ;;  %v5642_v24 = vpack.c.bf16 %v105_v23, %v104_v22  ;;  %v107_v26 = vld [vmem:[%s6641_s2 + $0x68] sm:$0xff]  ;;  %v108_v28 = vld [vmem:[%s6641_s2 + $0x70] sm:$0xff]  ;;  %v109_v29 = vld [vmem:[%s6641_s2 + $0x78] sm:$0xff]  ;;  %vm2444_vm7 = vcmask 523264   ;;  %vm4894_vm8 = vcmask 1041409   ;;  %vm5069_vm9 = vcmask 1041408  }
  0x50   :  { %v77_v7 = vrot.slane %v71_v4, %v6132_v2  ;;  %v84_v14 = vrot.slane %v71_v4, %v6135_v3  ;;  %5627 = vmatprep.subr.bf16.mxu0 %v5626_v11  ;;  %v5646_v27 = vpack.c.bf16 %v107_v26, %v106_v25  ;;  %v5650_v30 = vpack.c.bf16 %v109_v29, %v108_v28  ;;  %v110_v35 = vld [vmem:[%s6641_s2 + $0x80] sm:$0xff]  ;;  %v271_v52 = vld [vmem:[#allocation6 + $0x8] sm:$0xff]  ;;  %v307_v4 = vld [vmem:[#allocation6 + $0x170] sm:$0xff]  ;;  %s6046_s2 = smov 8  }
  0x51   :  { %v283_v53 = vld [vmem:[#allocation6 + $0x80] sm:$0xff]  ;;  %v279_v54 = vld [vmem:[#allocation6 + $0x48] sm:$0xff]  ;;  %v282_v58 = vld [vmem:[#allocation6 + $0x78] sm:$0xff] }
  0x52   :  { %79 = vbcast.lane.b32.xlu0 %v77_v7, 256  ;;  %v5654_v55 = vpack.c.bf16 %v283_v53, %v271_v52  ;;  %v291_v56 = vld [vmem:[#allocation6 + $0xc0] sm:$0xff]  ;;  %v290_v62 = vld [vmem:[#allocation6 + $0xb8] sm:$0xff]  ;;  %v315_v7 = vld [vmem:[#allocation6 + $0x1b0] sm:$0xff] }
  0x53   :  { %5629 = vmatpush3.bf16.msra.mxu0 %v5626_v11  ;;  %v270_v57 = vld [vmem:[#allocation6] sm:$0xff]  ;;  %v5686_v59 = vpack.c.bf16 %v291_v56, %v279_v54  ;;  %v295_v0 = vld [vmem:[#allocation6 + $0xf8] sm:$0xff]  ;;  %v294_v8 = vld [vmem:[#allocation6 + $0xf0] sm:$0xff] }
  0x54   :  { %5631 = vmatprep.subr.bf16.mxu0 %v5630_v15  ;;  %v5656_v60 = vpack.c.bf16 %v282_v58, %v270_v57  ;;  %v278_v61 = vld [vmem:[#allocation6 + $0x40] sm:$0xff]  ;;  %5655 = vmatprep.subr.bf16.mxu1 %v5654_v55  ;;  %v303_v5 = vld [vmem:[#allocation6 + $0x138] sm:$0xff]  ;;  %v5658_v6 = vpack.c.bf16 %v307_v4, %v295_v0  ;;  %v306_v9 = vld [vmem:[#allocation6 + $0x168] sm:$0xff] }
  0x55   :  { %v5688_v63 = vpack.c.bf16 %v290_v62, %v278_v61  ;;  %v5690_v10 = vpack.c.bf16 %v315_v7, %v303_v5  ;;  %v5660_v11 = vpack.c.bf16 %v306_v9, %v294_v8  ;;  %v302_v12 = vld [vmem:[#allocation6 + $0x130] sm:$0xff]  ;;  %v314_v13 = vld [vmem:[#allocation6 + $0x1a8] sm:$0xff]  ;;  %v5099_v26 = vld [vmem:[#allocation7 + $0x26] ss:$0 sm:$0xff] }
  0x56   :  { %86 = vbcast.lane.b32.xlu0 %v84_v14, 256  ;;  %5657 = vmatpush1.bf16.msra.mxu1 %v5656_v60  ;;  %v5692_v14 = vpack.c.bf16 %v314_v13, %v302_v12  ;;  %v285_v16 = vld [vmem:[#allocation6 + $0x90] sm:$0xff]  ;;  %v284_v29 = vld [vmem:[#allocation6 + $0x88] sm:$0xff]  ;;  %v277_v55 = vld [vmem:[#allocation6 + $0x38] sm:$0xff] }
  0x57   :  { %5633 = vmatpush3.bf16.msra.mxu0 %v5630_v15  ;;  %5659 = vmatprep.subr.bf16.mxu1 %v5658_v6  ;;  %v273_v15 = vld [vmem:[#allocation6 + $0x18] sm:$0xff]  ;;  %v272_v28 = vld [vmem:[#allocation6 + $0x10] sm:$0xff]  ;;  %v310_v54 = vld [vmem:[#allocation6 + $0x188] sm:$0xff] }
  0x58   :  { %5635 = vmatprep.subr.bf16.mxu0 %v5634_v18  ;;  %v5662_v17 = vpack.c.bf16 %v285_v16, %v273_v15  ;;  %v298_v53 = vld [vmem:[#allocation6 + $0x110] sm:$0xff]  ;;  %v288_v60 = vld [vmem:[#allocation6 + $0xa8] sm:$0xff]  ;;  %v313_v62 = vld [vmem:[#allocation6 + $0x1a0] sm:$0xff] }
  0x59   :  { %v289_v56 = vld [vmem:[#allocation6 + $0xb0] sm:$0xff]  ;;  %v5676_v57 = vpack.c.bf16 %v310_v54, %v298_v53  ;;  %v301_v61 = vld [vmem:[#allocation6 + $0x128] sm:$0xff]  ;;  %v300_v4 = vld [vmem:[#allocation6 + $0x120] sm:$0xff] }
  0x5a   :  { %5661 = vmatpush1.bf16.msra.mxu1 %v5660_v11  ;;  %v5678_v58 = vpack.c.bf16 %v289_v56, %v277_v55  ;;  %v5682_v0 = vpack.c.bf16 %v313_v62, %v301_v61  ;;  %v312_v5 = vld [vmem:[#allocation6 + $0x198] sm:$0xff]  ;;  %v293_v7 = vld [vmem:[#allocation6 + $0xd0] sm:$0xff]  ;;  %v292_v11 = vld [vmem:[#allocation6 + $0xc8] sm:$0xff]  ;;  %v375_v56 = vsub.s32 7, %v6129_v1 }
  0x5b   :  { %5637 = vmatpush3.bf16.msra.mxu0 %v5634_v18  ;;  %v6043_v18 = vmov 0.0   ;;  %5663 = vmatprep.subr.bf16.mxu1 %v5662_v17  ;;  %v281_v6 = vld [vmem:[#allocation6 + $0x58] sm:$0xff]  ;;  %v5684_v8 = vpack.c.bf16 %v312_v5, %v300_v4  ;;  %v305_v12 = vld [vmem:[#allocation6 + $0x148] sm:$0xff]  ;;  %v317_v13 = vld [vmem:[#allocation6 + $0x1c0] sm:$0xff] }
  0x5c   :  { %5639 = vmatprep.subr.bf16.mxu0 %v5638_v21  ;;  %475 = vmatprep.mubr.f32.mxu1 %v6043_v18  ;;  %v5694_v9 = vpack.c.bf16 %v293_v7, %v281_v6  ;;  %v5698_v15 = vpack.c.bf16 %v317_v13, %v305_v12  ;;  %v304_v16 = vld [vmem:[#allocation6 + $0x140] sm:$0xff]  ;;  %v316_v17 = vld [vmem:[#allocation6 + $0x1b8] sm:$0xff] }
  0x5f   :  { %5641 = vmatpush3.bf16.msra.mxu0 %v5638_v21 }
  0x60   :  { %5643 = vmatprep.subr.bf16.mxu0 %v5642_v24 }
  0x63   :  { %5645 = vmatpush3.bf16.msra.mxu0 %v5642_v24 }
  0x64   :  { %5647 = vmatprep.subr.bf16.mxu0 %v5646_v27 }
  0x67   :  { %5649 = vmatpush3.bf16.msra.mxu0 %v5646_v27 }
  0x68   :  { %5651 = vmatprep.subr.bf16.mxu0 %v5650_v30 }
  0x6b   :  { %5653 = vmatpush3.bf16.msra.mxu0 %v5650_v30  ;;  %v5100_v30 = vld [vmem:[#allocation7 + $0x27] ss:$0 sm:$0xff] }
  0x6c   :  { %5687 = vmatprep.subr.bf16.mxu0 %v5686_v59  ;;  %v276_v59 = vld [vmem:[#allocation6 + $0x30] sm:$0xff] }
  0xc4   :  { %v80_v32 = vpop.permute.xlu0 %79 }
  0xc5   :  { %vm88_vm0 = vcmp.eq.s32.totalorder %v73_v31, %v80_v32  ;;  %v309_v32 = vld [vmem:[#allocation6 + $0x180] sm:$0xff] }
  0xc6   :  { %5366 = vmatprep.mubr.msk.f32.mxu0 %vm88_vm0, %v6042_v33 }
  0xc8   :  { %v87_v34 = vpop.permute.xlu0 %86 }
  0xc9   :  { %vm89_vm1 = vcmp.eq.s32.totalorder %v73_v31, %v87_v34  ;;  %v297_v31 = vld [vmem:[#allocation6 + $0x108] sm:$0xff] }
  0xca   :  { %5367 = vmatmul.mubr.msk.f32.vlgmr.msra.gmra.mrb[0].mxu0 %vm89_vm1, %v6042_v33 }
  0xcb   :  { %5689 = vmatpush1.bf16.msra.mxu0 %v5688_v63  ;;  %783 = vmatprep.mubr.f32.mxu0 %v6043_v18  ;;  %v5680_v63 = vpack.c.bf16 %v288_v60, %v276_v59  ;;  %v6281_v60 = vsub.s32 3, %v6129_v1 }
  0xcc   :  { %5691 = vmatprep.subr.bf16.mxu0 %v5690_v10  ;;  %v280_v10 = vld [vmem:[#allocation6 + $0x50] sm:$0xff] }
  0xcf   :  { %5693 = vmatpush1.bf16.msra.mxu0 %v5692_v14  ;;  %v5696_v14 = vpack.c.bf16 %v292_v11, %v280_v10 }
  0xd0   :  { %5369 = vmatprep.subr.mxu0 %v6043_v18 }
 0x19d   :  { %v5368_v36 = vpop.f32.mrb[0].mxu0 }
 0x19e   :  { %v177_v37 = vpop.f32.mrb[1].mxu0  ;;  %v183_v39 = vadd.f32 %v5368_v36, %v110_v35 }
 0x19f   :  { %v178_v38 = vadd.f32 %v177_v37, %v110_v35  ;;  %v5664_v35 = vpack.c.bf16 %v284_v29, %v272_v28 }
 0x1a0   :  { %v193_v41 = vsel %vm189_vm2, %v183_v39, 0.0 }
 0x1a1   :  { %v190_v40 = vsel %vm189_vm2, %v178_v38, 0.0 }
 0x1a2   :  { %191 = vadd.xlane.f32.xlu1 %v190_v40  ;;  %v308_v40 = vld [vmem:[#allocation6 + $0x178] sm:$0xff] }
 0x1a6   :  { %194 = vadd.xlane.f32.xlu1 %v193_v41  ;;  %v275_v41 = vld [vmem:[#allocation6 + $0x28] sm:$0xff] }
 0x22f   :  { %v192_v42 = vpop.xlane.xlu1 %191 }
 0x230   :  { %v197_v43 = vmul.f32 0.03125, %v192_v42  ;;  %v287_v42 = vld [vmem:[#allocation6 + $0xa0] sm:$0xff] }
 0x232   :  { %v199_v44 = vsub.f32 %v178_v38, %v197_v43  ;;  %v5666_v38 = vpack.c.bf16 %v309_v32, %v297_v31 }
 0x233   :  { %v195_v45 = vpop.xlane.xlu1 %194 }
 0x234   :  { %v198_v46 = vmul.f32 0.03125, %v195_v45  ;;  %v201_v47 = vmul.f32 %v199_v44, %v199_v44 }
 0x236   :  { %v6192_v48 = vsub.f32 %v183_v39, %v198_v46  ;;  %v203_v49 = vsel %vm189_vm2, %v201_v47, 0.0  ;;  %v296_v39 = vld [vmem:[#allocation6 + $0x100] sm:$0xff]  ;;  %v5670_v46 = vpack.c.bf16 %v287_v42, %v275_v41 }
 0x237   :  { %204 = vadd.xlane.f32.xlu0 %v203_v49  ;;  %v274_v47 = vld [vmem:[#allocation6 + $0x20] sm:$0xff]  ;;  %v299_v49 = vld [vmem:[#allocation6 + $0x118] sm:$0xff] }
 0x238   :  { %v202_v50 = vmul.f32 %v6192_v48, %v6192_v48 }
 0x23a   :  { %v206_v51 = vsel %vm189_vm2, %v202_v50, 0.0  ;;  %v311_v50 = vld [vmem:[#allocation6 + $0x190] sm:$0xff] }
 0x23b   :  { %207 = vadd.xlane.f32.xlu1 %v206_v51  ;;  %v5674_v52 = vpack.c.bf16 %v311_v50, %v299_v49  ;;  %v6270_v50 = vsub.s32 2, %v6129_v1 }
 0x2c4   :  { %v205_v19 = vpop.xlane.xlu0 %204 }
 0x2c5   :  { %v209_v20 = vmul.f32 0.03125, %v205_v19  ;;  %v5700_v19 = vpack.c.bf16 %v316_v17, %v304_v16 }
 0x2c7   :  { %v211_v21 = vadd.f32 1e-12, %v209_v20  ;;  %v6245_v20 = vld [vmem:[#allocation7 + $0x8] sm:$0xf] }
 0x2c8   :  { %v208_v22 = vpop.xlane.xlu1 %207  ;;  %v380_v5 = vrot.slane %v6245_v20, %v6132_v2  ;;  %v388_v13 = vrot.slane %v6245_v20, %v6270_v50 }
 0x2c9   :  { %5846 = vrsqrt.f32 %v211_v21  ;;  %v210_v23 = vmul.f32 0.03125, %v208_v22  ;;  %v384_v21 = vrot.slane %v6245_v20, %v6135_v3 }
 0x2cb   :  { %v212_v24 = vadd.f32 1e-12, %v210_v23 }
 0x2cd   :  { %5848 = vrsqrt.f32 %v212_v24 }
 0x2d3   :  { %v5847_v25 = vpop.eup %5846 }
 0x2d4   :  { %v215_v27 = vmul.f32 %v5847_v25, %v199_v44  ;;  %v5668_v44 = vpack.c.bf16 %v308_v40, %v296_v39  ;;  %v367_v40 = vsub.s32 5, %v6129_v1 }
 0x2d6   :  { %v223_v33 = vmul.f32 %v5099_v26, %v215_v27 }
 0x2d7   :  { %v5849_v34 = vpop.eup %5848 }
 0x2d8   :  { %v6201_v36 = vadd.f32 %v5100_v30, %v223_v33  ;;  %v216_v37 = vmul.f32 %v5849_v34, %v6192_v48  ;;  %v286_v48 = vld [vmem:[#allocation6 + $0x98] sm:$0xff]  ;;  %v363_v34 = vsub.s32 4, %v6129_v1 }
 0x2d9   :  { %v5672_v51 = vpack.c.bf16 %v286_v48, %v274_v47  ;;  %v371_v47 = vsub.s32 6, %v6129_v1 }
 0x2da   :  { %v224_v43 = vmul.f32 %v5099_v26, %v216_v37  ;;  %5101 = vmatmul.mubr.msk.f32.vlgmr.msra.gmra.mrb[0].mxu1 %vm189_vm2, %v6201_v36  ;;  %5109 = vmatmul.mubr.msk.f32.vlgmr.msra.gmra.mrb[2].mxu0 %vm189_vm2, %v6201_v36 }
 0x2db   :  { %5665 = vmatpush1.bf16.msra.mxu1 %v5664_v35  ;;  %481 = vmatprep.mubr.f32.mxu1 %v6043_v18  ;;  %v318_v35 = vld [vmem:[#allocation7] sm:$0xff] }
 0x2dc   :  { %v6209_v45 = vadd.f32 %v5100_v30, %v224_v43  ;;  %789 = vmatprep.mubr.f32.mxu0 %v6043_v18  ;;  %5667 = vmatprep.subr.bf16.mxu1 %v5666_v38  ;;  %v364_v39 = vrot.slane %v318_v35, %v363_v34  ;;  %v348_v41 = vrot.slane %v318_v35, %v6132_v2 }
 0x2dd   :  { %v352_v49 = vrot.slane %v318_v35, %v6135_v3  ;;  %v372_v55 = vrot.slane %v318_v35, %v371_v47  ;;  %v356_v59 = vrot.slane %v318_v35, %v6270_v50 }
 0x2de   :  { %5102 = vmatmul.mubr.msk.f32.gmra.mrb[2].mxu1 %vm189_vm2, %v6209_v45  ;;  %5110 = vmatmul.mubr.msk.f32.gmra.mrb[4].mxu0 %vm189_vm2, %v6209_v45 }
 0x2df   :  { %5669 = vmatpush1.bf16.msra.mxu1 %v5668_v44  ;;  %552 = vmatprep.mubr.f32.mxu1 %v6043_v18  ;;  %v368_v44 = vrot.slane %v318_v35, %v367_v40 }
 0x2e0   :  { %5671 = vmatprep.subr.bf16.mxu1 %v5670_v46  ;;  %5371 = vmatprep.mubr.msk.f32.mxu0 %vm6044_vm3, %v6043_v18 }
 0x2e2   :  { %5103 = vmatmul.mubr.msk.f32.vlgmr.msra.gmra.mrb[4].mxu1 %vm189_vm2, %v6201_v36 }
 0x2e3   :  { %5673 = vmatpush1.bf16.msra.mxu1 %v5672_v51  ;;  %558 = vmatprep.mubr.f32.mxu1 %v6043_v18 }
 0x2e4   :  { %5675 = vmatprep.subr.bf16.mxu1 %v5674_v52 }
 0x2e6   :  { %5104 = vmatmul.mubr.msk.f32.gmra.mrb[6].mxu1 %vm189_vm2, %v6209_v45 }
 0x2e7   :  { %5677 = vmatpush1.bf16.msra.mxu1 %v5676_v57  ;;  %629 = vmatprep.mubr.f32.mxu1 %v6043_v18 }
 0x2e8   :  { %5679 = vmatprep.subr.bf16.mxu1 %v5678_v58 }
 0x2ea   :  { %5105 = vmatmul.mubr.msk.f32.vlgmr.msra.gmra.mrb[8].mxu1 %vm189_vm2, %v6201_v36 }
 0x2eb   :  { %5681 = vmatpush1.bf16.msra.mxu1 %v5680_v63  ;;  %635 = vmatprep.mubr.f32.mxu1 %v6043_v18 }
 0x2ec   :  { %5683 = vmatprep.subr.bf16.mxu1 %v5682_v0  ;;  %v376_v0 = vrot.slane %v318_v35, %v375_v56 }
 0x2ee   :  { %5106 = vmatmul.mubr.msk.f32.gmra.mrb[10].mxu1 %vm189_vm2, %v6209_v45 }
 0x2ef   :  { %5685 = vmatpush1.bf16.msra.mxu1 %v5684_v8  ;;  %706 = vmatprep.mubr.f32.mxu1 %v6043_v18  ;;  %v360_v8 = vrot.slane %v318_v35, %v6281_v60  ;;  %v6045_v35 = vmov 1966171168  }
 0x2f0   :  { %5695 = vmatprep.subr.bf16.mxu1 %v5694_v9 }
 0x2f2   :  { %5107 = vmatmul.mubr.msk.f32.vlgmr.msra.gmra.mrb[12].mxu1 %vm189_vm2, %v6201_v36 }
 0x2f3   :  { %5697 = vmatpush1.bf16.msra.mxu1 %v5696_v14  ;;  %712 = vmatprep.mubr.f32.mxu1 %v6043_v18  ;;  %v392_v14 = vrot.slane %v6245_v20, %v6281_v60 }
 0x2f4   :  { %5699 = vmatprep.subr.bf16.mxu1 %v5698_v15 }
 0x2f6   :  { %5108 = vmatmul.mubr.msk.f32.gmra.mrb[14].mxu1 %vm189_vm2, %v6209_v45 }
 0x2f7   :  { %5701 = vmatpush1.bf16.msra.mxu1 %v5700_v19  ;;  %860 = vmatprep.mubr.f32.mxu1 %v6043_v18 }
 0x2f8   :  { %5374 = vmatprep.subr.mxu1 %v6043_v18 }
 0x2fa   :  { %5111 = vmatmul.mubr.msk.f32.vlgmr.msra.gmra.mrb[16].mxu1 %vm189_vm2, %v6201_v36 }
 0x2fb   :  { %866 = vmatprep.mubr.f32.mxu1 %v6043_v18 }
 0x2fe   :  { %5112 = vmatmul.mubr.msk.f32.gmra.mrb[18].mxu1 %vm189_vm2, %v6209_v45 }
 0x2ff   :  { %5376 = vmatprep.mubr.msk.f32.mxu1 %vm6044_vm3, %v6043_v18 }
 0x3ad   :  { %v477_v22 = vpop.f32.mrb[0].mxu1  ;;  %v6249_v23 = vpop.f32.mrb[2].mxu0 }
 0x3ae   :  { %v479_v24 = vpop.f32.mrb[1].mxu1  ;;  %v787_v25 = vpop.f32.mrb[3].mxu0  ;;  %v478_v48 = vadd.f32 %v477_v22, %v348_v41  ;;  %v786_v19 = vadd.f32 %v6249_v23, %v380_v5 }
 0x3af   :  { %v6251_v26 = vadd.f32 %v787_v25, %v384_v21  ;;  %v480_v57 = vadd.f32 %v479_v24, %v352_v49 }
 0x3b1   :  { %v483_v27 = vpop.f32.mrb[2].mxu1  ;;  %v6253_v28 = vpop.f32.mrb[4].mxu0 }
 0x3b2   :  { %v485_v29 = vpop.f32.mrb[3].mxu1  ;;  %v793_v30 = vpop.f32.mrb[5].mxu0  ;;  %v484_v58 = vadd.f32 %v483_v27, %v348_v41  ;;  %v792_v27 = vadd.f32 %v6253_v28, %v380_v5 }
 0x3b3   :  { %v6255_v31 = vadd.f32 %v793_v30, %v384_v21  ;;  %v486_v6 = vadd.f32 %v485_v29, %v352_v49 }
 0x3b5   :  { %v554_v32 = vpop.f32.mrb[4].mxu1 }
 0x3b6   :  { %v556_v33 = vpop.f32.mrb[5].mxu1  ;;  %v555_v7 = vadd.f32 %v554_v32, %v356_v59 }
 0x3b7   :  { %v557_v15 = vadd.f32 %v556_v33, %v360_v8  ;;  %v233_v33 = vld [vmem:[#allocation4] sm:$0x3] }
 0x3b8   :  { %v234_v28 = vcvt.s32.f32 %v233_v33 }
 0x3b9   :  { %v560_v37 = vpop.f32.mrb[6].mxu1 }
 0x3ba   :  { %v6258_v38 = vpop.f32.mrb[7].mxu1  ;;  %v561_v16 = vadd.f32 %v560_v37, %v356_v59  ;;  %v239_v37 = vunpack.c.l.s4 %v6045_v35 }
 0x3bb   :  { %v563_v25 = vadd.f32 %v6258_v38, %v360_v8  ;;  %v235_v38 = vsub.f32 1.0, %v234_v28 }
 0x3bd   :  { %v631_v42 = vpop.f32.mrb[8].mxu1  ;;  %v236_v41 = vmul.f32 -1e+09, %v235_v38 }
 0x3be   :  { %v632_v43 = vadd.f32 %v631_v42, %v364_v39  ;;  %v633_v46 = vpop.f32.mrb[9].mxu1 }
 0x3bf   :  { %v634_v52 = vadd.f32 %v633_v46, %v368_v44 }
 0x3c0   :  { %5370 = vmatpush3.xpose.msk.msra.mxu0 %vm873_vm4, %v632_v43 }
 0x3c1   :  { %v637_v51 = vpop.f32.mrb[10].mxu1  ;;  %5379 = vmatprep.subr.mxu0 %v6043_v18 }
 0x3c2   :  { %v638_v53 = vadd.f32 %v637_v51, %v364_v39  ;;  %v639_v54 = vpop.f32.mrb[11].mxu1  ;;  %v240_v39 = vunpack.c.0.s8 %v239_v37 }
 0x3c3   :  { %5372 = vmatmul.mubr.msk.f32.vlgmr.msra.gmra.mrb[6].mxu0 %vm873_vm4, %v478_v48  ;;  %v640_v62 = vadd.f32 %v639_v54, %v368_v44 }
 0x3c4   :  { %5375 = vmatpush3.xpose.msk.msra.mxu1 %vm873_vm4, %v638_v53  ;;  %5380 = vmatpush3.xpose.msk.msra.mxu0 %vm873_vm4, %v634_v52  ;;  %v243_v42 = vsub.s32 %v240_v39, %v6129_v1 }
 0x3c5   :  { %v708_v61 = vpop.f32.mrb[12].mxu1  ;;  %5381 = vmatprep.mubr.msk.f32.mxu0 %vm6044_vm3, %v6043_v18  ;;  %5384 = vmatprep.subr.mxu1 %v6043_v18 }
 0x3c6   :  { %v709_v63 = vadd.f32 %v708_v61, %v372_v55  ;;  %v710_v4 = vpop.f32.mrb[13].mxu1  ;;  %5389 = vmatprep.subr.mxu0 %v6043_v18  ;;  %v244_v43 = vrot.slane %v236_v41, %v243_v42 }
 0x3c7   :  { %5377 = vmatmul.mubr.msk.f32.vlgmr.msra.gmra.mrb[20].mxu1 %vm873_vm4, %v484_v58  ;;  %5382 = vmatmul.mubr.msk.f32.vlgmr.msra.gmra.mrb[8].mxu0 %vm873_vm4, %v480_v57  ;;  %v711_v10 = vadd.f32 %v710_v4, %v376_v0 }
 0x3c8   :  { %5385 = vmatpush3.xpose.msk.msra.mxu1 %vm873_vm4, %v640_v62  ;;  %5390 = vmatpush3.xpose.msk.msra.mxu0 %vm873_vm4, %v709_v63  ;;  %v252_v44 = vrot.slane %v244_v43, %v243_v42  ;;  %v245_v46 = vcombine.high %v244_v43, %v244_v43 }
 0x3c9   :  { %v714_v9 = vpop.f32.mrb[14].mxu1  ;;  %5386 = vmatprep.mubr.msk.f32.mxu1 %vm6044_vm3, %v6043_v18  ;;  %5391 = vmatprep.mubr.msk.f32.mxu0 %vm6044_vm3, %v6043_v18 }
 0x3ca   :  { %v715_v11 = vadd.f32 %v714_v9, %v372_v55  ;;  %v716_v12 = vpop.f32.mrb[15].mxu1  ;;  %5394 = vmatprep.subr.mxu1 %v6043_v18  ;;  %5399 = vmatprep.subr.mxu0 %v6043_v18  ;;  %v6342_v48 = vrot.slane %v252_v44, %v6132_v2  ;;  %v259_v49 = vrot.slane %v245_v46, %v243_v42 }
 0x3cb   :  { %5387 = vmatmul.mubr.msk.f32.vlgmr.msra.gmra.mrb[22].mxu1 %vm873_vm4, %v486_v6  ;;  %5392 = vmatmul.mubr.msk.f32.vlgmr.msra.gmra.mrb[10].mxu0 %vm873_vm4, %v555_v7  ;;  %v717_v21 = vadd.f32 %v716_v12, %v376_v0 }
 0x3cc   :  { %5395 = vmatpush3.xpose.msk.msra.mxu1 %vm873_vm4, %v715_v11  ;;  %5400 = vmatpush3.xpose.msk.msra.mxu0 %vm873_vm4, %v711_v10  ;;  %v6346_v55 = vrot.slane %v259_v49, %v6132_v2 }
 0x3cd   :  { %v862_v17 = vpop.f32.mrb[16].mxu1  ;;  %5396 = vmatprep.mubr.msk.f32.mxu1 %vm6044_vm3, %v6043_v18  ;;  %5401 = vmatprep.mubr.msk.f32.mxu0 %vm6044_vm3, %v6043_v18 }
 0x3ce   :  { %v6315_v22 = vadd.f32 %v862_v17, %v388_v13  ;;  %v864_v24 = vpop.f32.mrb[17].mxu1  ;;  %5404 = vmatprep.subr.mxu1 %v6043_v18  ;;  %5409 = vmatprep.subr.mxu0 %v6043_v18 }
 0x3cf   :  { %v6319_v20 = vadd.f32 %v864_v24, %v392_v14  ;;  %5397 = vmatmul.mubr.msk.f32.vlgmr.msra.gmra.mrb[24].mxu1 %vm873_vm4, %v561_v16  ;;  %5402 = vmatmul.mubr.msk.f32.vlgmr.msra.gmra.mrb[12].mxu0 %vm873_vm4, %v557_v15 }
 0x3d0   :  { %5405 = vmatpush3.xpose.msk.msra.mxu1 %vm873_vm4, %v717_v21  ;;  %5410 = vmatpush3.msra.mxu0 %v786_v19 }
 0x3d1   :  { %v868_v23 = vpop.f32.mrb[18].mxu1  ;;  %5406 = vmatprep.mubr.msk.f32.mxu1 %vm6044_vm3, %v6043_v18  ;;  %5414 = vmatprep.subr.mxu1 %v6043_v18 }
 0x3d2   :  { %v6329_v29 = vadd.f32 %v868_v23, %v388_v13  ;;  %v870_v30 = vpop.f32.mrb[19].mxu1  ;;  %5411 = vmatprep.mubr.msk.f32.mxu0 %vm6044_vm3, %v6043_v18  ;;  %5419 = vmatprep.subr.mxu0 %v6043_v18 }
 0x3d3   :  { %v6334_v32 = vadd.f32 %v870_v30, %v392_v14  ;;  %5407 = vmatmul.mubr.msk.f32.vlgmr.msra.gmra.mrb[26].mxu1 %vm873_vm4, %v563_v25 }
 0x3d4   :  { %5415 = vmatpush3.msra.mxu1 %v792_v27  ;;  %5416 = vmatprep.mubr.msk.f32.mxu1 %vm6044_vm3, %v6043_v18 }
 0x3d5   :  { %5424 = vmatprep.subr.mxu1 %v6043_v18 }
 0x496   :  { %v946_v51 = vpop.f32.mrb[6].mxu0 }
 0x497   :  { %v1482_v52 = vmul.f32 0.35355338, %v946_v51  ;;  %v5373_v53 = vpop.f32.mrb[7].mxu0 }
 0x499   :  { %v1490_v54 = vadd.f32 %v1482_v52, %v6342_v48 }
 0x49a   :  { %v1022_v57 = vpop.f32.mrb[20].mxu1  ;;  %v1098_v58 = vpop.f32.mrb[8].mxu0 }
 0x49b   :  { %v1483_v59 = vmul.f32 0.35355338, %v1022_v57  ;;  %v5378_v61 = vpop.f32.mrb[21].mxu1  ;;  %v5383_v62 = vpop.f32.mrb[9].mxu0  ;;  %v1484_v63 = vmul.f32 0.35355338, %v1098_v58 }
 0x49c   :  { %v1498_v0 = vsel %vm873_vm4, %v1490_v54, -inf }
 0x49d   :  { %1499 = vmax.xlane.f32.xlu1 %v1498_v0  ;;  %v1491_v4 = vadd.f32 %v1483_v59, %v6346_v55  ;;  %v1492_v11 = vadd.f32 %v1484_v63, %v6342_v48 }
 0x49e   :  { %v1174_v5 = vpop.f32.mrb[22].mxu1  ;;  %v1250_v6 = vpop.f32.mrb[10].mxu0 }
 0x49f   :  { %v5388_v7 = vpop.f32.mrb[23].mxu1  ;;  %v5393_v8 = vpop.f32.mrb[11].mxu0  ;;  %v1485_v9 = vmul.f32 0.35355338, %v1174_v5  ;;  %v1501_v10 = vsel %vm873_vm4, %v1491_v4, -inf  ;;  %v1504_v17 = vsel %vm873_vm4, %v1492_v11, -inf }
 0x4a0   :  { %v1486_v16 = vmul.f32 0.35355338, %v1250_v6 }
 0x4a1   :  { %1502 = vmax.xlane.f32.xlu1 %v1501_v10  ;;  %v1493_v19 = vadd.f32 %v1485_v9, %v6346_v55 }
 0x4a2   :  { %v1326_v12 = vpop.f32.mrb[24].mxu1  ;;  %v1402_v13 = vpop.f32.mrb[12].mxu0  ;;  %v1494_v30 = vadd.f32 %v1486_v16, %v6342_v48 }
 0x4a3   :  { %v5398_v14 = vpop.f32.mrb[25].mxu1  ;;  %v5403_v15 = vpop.f32.mrb[13].mxu0  ;;  %v1487_v23 = vmul.f32 0.35355338, %v1326_v12  ;;  %v1507_v27 = vsel %vm873_vm4, %v1493_v19, -inf }
 0x4a4   :  { %v1488_v35 = vmul.f32 0.35355338, %v1402_v13  ;;  %v1510_v37 = vsel %vm873_vm4, %v1494_v30, -inf }
 0x4a5   :  { %1505 = vmax.xlane.f32.xlu1 %v1504_v17  ;;  %v1495_v38 = vadd.f32 %v1487_v23, %v6346_v55 }
 0x4a6   :  { %v1478_v21 = vpop.f32.mrb[26].mxu1  ;;  %v1496_v41 = vadd.f32 %v1488_v35, %v6342_v48 }
 0x4a7   :  { %v1489_v24 = vmul.f32 0.35355338, %v1478_v21  ;;  %v5408_v25 = vpop.f32.mrb[27].mxu1  ;;  %v1513_v39 = vsel %vm873_vm4, %v1495_v38, -inf }
 0x4a8   :  { %v1516_v42 = vsel %vm873_vm4, %v1496_v41, -inf }
 0x4a9   :  { %1508 = vmax.xlane.f32.xlu1 %v1507_v27  ;;  %v1497_v33 = vadd.f32 %v1489_v24, %v6346_v55 }
 0x4ab   :  { %v1519_v28 = vsel %vm873_vm4, %v1497_v33, -inf }
 0x4ac   :  { %1520 = vmax.xlane.f32.xlu0 %v1519_v28 }
 0x4ad   :  { %1511 = vmax.xlane.f32.xlu1 %v1510_v37 }
 0x4b1   :  { %1514 = vmax.xlane.f32.xlu1 %v1513_v39 }
 0x4b5   :  { %1517 = vmax.xlane.f32.xlu1 %v1516_v42 }
 0x52a   :  { %v1500_v43 = vpop.xlane.xlu1 %1499 }
 0x52b   :  { %v1522_v44 = vsub.f32 %v1490_v54, %v1500_v43 }
 0x52d   :  { %v1530_v46 = vmul.f32 1.442695, %v1522_v44 }
 0x52e   :  { %v1503_v49 = vpop.xlane.xlu1 %1502 }
 0x52f   :  { %5850 = vpow2.f32 %v1530_v46  ;;  %v1523_v51 = vsub.f32 %v1491_v4, %v1503_v49 }
 0x531   :  { %v1532_v52 = vmul.f32 1.442695, %v1523_v51 }
 0x532   :  { %v1506_v53 = vpop.xlane.xlu1 %1505 }
 0x533   :  { %5852 = vpow2.f32 %v1532_v52  ;;  %v1524_v57 = vsub.f32 %v1492_v11, %v1506_v53 }
 0x535   :  { %v1534_v58 = vmul.f32 1.442695, %v1524_v57 }
 0x536   :  { %v1509_v59 = vpop.xlane.xlu1 %1508 }
 0x537   :  { %5854 = vpow2.f32 %v1534_v58  ;;  %v1525_v61 = vsub.f32 %v1493_v19, %v1509_v59 }
 0x539   :  { %v5851_v62 = vpop.eup %5850  ;;  %v1536_v63 = vmul.f32 1.442695, %v1525_v61  ;;  %v1521_v5 = vpop.xlane.xlu0 %1520 }
 0x53a   :  { %v1512_v0 = vpop.xlane.xlu1 %1511  ;;  %v1546_v6 = vsel %vm873_vm4, %v5851_v62, 0.0  ;;  %v1529_v4 = vsub.f32 %v1497_v33, %v1521_v5 }
 0x53b   :  { %5856 = vpow2.f32 %v1536_v63  ;;  %v1526_v54 = vsub.f32 %v1494_v30, %v1512_v0  ;;  %1547 = vadd.xlane.f32.xlu1 %v1546_v6 }
 0x53c   :  { %v1544_v13 = vmul.f32 1.442695, %v1529_v4  ;;  %v321_v4 = vld [vmem:[#allocation6 + $0xd8] sm:$0xff] }
 0x53d   :  { %v5853_v7 = vpop.eup %5852  ;;  %v1538_v8 = vmul.f32 1.442695, %v1526_v54 }
 0x53e   :  { %v1515_v9 = vpop.xlane.xlu1 %1514  ;;  %v1549_v10 = vsel %vm873_vm4, %v5853_v7, 0.0 }
 0x53f   :  { %5858 = vpow2.f32 %v1538_v8  ;;  %v1527_v11 = vsub.f32 %v1495_v38, %v1515_v9  ;;  %1550 = vadd.xlane.f32.xlu0 %v1549_v10  ;;  %v320_v8 = vld [vmem:[#allocation6 + $0x60] sm:$0xff] }
 0x540   :  { %v5702_v10 = vpack.c.bf16 %v321_v4, %v320_v8  ;;  %v327_v4 = vld [vmem:[#allocation6 + $0x158] sm:$0xff] }
 0x541   :  { %v5855_v12 = vpop.eup %5854  ;;  %v1540_v14 = vmul.f32 1.442695, %v1527_v11 }
 0x542   :  { %v1518_v15 = vpop.xlane.xlu1 %1517  ;;  %v1552_v16 = vsel %vm873_vm4, %v5855_v12, 0.0 }
 0x543   :  { %5860 = vpow2.f32 %v1540_v14  ;;  %v1528_v17 = vsub.f32 %v1496_v41, %v1518_v15  ;;  %1553 = vadd.xlane.f32.xlu1 %v1552_v16 }
 0x544   :  { %5862 = vpow2.f32 %v1544_v13 }
 0x545   :  { %v5857_v19 = vpop.eup %5856  ;;  %v1542_v21 = vmul.f32 1.442695, %v1528_v17 }
 0x546   :  { %v1555_v24 = vsel %vm873_vm4, %v5857_v19, 0.0 }
 0x547   :  { %5864 = vpow2.f32 %v1542_v21  ;;  %1556 = vadd.xlane.f32.xlu0 %v1555_v24 }
 0x549   :  { %v5859_v25 = vpop.eup %5858 }
 0x54a   :  { %v1558_v23 = vsel %vm873_vm4, %v5859_v25, 0.0 }
 0x54b   :  { %1559 = vadd.xlane.f32.xlu1 %v1558_v23 }
 0x54d   :  { %v5861_v27 = vpop.eup %5860 }
 0x54e   :  { %v1561_v30 = vsel %vm873_vm4, %v5861_v27, 0.0  ;;  %v5863_v33 = vpop.eup %5862 }
 0x54f   :  { %1562 = vadd.xlane.f32.xlu0 %v1561_v30  ;;  %v1567_v37 = vsel %vm873_vm4, %v5863_v33, 0.0 }
 0x551   :  { %v5865_v28 = vpop.eup %5864 }
 0x552   :  { %v1564_v35 = vsel %vm873_vm4, %v5865_v28, 0.0 }
 0x553   :  { %1565 = vadd.xlane.f32.xlu1 %v1564_v35  ;;  %1568 = vadd.xlane.f32.xlu0 %v1567_v37 }
 0x5c8   :  { %v1548_v38 = vpop.xlane.xlu1 %1547 }
 0x5c9   :  { %5866 = vrcp.f32 %v1548_v38 }
 0x5cc   :  { %v1551_v39 = vpop.xlane.xlu0 %1550 }
 0x5cd   :  { %5868 = vrcp.f32 %v1551_v39 }
 0x5d0   :  { %v1554_v41 = vpop.xlane.xlu1 %1553 }
 0x5d1   :  { %5870 = vrcp.f32 %v1554_v41 }
 0x5d3   :  { %v5867_v42 = vpop.eup %5866 }
 0x5d4   :  { %v1578_v43 = vmul.f32 %v5867_v42, %v5851_v62  ;;  %v1557_v44 = vpop.xlane.xlu0 %1556 }
 0x5d5   :  { %5872 = vrcp.f32 %v1557_v44 }
 0x5d6   :  { %5412 = vmatmul.mubr.msk.f32.vlgmr.msra.gmra.mrb[14].mxu0 %vm873_vm4, %v1578_v43 }
 0x5d7   :  { %v5869_v46 = vpop.eup %5868  ;;  %5420 = vmatpush3.msra.mxu0 %v6251_v26  ;;  %5421 = vmatprep.mubr.msk.f32.mxu0 %vm6044_vm3, %v6043_v18 }
 0x5d8   :  { %v1579_v49 = vmul.f32 %v5869_v46, %v5853_v7  ;;  %v1560_v51 = vpop.xlane.xlu1 %1559  ;;  %5429 = vmatprep.subr.mxu0 %v6043_v18 }
 0x5d9   :  { %5874 = vrcp.f32 %v1560_v51  ;;  %v5137_v51 = vld [vmem:[#allocation7 + $0xc] ss:$0 sm:$0xff] }
 0x5da   :  { %5417 = vmatmul.mubr.msk.f32.vlgmr.msra.gmra.mrb[28].mxu1 %vm873_vm4, %v1579_v49 }
 0x5db   :  { %v5871_v52 = vpop.eup %5870  ;;  %5425 = vmatpush3.msra.mxu1 %v6255_v31  ;;  %5426 = vmatprep.mubr.msk.f32.mxu1 %vm6044_vm3, %v6043_v18 }
 0x5dc   :  { %v1580_v53 = vmul.f32 %v5871_v52, %v5855_v12  ;;  %v1563_v57 = vpop.xlane.xlu0 %1562  ;;  %5434 = vmatprep.subr.mxu1 %v6043_v18  ;;  %v323_v12 = vld [vmem:[#allocation6 + $0x1c8] sm:$0xff] }
 0x5dd   :  { %5876 = vrcp.f32 %v1563_v57 }
 0x5de   :  { %5422 = vmatmul.mubr.msk.f32.vlgmr.msra.gmra.mrb[16].mxu0 %vm873_vm4, %v1580_v53 }
 0x5df   :  { %v5873_v26 = vpop.eup %5872  ;;  %5430 = vmatpush3.msra.mxu0 %v6315_v22  ;;  %5431 = vmatprep.mubr.msk.f32.mxu0 %vm6044_vm3, %v6043_v18 }
 0x5e0   :  { %v1581_v58 = vmul.f32 %v5873_v26, %v5857_v19  ;;  %v1566_v59 = vpop.xlane.xlu1 %1565  ;;  %v1569_v61 = vpop.xlane.xlu0 %1568  ;;  %5439 = vmatprep.subr.mxu0 %v6043_v18 }
 0x5e1   :  { %5878 = vrcp.f32 %v1566_v59 }
 0x5e2   :  { %5880 = vrcp.f32 %v1569_v61  ;;  %5427 = vmatmul.mubr.msk.f32.vlgmr.msra.gmra.mrb[30].mxu1 %vm873_vm4, %v1581_v58 }
 0x5e3   :  { %v5875_v31 = vpop.eup %5874  ;;  %5435 = vmatpush3.msra.mxu1 %v6329_v29  ;;  %5436 = vmatprep.mubr.msk.f32.mxu1 %vm6044_vm3, %v6043_v18 }
 0x5e4   :  { %v1582_v62 = vmul.f32 %v5875_v31, %v5859_v25  ;;  %5444 = vmatprep.subr.mxu1 %v6043_v18 }
 0x5e6   :  { %5432 = vmatmul.mubr.msk.f32.vlgmr.msra.gmra.mrb[18].mxu0 %vm873_vm4, %v1582_v62 }
 0x5e7   :  { %v5877_v22 = vpop.eup %5876  ;;  %5440 = vmatpush3.msra.mxu0 %v6319_v20  ;;  %5441 = vmatprep.mubr.msk.f32.mxu0 %vm6044_vm3, %v6043_v18 }
 0x5e8   :  { %v1583_v63 = vmul.f32 %v5877_v22, %v5861_v27  ;;  %5703 = vmatprep.subr.bf16.mxu0 %v5702_v10 }
 0x5ea   :  { %5437 = vmatmul.mubr.msk.f32.vlgmr.msra.gmra.mrb[32].mxu1 %vm873_vm4, %v1583_v63 }
 0x5eb   :  { %v5879_v0 = vpop.eup %5878  ;;  %5445 = vmatpush3.msra.mxu1 %v6334_v32  ;;  %5446 = vmatprep.mubr.msk.f32.mxu1 %vm6044_vm3, %v6043_v18  ;;  %v322_v32 = vld [vmem:[#allocation6 + $0x150] sm:$0xff] }
 0x5ec   :  { %v5881_v29 = vpop.eup %5880  ;;  %v1584_v5 = vmul.f32 %v5879_v0, %v5865_v28  ;;  %v5706_v14 = vpack.c.bf16 %v323_v12, %v322_v32 }
 0x5ed   :  { %v1585_v6 = vmul.f32 %v5881_v29, %v5863_v33 }
 0x5ee   :  { %5442 = vmatmul.mubr.msk.f32.vlgmr.msra.gmra.mrb[20].mxu0 %vm873_vm4, %v1584_v5 }
 0x5ef   :  { %5447 = vmatmul.mubr.msk.f32.vlgmr.msra.gmra.mrb[34].mxu1 %vm873_vm4, %v1585_v6  ;;  %5705 = vmatpush3.bf16.msra.mxu0 %v5702_v10 }
 0x5f0   :  { %5707 = vmatprep.subr.bf16.mxu0 %v5706_v14 }
 0x5f3   :  { %5709 = vmatpush3.bf16.msra.mxu0 %v5706_v14 }
 0x6a9   :  { %v1655_v20 = vpop.f32.mrb[14].mxu0 }
 0x6aa   :  { %v5413_v54 = vpop.f32.mrb[15].mxu0 }
 0x6ad   :  { %v1728_v7 = vpop.f32.mrb[28].mxu1 }
 0x6ae   :  { %v5418_v9 = vpop.f32.mrb[29].mxu1 }
 0x6af   :  { %v328_v9 = vld [vmem:[#allocation6 + $0x1d0] sm:$0xff] }
 0x6b0   :  { %v5714_v10 = vpack.c.bf16 %v328_v9, %v327_v4 }
 0x6b1   :  { %v1801_v11 = vpop.f32.mrb[16].mxu0 }
 0x6b2   :  { %2172 = vrot.lane.b32.xlu1 %v1801_v11, %s6046_s2  ;;  %v5423_v13 = vpop.f32.mrb[17].mxu0 }
 0x6b5   :  { %v1874_v15 = vpop.f32.mrb[30].mxu1 }
 0x6b6   :  { %2174 = vrot.lane.b32.xlu0 %v1874_v15, %s6046_s2  ;;  %v5428_v16 = vpop.f32.mrb[31].mxu1 }
 0x6b9   :  { %v1947_v17 = vpop.f32.mrb[18].mxu0 }
 0x6ba   :  { %2180 = vrot.lane.b32.xlu1 %v1947_v17, %s6047_s22  ;;  %v5433_v19 = vpop.f32.mrb[19].mxu0  ;;  %v5140_v17 = vld [vmem:[#allocation7 + $0xf] ss:$0 sm:$0xff] }
 0x6bd   :  { %v2020_v21 = vpop.f32.mrb[32].mxu1 }
 0x6be   :  { %2182 = vrot.lane.b32.xlu1 %v2020_v21, %s6047_s22  ;;  %v5438_v24 = vpop.f32.mrb[33].mxu1  ;;  %v5141_v21 = vld [vmem:[#allocation7 + $0x10] ss:$0 sm:$0xff] }
 0x6c1   :  { %v2093_v25 = vpop.f32.mrb[20].mxu0 }
 0x6c2   :  { %v2166_v23 = vpop.f32.mrb[34].mxu1  ;;  %v5443_v27 = vpop.f32.mrb[21].mxu0  ;;  %2188 = vrot.lane.b32.xlu0 %v2093_v25, %s6048_s23 }
 0x6c3   :  { %2190 = vrot.lane.b32.xlu1 %v2166_v23, %s6048_s23  ;;  %v5448_v30 = vpop.f32.mrb[35].mxu1 }
 0x724   :  { %v2173_v33 = vpop.permute.xlu1 %2172 }
 0x725   :  { %v2194_v38 = vsel %vm873_vm4, %v1655_v20, %v2173_v33 }
 0x728   :  { %v2175_v35 = vpop.permute.xlu0 %2174 }
 0x729   :  { %v2195_v39 = vsel %vm873_vm4, %v1728_v7, %v2175_v35  ;;  %v326_v7 = vld [vmem:[#allocation6 + $0xe0] sm:$0xff]  ;;  %v331_v35 = vld [vmem:[#allocation6 + $0xe8] sm:$0xff] }
 0x72c   :  { %v2181_v28 = vpop.permute.xlu1 %2180 }
 0x72d   :  { %v2197_v41 = vsel %vm2196_vm5, %v2194_v38, %v2181_v28  ;;  %v330_v28 = vld [vmem:[#allocation6 + $0x70] sm:$0xff]  ;;  %v332_v38 = vld [vmem:[#allocation6 + $0x160] sm:$0xff] }
 0x730   :  { %v2183_v37 = vpop.permute.xlu1 %2182 }
 0x731   :  { %v2198_v43 = vsel %vm2196_vm5, %v2195_v39, %v2183_v37  ;;  %v5718_v37 = vpack.c.bf16 %v331_v35, %v330_v28  ;;  %v333_v39 = vld [vmem:[#allocation6 + $0x1d8] sm:$0xff] }
 0x733   :  { %5719 = vmatprep.subr.bf16.mxu0 %v5718_v37 }
 0x734   :  { %v2189_v42 = vpop.permute.xlu0 %2188 }
 0x735   :  { %v2200_v44 = vsel %vm2199_vm6, %v2197_v41, %v2189_v42  ;;  %v2191_v46 = vpop.permute.xlu1 %2190  ;;  %v5722_v41 = vpack.c.bf16 %v333_v39, %v332_v38  ;;  %v334_v42 = vld [vmem:[#allocation6 + $0x250] sm:$0xff]  ;;  %v2584_v38 = vld [vmem:[#allocation6 + $0x440] sm:$0xff]  ;;  %v2576_v39 = vld [vmem:[#allocation6 + $0x3e8] sm:$0xff] }
 0x736   :  { %v2201_v49 = vsel %vm2199_vm6, %v2198_v43, %v2191_v46  ;;  %5457 = vmatprep.mubr.msk.f32.mxu0 %vm189_vm2, %v2200_v44  ;;  %v335_v43 = vld [vmem:[#allocation6 + $0x2c8] sm:$0xff]  ;;  %v336_v46 = vld [vmem:[#allocation6 + $0x340] sm:$0xff] }
 0x737   :  { %5458 = vmatmul.mubr.msk.f32.vlgmr.msra.gmra.mrb[22].mxu0 %vm189_vm2, %v2201_v49  ;;  %v5726_v44 = vpack.c.bf16 %v335_v43, %v334_v42  ;;  %v337_v49 = vld [vmem:[#allocation6 + $0x3b8] sm:$0xff]  ;;  %v2588_v42 = vld [vmem:[#allocation6 + $0x460] sm:$0xff] }
 0x738   :  { %5721 = vmatpush3.bf16.msra.mxu0 %v5718_v37  ;;  %v2571_v43 = vld [vmem:[#allocation6 + $0x3c0] sm:$0xff] }
 0x739   :  { %5723 = vmatprep.subr.bf16.mxu0 %v5722_v41 }
 0x73c   :  { %5725 = vmatpush3.bf16.msra.mxu0 %v5722_v41 }
 0x73d   :  { %5727 = vmatprep.subr.bf16.mxu0 %v5726_v44 }
 0x740   :  { %5729 = vmatpush3.bf16.msra.mxu0 %v5726_v44  ;;  %v2583_v44 = vld [vmem:[#allocation6 + $0x438] sm:$0xff] }
 0x80a   :  { %v5459_v52 = vpop.f32.mrb[22].mxu0 }
 0x80b   :  { %v2286_v53 = vadd.f32 %v5459_v52, %v5137_v51  ;;  %v2280_v57 = vpop.f32.mrb[23].mxu0  ;;  %v5142_v52 = vld [vmem:[#allocation7 + $0xd] ss:$0 sm:$0xff] }
 0x80c   :  { %v2281_v26 = vadd.f32 %v5137_v51, %v2280_v57  ;;  %v5730_v51 = vpack.c.bf16 %v337_v49, %v336_v46  ;;  %v5750_v46 = vpack.c.bf16 %v2588_v42, %v2576_v39  ;;  %v5736_v49 = vpack.c.bf16 %v2583_v44, %v2571_v43  ;;  %v2609_v44 = vld [vmem:[#allocation6 + $0x538] sm:$0xff] }
 0x80d   :  { %v2290_v58 = vadd.f32 %v2286_v53, %v6209_v45 }
 0x80e   :  { %v2289_v59 = vadd.f32 %v2281_v26, %v6201_v36  ;;  %v325_v36 = vld [vmem:[#allocation6 + $0x68] sm:$0xff]  ;;  %5731 = vmatprep.subr.bf16.mxu0 %v5730_v51 }
 0x80f   :  { %v2294_v61 = vsel %vm189_vm2, %v2290_v58, 0.0  ;;  %v5710_v8 = vpack.c.bf16 %v326_v7, %v325_v36  ;;  %5733 = vmatpush3.bf16.msra.mxu0 %v5730_v51  ;;  %v2575_v51 = vld [vmem:[#allocation6 + $0x3e0] sm:$0xff] }
 0x810   :  { %2295 = vadd.xlane.f32.xlu1 %v2294_v61  ;;  %v2291_v31 = vsel %vm189_vm2, %v2289_v59, 0.0  ;;  %5751 = vmatprep.subr.bf16.mxu0 %v5750_v46  ;;  %v2603_v46 = vld [vmem:[#allocation6 + $0x4f0] sm:$0xff] }
 0x811   :  { %2292 = vadd.xlane.f32.xlu0 %v2291_v31  ;;  %5711 = vmatprep.subr.bf16.mxu1 %v5710_v8 }
 0x812   :  { %5713 = vmatpush3.bf16.msra.mxu1 %v5710_v8 }
 0x813   :  { %5715 = vmatprep.subr.bf16.mxu1 %v5714_v10 }
 0x816   :  { %5717 = vmatpush3.bf16.msra.mxu1 %v5714_v10  ;;  %v5145_v10 = vld [vmem:[#allocation7 + $0xe] ss:$0 sm:$0xff] }
 0x89d   :  { %v2296_v62 = vpop.xlane.xlu1 %2295 }
 0x89e   :  { %v2298_v22 = vmul.f32 0.03125, %v2296_v62  ;;  %v2293_v63 = vpop.xlane.xlu0 %2292 }
 0x89f   :  { %v2297_v0 = vmul.f32 0.03125, %v2293_v63 }
 0x8a0   :  { %v2300_v29 = vsub.f32 %v2290_v58, %v2298_v22 }
 0x8a1   :  { %v2299_v5 = vsub.f32 %v2289_v59, %v2297_v0 }
 0x8a2   :  { %v2302_v54 = vmul.f32 %v2300_v29, %v2300_v29 }
 0x8a3   :  { %v2301_v6 = vmul.f32 %v2299_v5, %v2299_v5 }
 0x8a4   :  { %v2306_v45 = vsel %vm189_vm2, %v2302_v54, 0.0 }
 0x8a5   :  { %v2303_v20 = vsel %vm189_vm2, %v2301_v6, 0.0 }
 0x8a6   :  { %2304 = vadd.xlane.f32.xlu0 %v2303_v20 }
 0x8aa   :  { %2307 = vadd.xlane.f32.xlu0 %v2306_v45 }
 0x933   :  { %v2305_v11 = vpop.xlane.xlu0 %2304 }
 0x934   :  { %v2309_v32 = vmul.f32 0.03125, %v2305_v11 }
 0x936   :  { %v2311_v12 = vadd.f32 1e-12, %v2309_v32 }
 0x937   :  { %v2308_v13 = vpop.xlane.xlu0 %2307 }
 0x938   :  { %5882 = vrsqrt.f32 %v2311_v12  ;;  %v2310_v14 = vmul.f32 0.03125, %v2308_v13 }
 0x93a   :  { %v2312_v15 = vadd.f32 1e-12, %v2310_v14 }
 0x93c   :  { %5884 = vrsqrt.f32 %v2312_v15 }
 0x942   :  { %v5883_v16 = vpop.eup %5882 }
 0x943   :  { %v2315_v19 = vmul.f32 %v5883_v16, %v2299_v5 }
 0x945   :  { %v2323_v24 = vmul.f32 %v5140_v17, %v2315_v19 }
 0x946   :  { %v5885_v25 = vpop.eup %5884 }
 0x947   :  { %v2316_v23 = vmul.f32 %v5885_v25, %v2300_v29  ;;  %v2331_v27 = vadd.f32 %v5141_v21, %v2323_v24 }
 0x949   :  { %v2324_v30 = vmul.f32 %v5140_v17, %v2316_v23  ;;  %5468 = vmatprep.mubr.msk.f32.mxu1 %vm189_vm2, %v2331_v27 }
 0x94b   :  { %v2332_v33 = vadd.f32 %v5141_v21, %v2324_v30 }
 0x94d   :  { %5469 = vmatmul.mubr.msk.f32.vlgmr.msra.gmra.mrb[36].mxu1 %vm189_vm2, %v2332_v33 }
 0x94e   :  { %2777 = vmatprep.mubr.f32.mxu1 %v6043_v18 }
 0xa20   :  { %v5470_v53 = vpop.f32.mrb[36].mxu1 }
 0xa21   :  { %v2417_v57 = vadd.f32 %v5470_v53, %v5142_v52  ;;  %v2411_v26 = vpop.f32.mrb[37].mxu1 }
 0xa22   :  { %v2412_v58 = vadd.f32 %v5142_v52, %v2411_v26  ;;  %v2587_v52 = vld [vmem:[#allocation6 + $0x458] sm:$0xff]  ;;  %v2608_v26 = vld [vmem:[#allocation6 + $0x530] sm:$0xff] }
 0xa23   :  { %v2423_v59 = vmul.f32 0.044715, %v2417_v57  ;;  %v2421_v8 = vmul.f32 0.5, %v2417_v57  ;;  %v5752_v53 = vpack.c.bf16 %v2587_v52, %v2575_v51  ;;  %v2578_v51 = vld [vmem:[#allocation6 + $0x3f8] sm:$0xff]  ;;  %v2590_v52 = vld [vmem:[#allocation6 + $0x470] sm:$0xff] }
 0xa24   :  { %v2422_v61 = vmul.f32 0.044715, %v2412_v58  ;;  %v2420_v36 = vmul.f32 0.5, %v2412_v58 }
 0xa25   :  { %v2425_v31 = vmul.f32 %v2423_v59, %v2417_v57 }
 0xa26   :  { %v2424_v62 = vmul.f32 %v2422_v61, %v2412_v58  ;;  %v2612_v61 = vld [vmem:[#allocation6 + $0x550] sm:$0xff] }
 0xa27   :  { %v2427_v22 = vmul.f32 %v2425_v31, %v2417_v57  ;;  %v2595_v31 = vld [vmem:[#allocation6 + $0x4b0] sm:$0xff] }
 0xa28   :  { %v2426_v63 = vmul.f32 %v2424_v62, %v2412_v58  ;;  %v2607_v62 = vld [vmem:[#allocation6 + $0x528] sm:$0xff] }
 0xa29   :  { %v2429_v0 = vadd.f32 %v2427_v22, %v2417_v57  ;;  %v2596_v57 = vld [vmem:[#allocation6 + $0x4b8] sm:$0xff] }
 0xa2a   :  { %v2428_v29 = vadd.f32 %v2426_v63, %v2412_v58  ;;  %v2600_v58 = vld [vmem:[#allocation6 + $0x4d8] sm:$0xff]  ;;  %v5738_v59 = vpack.c.bf16 %v2608_v26, %v2596_v57  ;;  %v5740_v63 = vpack.c.bf16 %v2607_v62, %v2595_v31  ;;  %v2602_v31 = vld [vmem:[#allocation6 + $0x4e8] sm:$0xff]  ;;  %v2614_v62 = vld [vmem:[#allocation6 + $0x560] sm:$0xff] }
 0xa2b   :  { %v2431_v5 = vmul.f32 0.7978846, %v2429_v0  ;;  %v5754_v22 = vpack.c.bf16 %v2612_v61, %v2600_v58  ;;  %v2599_v0 = vld [vmem:[#allocation6 + $0x4d0] sm:$0xff]  ;;  %v5758_v61 = vpack.c.bf16 %v2590_v52, %v2578_v51 }
 0xa2c   :  { %v2430_v6 = vmul.f32 0.7978846, %v2428_v29  ;;  %v2611_v29 = vld [vmem:[#allocation6 + $0x548] sm:$0xff]  ;;  %v2577_v58 = vld [vmem:[#allocation6 + $0x3f0] sm:$0xff] }
 0xa2d   :  { %5886 = vtanh.f32 %v2431_v5  ;;  %v5756_v5 = vpack.c.bf16 %v2611_v29, %v2599_v0  ;;  %v2601_v0 = vld [vmem:[#allocation6 + $0x4e0] sm:$0xff]  ;;  %v2613_v29 = vld [vmem:[#allocation6 + $0x558] sm:$0xff] }
 0xa2e   :  { %5888 = vtanh.f32 %v2430_v6  ;;  %v2574_v6 = vld [vmem:[#allocation6 + $0x3d8] sm:$0xff] }
 0xa37   :  { %v5887_v20 = vpop.eup %5886 }
 0xa38   :  { %v5889_v54 = vpop.eup %5888  ;;  %v2435_v45 = vadd.f32 1.0, %v5887_v20  ;;  %v2586_v20 = vld [vmem:[#allocation6 + $0x450] sm:$0xff] }
 0xa39   :  { %v2434_v7 = vadd.f32 1.0, %v5889_v54  ;;  %v2580_v54 = vld [vmem:[#allocation6 + $0x408] sm:$0xff] }
 0xa3a   :  { %v2437_v9 = vmul.f32 %v2435_v45, %v2421_v8  ;;  %v5742_v45 = vpack.c.bf16 %v2586_v20, %v2574_v6  ;;  %v2594_v6 = vld [vmem:[#allocation6 + $0x490] sm:$0xff]  ;;  %v5764_v20 = vpack.c.bf16 %v2613_v29, %v2601_v0 }
 0xa3b   :  { %v2436_v4 = vmul.f32 %v2434_v7, %v2420_v36  ;;  %v2592_v36 = vld [vmem:[#allocation6 + $0x480] sm:$0xff] }
 0xa3c   :  { %v5766_v7 = vpack.c.bf16 %v2592_v36, %v2580_v54  ;;  %v2593_v36 = vld [vmem:[#allocation6 + $0x488] sm:$0xff] }
 0xa3d   :  { %5487 = vmatprep.mubr.msk.f32.mxu0 %vm2444_vm7, %v2436_v4 }
 0xa3e   :  { %5488 = vmatmul.mubr.msk.f32.vlgmr.msra.gmra.mrb[24].mxu0 %vm2444_vm7, %v2437_v9 }
 0xa3f   :  { %2931 = vmatprep.mubr.f32.mxu0 %v6043_v18  ;;  %5753 = vmatpush1.bf16.msra.mxu0 %v5752_v53 }
 0xa40   :  { %5755 = vmatprep.subr.bf16.mxu0 %v5754_v22 }
 0xa43   :  { %5757 = vmatpush1.bf16.msra.mxu0 %v5756_v5  ;;  %v2582_v5 = vld [vmem:[#allocation6 + $0x418] sm:$0xff] }
 0xa44   :  { %5767 = vmatprep.subr.bf16.mxu0 %v5766_v7  ;;  %v5774_v54 = vpack.c.bf16 %v2594_v6, %v2582_v5  ;;  %v2606_v7 = vld [vmem:[#allocation6 + $0x508] sm:$0xff] }
 0xb11   :  { %v5489_v11 = vpop.f32.mrb[24].mxu0 }
 0xb12   :  { %v2523_v32 = vadd.f32 %v5489_v11, %v5145_v10  ;;  %v2517_v12 = vpop.f32.mrb[25].mxu0 }
 0xb13   :  { %v2518_v13 = vadd.f32 %v5145_v10, %v2517_v12 }
 0xb14   :  { %v2527_v14 = vadd.f32 %v2523_v32, %v2332_v33 }
 0xb15   :  { %v2526_v15 = vadd.f32 %v2518_v13, %v2331_v27  ;;  %v2572_v27 = vld [vmem:[#allocation6 + $0x3c8] sm:$0xff] }
 0xb16   :  { %v2531_v16 = vsel %vm189_vm2, %v2527_v14, 0.0  ;;  %v5734_v41 = vpack.c.bf16 %v2584_v38, %v2572_v27  ;;  %v2616_v27 = vld [vmem:[#allocation6 + $0x570] sm:$0xff] }
 0xb17   :  { %2532 = vadd.xlane.f32.xlu0 %v2531_v16  ;;  %v2528_v17 = vsel %vm189_vm2, %v2526_v15, 0.0 }
 0xb18   :  { %2529 = vadd.xlane.f32.xlu1 %v2528_v17  ;;  %5735 = vmatprep.subr.bf16.mxu1 %v5734_v41  ;;  %v2597_v41 = vld [vmem:[#allocation6 + $0x4c0] sm:$0xff] }
 0xb19   :  { %5737 = vmatpush1.bf16.msra.mxu1 %v5736_v49  ;;  %v2615_v49 = vld [vmem:[#allocation6 + $0x568] sm:$0xff]  ;;  %v5748_v53 = vpack.c.bf16 %v2609_v44, %v2597_v41 }
 0xb1a   :  { %5739 = vmatprep.subr.bf16.mxu1 %v5738_v59  ;;  %v5772_v57 = vpack.c.bf16 %v2615_v49, %v2603_v46  ;;  %v2589_v59 = vld [vmem:[#allocation6 + $0x468] sm:$0xff] }
 0xb1b   :  { %v5760_v22 = vpack.c.bf16 %v2589_v59, %v2577_v58 }
 0xb1d   :  { %5741 = vmatpush1.bf16.msra.mxu1 %v5740_v63  ;;  %v5762_v63 = vpack.c.bf16 %v2614_v62, %v2602_v31 }
 0xb1e   :  { %5743 = vmatprep.subr.bf16.mxu1 %v5742_v45  ;;  %v2581_v45 = vld [vmem:[#allocation6 + $0x410] sm:$0xff] }
 0xba4   :  { %v2533_v19 = vpop.xlane.xlu0 %2532 }
 0xba5   :  { %v2535_v21 = vmul.f32 0.03125, %v2533_v19  ;;  %v2530_v24 = vpop.xlane.xlu1 %2529  ;;  %v2585_v19 = vld [vmem:[#allocation6 + $0x448] sm:$0xff] }
 0xba6   :  { %v2534_v25 = vmul.f32 0.03125, %v2530_v24  ;;  %v2591_v24 = vld [vmem:[#allocation6 + $0x478] sm:$0xff] }
 0xba7   :  { %v2537_v23 = vsub.f32 %v2527_v14, %v2535_v21  ;;  %v5148_v14 = vld [vmem:[#allocation7 + $0x11] ss:$0 sm:$0xff]  ;;  %v2579_v21 = vld [vmem:[#allocation6 + $0x400] sm:$0xff] }
 0xba8   :  { %v2536_v30 = vsub.f32 %v2526_v15, %v2534_v25  ;;  %v2573_v15 = vld [vmem:[#allocation6 + $0x3d0] sm:$0xff]  ;;  %v5768_v39 = vpack.c.bf16 %v2591_v24, %v2579_v21 }
 0xba9   :  { %v2539_v28 = vmul.f32 %v2537_v23, %v2537_v23  ;;  %v5149_v25 = vld [vmem:[#allocation7 + $0x12] ss:$0 sm:$0xff]  ;;  %v5744_v38 = vpack.c.bf16 %v2585_v19, %v2573_v15 }
 0xbaa   :  { %v2538_v35 = vmul.f32 %v2536_v30, %v2536_v30 }
 0xbab   :  { %v2543_v37 = vsel %vm189_vm2, %v2539_v28, 0.0  ;;  %v2598_v28 = vld [vmem:[#allocation6 + $0x4c8] sm:$0xff] }
 0xbac   :  { %2544 = vadd.xlane.f32.xlu0 %v2543_v37  ;;  %v2540_v33 = vsel %vm189_vm2, %v2538_v35, 0.0  ;;  %v2610_v37 = vld [vmem:[#allocation6 + $0x540] sm:$0xff] }
 0xbad   :  { %2541 = vadd.xlane.f32.xlu1 %v2540_v33  ;;  %v2604_v33 = vld [vmem:[#allocation6 + $0x4f8] sm:$0xff] }
 0xc39   :  { %v2545_v8 = vpop.xlane.xlu0 %2544 }
 0xc3a   :  { %v2547_v4 = vmul.f32 0.03125, %v2545_v8  ;;  %v2542_v9 = vpop.xlane.xlu1 %2541  ;;  %v2618_v8 = vld [vmem:[#allocation6 + $0x580] sm:$0xff] }
 0xc3b   :  { %v2546_v10 = vmul.f32 0.03125, %v2542_v9  ;;  %v5778_v9 = vpack.c.bf16 %v2618_v8, %v2606_v7 }
 0xc3c   :  { %v2549_v11 = vadd.f32 1e-12, %v2547_v4  ;;  %v5776_v4 = vpack.c.bf16 %v2593_v36, %v2581_v45 }
 0xc3d   :  { %v2548_v32 = vadd.f32 1e-12, %v2546_v10  ;;  %v2605_v10 = vld [vmem:[#allocation6 + $0x500] sm:$0xff] }
 0xc3e   :  { %5890 = vrsqrt.f32 %v2549_v11  ;;  %v2617_v11 = vld [vmem:[#allocation6 + $0x578] sm:$0xff] }
 0xc3f   :  { %5892 = vrsqrt.f32 %v2548_v32  ;;  %v5780_v32 = vpack.c.bf16 %v2617_v11, %v2605_v10 }
 0xc48   :  { %v5891_v12 = vpop.eup %5890 }
 0xc49   :  { %v5893_v13 = vpop.eup %5892  ;;  %v2553_v16 = vmul.f32 %v5891_v12, %v2537_v23  ;;  %v5746_v23 = vpack.c.bf16 %v2610_v37, %v2598_v28  ;;  %v2620_v12 = vld [vmem:[#allocation7 + $0x13] sm:$0xff] }
 0xc4a   :  { %v2552_v17 = vmul.f32 %v5893_v13, %v2536_v30  ;;  %v5770_v30 = vpack.c.bf16 %v2616_v27, %v2604_v33  ;;  %v2666_v13 = vrot.slane %v2620_v12, %v363_v34  ;;  %v2670_v21 = vrot.slane %v2620_v12, %v367_v40 }
 0xc4b   :  { %v2561_v42 = vmul.f32 %v5148_v14, %v2553_v16  ;;  %v2658_v62 = vrot.slane %v2620_v12, %v6270_v50  ;;  %v2678_v0 = vrot.slane %v2620_v12, %v375_v56 }
 0xc4c   :  { %v2560_v35 = vmul.f32 %v5148_v14, %v2552_v17  ;;  %v2650_v14 = vrot.slane %v2620_v12, %v6132_v2 }
 0xc4d   :  { %v6437_v26 = vadd.f32 %v5149_v25, %v2561_v42 }
 0xc4e   :  { %v6431_v43 = vadd.f32 %v5149_v25, %v2560_v35  ;;  %v2621_v25 = vld [vmem:[#allocation7 + $0x1b] sm:$0xf]  ;;  %v2654_v35 = vrot.slane %v2620_v12, %v6135_v3 }
 0xc4f   :  { %v2686_v41 = vrot.slane %v2621_v25, %v6135_v3  ;;  %v2690_v7 = vrot.slane %v2621_v25, %v6270_v50  ;;  %v2694_v1 = vrot.slane %v2621_v25, %v6281_v60 }
 0xc50   :  { %5150 = vmatmul.mubr.msk.f32.vlgmr.msra.gmra.mrb[38].mxu1 %vm189_vm2, %v6431_v43  ;;  %5154 = vmatmul.mubr.msk.f32.vlgmr.msra.gmra.mrb[26].mxu0 %vm189_vm2, %v6431_v43 }
 0xc51   :  { %5745 = vmatpush1.bf16.msra.mxu1 %v5744_v38  ;;  %5769 = vmatpush1.bf16.msra.mxu0 %v5768_v39 }
 0xc52   :  { %2783 = vmatprep.mubr.f32.mxu1 %v6043_v18  ;;  %2937 = vmatprep.mubr.f32.mxu0 %v6043_v18 }
 0xc53   :  { %5747 = vmatprep.subr.bf16.mxu1 %v5746_v23  ;;  %5771 = vmatprep.subr.bf16.mxu0 %v5770_v30 }
 0xc54   :  { %5151 = vmatmul.mubr.msk.f32.gmra.mrb[40].mxu1 %vm189_vm2, %v6437_v26  ;;  %5155 = vmatmul.mubr.msk.f32.gmra.mrb[28].mxu0 %vm189_vm2, %v6437_v26 }
 0xc55   :  { %5749 = vmatpush1.bf16.msra.mxu1 %v5748_v53  ;;  %5773 = vmatpush1.bf16.msra.mxu0 %v5772_v57 }
 0xc56   :  { %2854 = vmatprep.mubr.f32.mxu1 %v6043_v18  ;;  %3085 = vmatprep.mubr.f32.mxu0 %v6043_v18 }
 0xc57   :  { %5759 = vmatprep.subr.bf16.mxu1 %v5758_v61  ;;  %5490 = vmatprep.subr.mxu0 %v6043_v18  ;;  %v2674_v61 = vrot.slane %v2620_v12, %v371_v47  ;;  %v2662_v47 = vrot.slane %v2620_v12, %v6281_v60 }
 0xc58   :  { %5152 = vmatmul.mubr.msk.f32.vlgmr.msra.gmra.mrb[42].mxu1 %vm189_vm2, %v6431_v43  ;;  %5158 = vmatmul.mubr.msk.f32.vlgmr.msra.gmra.mrb[30].mxu0 %vm189_vm2, %v6431_v43 }
 0xc59   :  { %5761 = vmatpush1.bf16.msra.mxu1 %v5760_v22  ;;  %2860 = vmatprep.mubr.f32.mxu1 %v6043_v18 }
 0xc5a   :  { %3091 = vmatprep.mubr.f32.mxu0 %v6043_v18  ;;  %5763 = vmatprep.subr.bf16.mxu1 %v5762_v63 }
 0xc5c   :  { %5153 = vmatmul.mubr.msk.f32.gmra.mrb[44].mxu1 %vm189_vm2, %v6437_v26  ;;  %5159 = vmatmul.mubr.msk.f32.gmra.mrb[32].mxu0 %vm189_vm2, %v6437_v26 }
 0xc5d   :  { %5765 = vmatpush1.bf16.msra.mxu1 %v5764_v20  ;;  %3008 = vmatprep.mubr.f32.mxu1 %v6043_v18  ;;  %v2682_v20 = vrot.slane %v2621_v25, %v6132_v2 }
 0xc5e   :  { %5775 = vmatprep.subr.bf16.mxu1 %v5774_v54  ;;  %5492 = vmatprep.mubr.msk.f32.mxu0 %vm6044_vm3, %v6043_v18 }
 0xc60   :  { %5156 = vmatmul.mubr.msk.f32.vlgmr.msra.gmra.mrb[46].mxu1 %vm189_vm2, %v6431_v43 }
 0xc61   :  { %5777 = vmatpush1.bf16.msra.mxu1 %v5776_v4  ;;  %3014 = vmatprep.mubr.f32.mxu1 %v6043_v18 }
 0xc62   :  { %5779 = vmatprep.subr.bf16.mxu1 %v5778_v9 }
 0xc64   :  { %5157 = vmatmul.mubr.msk.f32.gmra.mrb[48].mxu1 %vm189_vm2, %v6437_v26 }
 0xc65   :  { %5781 = vmatpush1.bf16.msra.mxu1 %v5780_v32  ;;  %3162 = vmatprep.mubr.f32.mxu1 %v6043_v18 }
 0xc66   :  { %5495 = vmatprep.subr.mxu1 %v6043_v18 }
 0xc68   :  { %5160 = vmatmul.mubr.msk.f32.vlgmr.msra.gmra.mrb[50].mxu1 %vm189_vm2, %v6431_v43 }
 0xc69   :  { %3168 = vmatprep.mubr.f32.mxu1 %v6043_v18 }
 0xc6c   :  { %5161 = vmatmul.mubr.msk.f32.gmra.mrb[52].mxu1 %vm189_vm2, %v6437_v26 }
 0xc6d   :  { %5497 = vmatprep.mubr.msk.f32.mxu1 %vm6044_vm3, %v6043_v18 }
 0xd23   :  { %v2779_v15 = vpop.f32.mrb[38].mxu1  ;;  %v2933_v16 = vpop.f32.mrb[26].mxu0 }
 0xd24   :  { %v2934_v17 = vadd.f32 %v2933_v16, %v2666_v13  ;;  %v2781_v19 = vpop.f32.mrb[39].mxu1  ;;  %v2935_v24 = vpop.f32.mrb[27].mxu0  ;;  %v2780_v28 = vadd.f32 %v2779_v15, %v2650_v14 }
 0xd25   :  { %v2936_v34 = vadd.f32 %v2935_v24, %v2670_v21  ;;  %v2782_v40 = vadd.f32 %v2781_v19, %v2654_v35 }
 0xd26   :  { %5491 = vmatpush3.xpose.msk.msra.mxu0 %vm873_vm4, %v2934_v17 }
 0xd27   :  { %v2785_v37 = vpop.f32.mrb[40].mxu1  ;;  %v2939_v33 = vpop.f32.mrb[28].mxu0  ;;  %5500 = vmatprep.subr.mxu0 %v6043_v18 }
 0xd28   :  { %v2940_v27 = vadd.f32 %v2939_v33, %v2666_v13  ;;  %v2787_v38 = vpop.f32.mrb[41].mxu1  ;;  %v2941_v39 = vpop.f32.mrb[29].mxu0  ;;  %v2786_v42 = vadd.f32 %v2785_v37, %v2650_v14 }
 0xd29   :  { %5493 = vmatmul.mubr.msk.f32.vlgmr.msra.gmra.mrb[34].mxu0 %vm873_vm4, %v2780_v28  ;;  %v2942_v49 = vadd.f32 %v2941_v39, %v2670_v21  ;;  %v2788_v52 = vadd.f32 %v2787_v38, %v2654_v35 }
 0xd2a   :  { %5496 = vmatpush3.xpose.msk.msra.mxu1 %vm873_vm4, %v2940_v27  ;;  %5501 = vmatpush3.xpose.msk.msra.mxu0 %vm873_vm4, %v2936_v34 }
 0xd2b   :  { %v2856_v44 = vpop.f32.mrb[42].mxu1  ;;  %v3087_v46 = vpop.f32.mrb[30].mxu0  ;;  %5502 = vmatprep.mubr.msk.f32.mxu0 %vm6044_vm3, %v6043_v18  ;;  %5505 = vmatprep.subr.mxu1 %v6043_v18 }
 0xd2c   :  { %v2858_v23 = vpop.f32.mrb[43].mxu1  ;;  %v3089_v30 = vpop.f32.mrb[31].mxu0  ;;  %5510 = vmatprep.subr.mxu0 %v6043_v18  ;;  %v2857_v5 = vadd.f32 %v2856_v44, %v2658_v62  ;;  %v3088_v9 = vadd.f32 %v3087_v46, %v2682_v20 }
 0xd2d   :  { %v6491_v51 = vadd.f32 %v3089_v30, %v2686_v41  ;;  %5498 = vmatmul.mubr.msk.f32.vlgmr.msra.gmra.mrb[54].mxu1 %vm873_vm4, %v2786_v42  ;;  %5503 = vmatmul.mubr.msk.f32.vlgmr.msra.gmra.mrb[36].mxu0 %vm873_vm4, %v2782_v40  ;;  %v2859_v56 = vadd.f32 %v2858_v23, %v2662_v47 }
 0xd2e   :  { %5506 = vmatpush3.xpose.msk.msra.mxu1 %vm873_vm4, %v2942_v49  ;;  %5507 = vmatprep.mubr.msk.f32.mxu1 %vm6044_vm3, %v6043_v18 }
 0xd2f   :  { %v2862_v53 = vpop.f32.mrb[44].mxu1  ;;  %v3093_v57 = vpop.f32.mrb[32].mxu0  ;;  %5512 = vmatprep.mubr.msk.f32.mxu0 %vm6044_vm3, %v6043_v18  ;;  %5515 = vmatprep.subr.mxu1 %v6043_v18 }
 0xd30   :  { %v2864_v58 = vpop.f32.mrb[45].mxu1  ;;  %v3095_v59 = vpop.f32.mrb[33].mxu0  ;;  %v2863_v8 = vadd.f32 %v2862_v53, %v2658_v62  ;;  %v3094_v13 = vadd.f32 %v3093_v57, %v2682_v20 }
 0xd31   :  { %v6503_v31 = vadd.f32 %v3095_v59, %v2686_v41  ;;  %5508 = vmatmul.mubr.msk.f32.vlgmr.msra.gmra.mrb[56].mxu1 %vm873_vm4, %v2788_v52  ;;  %v2865_v32 = vadd.f32 %v2864_v58, %v2662_v47 }
 0xd32   :  { %5517 = vmatprep.mubr.msk.f32.mxu1 %vm6044_vm3, %v6043_v18 }
 0xd33   :  { %v3010_v22 = vpop.f32.mrb[46].mxu1 }
 0xd34   :  { %v3011_v63 = vadd.f32 %v3010_v22, %v2674_v61  ;;  %v3012_v29 = vpop.f32.mrb[47].mxu1 }
 0xd35   :  { %v3013_v54 = vadd.f32 %v3012_v29, %v2678_v0 }
 0xd36   :  { %5511 = vmatpush3.xpose.msk.msra.mxu0 %vm873_vm4, %v3011_v63 }
 0xd37   :  { %v3016_v6 = vpop.f32.mrb[48].mxu1  ;;  %5520 = vmatprep.subr.mxu0 %v6043_v18 }
 0xd38   :  { %v3017_v45 = vadd.f32 %v3016_v6, %v2674_v61  ;;  %v3018_v36 = vpop.f32.mrb[49].mxu1 }
 0xd39   :  { %5513 = vmatmul.mubr.msk.f32.vlgmr.msra.gmra.mrb[38].mxu0 %vm873_vm4, %v2857_v5  ;;  %v3019_v10 = vadd.f32 %v3018_v36, %v2678_v0 }
 0xd3a   :  { %5516 = vmatpush3.xpose.msk.msra.mxu1 %vm873_vm4, %v3017_v45  ;;  %5521 = vmatpush3.xpose.msk.msra.mxu0 %vm873_vm4, %v3013_v54 }
 0xd3b   :  { %v3164_v4 = vpop.f32.mrb[50].mxu1  ;;  %5522 = vmatprep.mubr.msk.f32.mxu0 %vm6044_vm3, %v6043_v18  ;;  %5525 = vmatprep.subr.mxu1 %v6043_v18 }
 0xd3c   :  { %v6523_v11 = vadd.f32 %v3164_v4, %v2690_v7  ;;  %v3166_v50 = vpop.f32.mrb[51].mxu1  ;;  %5530 = vmatprep.subr.mxu0 %v6043_v18 }
 0xd3d   :  { %v6526_v60 = vadd.f32 %v3166_v50, %v2694_v1  ;;  %5518 = vmatmul.mubr.msk.f32.vlgmr.msra.gmra.mrb[58].mxu1 %vm873_vm4, %v2863_v8  ;;  %5523 = vmatmul.mubr.msk.f32.vlgmr.msra.gmra.mrb[40].mxu0 %vm873_vm4, %v2859_v56 }
 0xd3e   :  { %5526 = vmatpush3.xpose.msk.msra.mxu1 %vm873_vm4, %v3019_v10  ;;  %5531 = vmatpush3.msra.mxu0 %v3088_v9 }
 0xd3f   :  { %v3170_v12 = vpop.f32.mrb[52].mxu1  ;;  %5527 = vmatprep.mubr.msk.f32.mxu1 %vm6044_vm3, %v6043_v18  ;;  %5535 = vmatprep.subr.mxu1 %v6043_v18 }
 0xd40   :  { %v6534_v14 = vadd.f32 %v3170_v12, %v2690_v7  ;;  %v3172_v15 = vpop.f32.mrb[53].mxu1  ;;  %5532 = vmatprep.mubr.msk.f32.mxu0 %vm6044_vm3, %v6043_v18  ;;  %5540 = vmatprep.subr.mxu0 %v6043_v18 }
 0xd41   :  { %v6539_v16 = vadd.f32 %v3172_v15, %v2694_v1  ;;  %5528 = vmatmul.mubr.msk.f32.vlgmr.msra.gmra.mrb[60].mxu1 %vm873_vm4, %v2865_v32 }
 0xd42   :  { %5536 = vmatpush3.msra.mxu1 %v3094_v13  ;;  %5537 = vmatprep.mubr.msk.f32.mxu1 %vm6044_vm3, %v6043_v18 }
 0xd43   :  { %5545 = vmatprep.subr.mxu1 %v6043_v18 }
 0xdfc   :  { %v3247_v17 = vpop.f32.mrb[34].mxu0 }
 0xdfd   :  { %v3783_v19 = vmul.f32 0.35355338, %v3247_v17  ;;  %v5494_v21 = vpop.f32.mrb[35].mxu0 }
 0xdff   :  { %v3791_v24 = vadd.f32 %v3783_v19, %v6342_v48 }
 0xe00   :  { %v3323_v25 = vpop.f32.mrb[54].mxu1  ;;  %v3399_v28 = vpop.f32.mrb[36].mxu0 }
 0xe01   :  { %v3784_v35 = vmul.f32 0.35355338, %v3323_v25  ;;  %v3785_v37 = vmul.f32 0.35355338, %v3399_v28  ;;  %v5499_v33 = vpop.f32.mrb[55].mxu1  ;;  %v5504_v34 = vpop.f32.mrb[37].mxu0 }
 0xe02   :  { %v3799_v27 = vsel %vm873_vm4, %v3791_v24, -inf }
 0xe03   :  { %3800 = vmax.xlane.f32.xlu1 %v3799_v27  ;;  %v3792_v38 = vadd.f32 %v3784_v35, %v6346_v55  ;;  %v3793_v39 = vadd.f32 %v3785_v37, %v6342_v48 }
 0xe04   :  { %v3475_v41 = vpop.f32.mrb[56].mxu1 }
 0xe05   :  { %v3786_v40 = vmul.f32 0.35355338, %v3475_v41  ;;  %v5509_v42 = vpop.f32.mrb[57].mxu1  ;;  %v3802_v44 = vsel %vm873_vm4, %v3792_v38, -inf  ;;  %v3805_v46 = vsel %vm873_vm4, %v3793_v39, -inf }
 0xe06   :  { %3803 = vmax.xlane.f32.xlu0 %v3802_v44 }
 0xe07   :  { %3806 = vmax.xlane.f32.xlu1 %v3805_v46  ;;  %v3794_v49 = vadd.f32 %v3786_v40, %v6346_v55 }
 0xe09   :  { %v3808_v23 = vsel %vm873_vm4, %v3794_v49, -inf }
 0xe0a   :  { %3809 = vmax.xlane.f32.xlu0 %v3808_v23 }
 0xe0c   :  { %v3551_v30 = vpop.f32.mrb[38].mxu0 }
 0xe0d   :  { %v3787_v52 = vmul.f32 0.35355338, %v3551_v30  ;;  %v5514_v53 = vpop.f32.mrb[39].mxu0 }
 0xe0f   :  { %v3795_v57 = vadd.f32 %v3787_v52, %v6342_v48 }
 0xe10   :  { %v3627_v58 = vpop.f32.mrb[58].mxu1  ;;  %v3703_v59 = vpop.f32.mrb[40].mxu0 }
 0xe11   :  { %v3788_v61 = vmul.f32 0.35355338, %v3627_v58  ;;  %v3789_v62 = vmul.f32 0.35355338, %v3703_v59  ;;  %v5519_v22 = vpop.f32.mrb[59].mxu1  ;;  %v5524_v63 = vpop.f32.mrb[41].mxu0 }
 0xe12   :  { %v3811_v0 = vsel %vm873_vm4, %v3795_v57, -inf }
 0xe13   :  { %3812 = vmax.xlane.f32.xlu1 %v3811_v0  ;;  %v3796_v29 = vadd.f32 %v3788_v61, %v6346_v55  ;;  %v3797_v5 = vadd.f32 %v3789_v62, %v6342_v48 }
 0xe14   :  { %v3779_v47 = vpop.f32.mrb[60].mxu1 }
 0xe15   :  { %v3790_v6 = vmul.f32 0.35355338, %v3779_v47  ;;  %v5529_v20 = vpop.f32.mrb[61].mxu1  ;;  %v3814_v54 = vsel %vm873_vm4, %v3796_v29, -inf  ;;  %v3817_v45 = vsel %vm873_vm4, %v3797_v5, -inf }
 0xe16   :  { %3815 = vmax.xlane.f32.xlu0 %v3814_v54 }
 0xe17   :  { %3818 = vmax.xlane.f32.xlu1 %v3817_v45  ;;  %v3798_v36 = vadd.f32 %v3790_v6, %v6346_v55 }
 0xe19   :  { %v3820_v7 = vsel %vm873_vm4, %v3798_v36, -inf }
 0xe1a   :  { %3821 = vmax.xlane.f32.xlu0 %v3820_v7 }
 0xe90   :  { %v3801_v1 = vpop.xlane.xlu1 %3800 }
 0xe91   :  { %v3823_v56 = vsub.f32 %v3791_v24, %v3801_v1 }
 0xe93   :  { %v3831_v8 = vmul.f32 1.442695, %v3823_v56  ;;  %v3804_v4 = vpop.xlane.xlu0 %3803 }
 0xe94   :  { %v3824_v9 = vsub.f32 %v3792_v38, %v3804_v4  ;;  %v3807_v48 = vpop.xlane.xlu1 %3806 }
 0xe95   :  { %5894 = vpow2.f32 %v3831_v8  ;;  %v3825_v10 = vsub.f32 %v3793_v39, %v3807_v48 }
 0xe96   :  { %v3833_v50 = vmul.f32 1.442695, %v3824_v9 }
 0xe97   :  { %v3835_v32 = vmul.f32 1.442695, %v3825_v10  ;;  %v3810_v12 = vpop.xlane.xlu0 %3809 }
 0xe98   :  { %5896 = vpow2.f32 %v3833_v50  ;;  %v3826_v13 = vsub.f32 %v3794_v49, %v3810_v12  ;;  %v2622_v12 = vld [vmem:[#allocation6 + $0x420] sm:$0xff] }
 0xe99   :  { %5898 = vpow2.f32 %v3835_v32 }
 0xe9a   :  { %v3837_v15 = vmul.f32 1.442695, %v3826_v13  ;;  %v2623_v13 = vld [vmem:[#allocation6 + $0x498] sm:$0xff] }
 0xe9c   :  { %5900 = vpow2.f32 %v3837_v15 }
 0xe9f   :  { %v5895_v55 = vpop.eup %5894 }
 0xea0   :  { %v3813_v17 = vpop.xlane.xlu1 %3812  ;;  %v3847_v19 = vsel %vm873_vm4, %v5895_v55, 0.0 }
 0xea1   :  { %v3827_v21 = vsub.f32 %v3795_v57, %v3813_v17  ;;  %3848 = vadd.xlane.f32.xlu1 %v3847_v19  ;;  %v5782_v17 = vpack.c.bf16 %v2623_v13, %v2622_v12 }
 0xea2   :  { %v5897_v24 = vpop.eup %5896 }
 0xea3   :  { %v5899_v25 = vpop.eup %5898  ;;  %v3839_v28 = vmul.f32 1.442695, %v3827_v21  ;;  %v3816_v35 = vpop.xlane.xlu0 %3815  ;;  %v3850_v37 = vsel %vm873_vm4, %v5897_v24, 0.0 }
 0xea4   :  { %v3828_v33 = vsub.f32 %v3796_v29, %v3816_v35  ;;  %v3819_v34 = vpop.xlane.xlu1 %3818  ;;  %3851 = vadd.xlane.f32.xlu0 %v3850_v37  ;;  %v3853_v27 = vsel %vm873_vm4, %v5899_v25, 0.0 }
 0xea5   :  { %5902 = vpow2.f32 %v3839_v28  ;;  %v3829_v38 = vsub.f32 %v3797_v5, %v3819_v34  ;;  %3854 = vadd.xlane.f32.xlu1 %v3853_v27 }
 0xea6   :  { %v5901_v39 = vpop.eup %5900  ;;  %v3841_v41 = vmul.f32 1.442695, %v3828_v33 }
 0xea7   :  { %v3843_v40 = vmul.f32 1.442695, %v3829_v38  ;;  %v3822_v42 = vpop.xlane.xlu0 %3821  ;;  %v3856_v44 = vsel %vm873_vm4, %v5901_v39, 0.0 }
 0xea8   :  { %5904 = vpow2.f32 %v3841_v41  ;;  %v3830_v46 = vsub.f32 %v3798_v36, %v3822_v42  ;;  %3857 = vadd.xlane.f32.xlu0 %v3856_v44 }
 0xea9   :  { %5906 = vpow2.f32 %v3843_v40 }
 0xeaa   :  { %v3845_v49 = vmul.f32 1.442695, %v3830_v46 }
 0xeac   :  { %5908 = vpow2.f32 %v3845_v49 }
 0xeaf   :  { %v5903_v23 = vpop.eup %5902 }
 0xeb0   :  { %v3859_v30 = vsel %vm873_vm4, %v5903_v23, 0.0 }
 0xeb1   :  { %3860 = vadd.xlane.f32.xlu1 %v3859_v30 }
 0xeb2   :  { %v5905_v52 = vpop.eup %5904 }
 0xeb3   :  { %v5907_v53 = vpop.eup %5906  ;;  %v3862_v57 = vsel %vm873_vm4, %v5905_v52, 0.0 }
 0xeb4   :  { %3863 = vadd.xlane.f32.xlu0 %v3862_v57  ;;  %v3865_v58 = vsel %vm873_vm4, %v5907_v53, 0.0 }
 0xeb5   :  { %3866 = vadd.xlane.f32.xlu1 %v3865_v58 }
 0xeb6   :  { %v5909_v59 = vpop.eup %5908 }
 0xeb7   :  { %v3868_v61 = vsel %vm873_vm4, %v5909_v59, 0.0 }
 0xeb8   :  { %3869 = vadd.xlane.f32.xlu0 %v3868_v61  ;;  %v5186_v61 = vld [vmem:[#allocation7 + $0x1f] ss:$0 sm:$0xff] }
 0xf2e   :  { %v3849_v62 = vpop.xlane.xlu1 %3848 }
 0xf2f   :  { %5910 = vrcp.f32 %v3849_v62 }
 0xf31   :  { %v3852_v22 = vpop.xlane.xlu0 %3851 }
 0xf32   :  { %5912 = vrcp.f32 %v3852_v22  ;;  %v3855_v63 = vpop.xlane.xlu1 %3854 }
 0xf33   :  { %5914 = vrcp.f32 %v3855_v63 }
 0xf35   :  { %v3858_v0 = vpop.xlane.xlu0 %3857 }
 0xf36   :  { %5916 = vrcp.f32 %v3858_v0 }
 0xf39   :  { %v5911_v29 = vpop.eup %5910 }
 0xf3a   :  { %v3879_v5 = vmul.f32 %v5911_v29, %v5895_v55 }
 0xf3c   :  { %v5913_v47 = vpop.eup %5912  ;;  %5533 = vmatmul.mubr.msk.f32.vlgmr.msra.gmra.mrb[42].mxu0 %vm873_vm4, %v3879_v5 }
 0xf3d   :  { %v5915_v6 = vpop.eup %5914  ;;  %v3880_v20 = vmul.f32 %v5913_v47, %v5897_v24  ;;  %5541 = vmatpush3.msra.mxu0 %v6491_v51  ;;  %5542 = vmatprep.mubr.msk.f32.mxu0 %vm6044_vm3, %v6043_v18  ;;  %v2625_v24 = vld [vmem:[#allocation6 + $0x588] sm:$0xff] }
 0xf3e   :  { %v3881_v54 = vmul.f32 %v5915_v6, %v5899_v25  ;;  %v3861_v45 = vpop.xlane.xlu1 %3860  ;;  %5550 = vmatprep.subr.mxu0 %v6043_v18 }
 0xf3f   :  { %5918 = vrcp.f32 %v3861_v45  ;;  %5538 = vmatmul.mubr.msk.f32.vlgmr.msra.gmra.mrb[62].mxu1 %vm873_vm4, %v3880_v20 }
 0xf40   :  { %v5917_v36 = vpop.eup %5916  ;;  %5543 = vmatmul.mubr.msk.f32.vlgmr.msra.gmra.mrb[44].mxu0 %vm873_vm4, %v3881_v54  ;;  %5546 = vmatpush3.msra.mxu1 %v6503_v31 }
 0xf41   :  { %v3882_v7 = vmul.f32 %v5917_v36, %v5901_v39  ;;  %5551 = vmatpush3.msra.mxu0 %v6523_v11  ;;  %v3864_v1 = vpop.xlane.xlu0 %3863  ;;  %5547 = vmatprep.mubr.msk.f32.mxu1 %vm6044_vm3, %v6043_v18 }
 0xf42   :  { %5920 = vrcp.f32 %v3864_v1  ;;  %v3867_v51 = vpop.xlane.xlu1 %3866  ;;  %5555 = vmatprep.subr.mxu1 %v6043_v18  ;;  %5552 = vmatprep.mubr.msk.f32.mxu0 %vm6044_vm3, %v6043_v18 }
 0xf43   :  { %5922 = vrcp.f32 %v3867_v51  ;;  %5548 = vmatmul.mubr.msk.f32.vlgmr.msra.gmra.mrb[64].mxu1 %vm873_vm4, %v3882_v7  ;;  %5560 = vmatprep.subr.mxu0 %v6043_v18 }
 0xf44   :  { %5556 = vmatpush3.msra.mxu1 %v6534_v14  ;;  %5557 = vmatprep.mubr.msk.f32.mxu1 %vm6044_vm3, %v6043_v18 }
 0xf45   :  { %v3870_v31 = vpop.xlane.xlu0 %3869  ;;  %5565 = vmatprep.subr.mxu1 %v6043_v18 }
 0xf46   :  { %5924 = vrcp.f32 %v3870_v31 }
 0xf49   :  { %v5919_v11 = vpop.eup %5918 }
 0xf4a   :  { %v3883_v56 = vmul.f32 %v5919_v11, %v5903_v23 }
 0xf4c   :  { %v5921_v8 = vpop.eup %5920  ;;  %5553 = vmatmul.mubr.msk.f32.vlgmr.msra.gmra.mrb[46].mxu0 %vm873_vm4, %v3883_v56  ;;  %v2628_v56 = vld [vmem:[#allocation6 + $0x4a0] sm:$0xff] }
 0xf4d   :  { %v5923_v4 = vpop.eup %5922  ;;  %v3884_v9 = vmul.f32 %v5921_v8, %v5905_v52  ;;  %5561 = vmatpush3.msra.mxu0 %v6526_v60  ;;  %5562 = vmatprep.mubr.msk.f32.mxu0 %vm6044_vm3, %v6043_v18 }
 0xf4e   :  { %v3885_v14 = vmul.f32 %v5923_v4, %v5907_v53  ;;  %5783 = vmatprep.subr.bf16.mxu0 %v5782_v17  ;;  %v2629_v4 = vld [vmem:[#allocation6 + $0x518] sm:$0xff] }
 0xf4f   :  { %5558 = vmatmul.mubr.msk.f32.vlgmr.msra.gmra.mrb[66].mxu1 %vm873_vm4, %v3884_v9  ;;  %v2630_v9 = vld [vmem:[#allocation6 + $0x590] sm:$0xff] }
 0xf50   :  { %v5925_v48 = vpop.eup %5924  ;;  %5563 = vmatmul.mubr.msk.f32.vlgmr.msra.gmra.mrb[48].mxu0 %vm873_vm4, %v3885_v14  ;;  %5566 = vmatpush3.msra.mxu1 %v6539_v16  ;;  %v2624_v16 = vld [vmem:[#allocation6 + $0x510] sm:$0xff]  ;;  %v5794_v14 = vpack.c.bf16 %v2630_v9, %v2629_v4 }
 0xf51   :  { %v3886_v10 = vmul.f32 %v5925_v48, %v5909_v59  ;;  %5567 = vmatprep.mubr.msk.f32.mxu1 %vm6044_vm3, %v6043_v18  ;;  %5785 = vmatpush3.bf16.msra.mxu0 %v5782_v17  ;;  %v5786_v28 = vpack.c.bf16 %v2625_v24, %v2624_v16  ;;  %v5190_v17 = vld [vmem:[#allocation7 + $0x23] ss:$0 sm:$0xff] }
 0xf53   :  { %5568 = vmatmul.mubr.msk.f32.vlgmr.msra.gmra.mrb[68].mxu1 %vm873_vm4, %v3886_v10  ;;  %5787 = vmatprep.subr.bf16.mxu0 %v5786_v28 }
 0xf55   :  { %5789 = vmatpush3.bf16.msra.mxu0 %v5786_v28 }
0x100f   :  { %v3956_v50 = vpop.f32.mrb[42].mxu0 }
0x1010   :  { %v5534_v32 = vpop.f32.mrb[43].mxu0 }
0x1012   :  { %v4029_v60 = vpop.f32.mrb[62].mxu1 }
0x1013   :  { %v4102_v15 = vpop.f32.mrb[44].mxu0  ;;  %v5539_v55 = vpop.f32.mrb[63].mxu1 }
0x1014   :  { %4473 = vrot.lane.b32.xlu1 %v4102_v15, %s6046_s2  ;;  %v5544_v19 = vpop.f32.mrb[45].mxu0  ;;  %v5189_v15 = vld [vmem:[#allocation7 + $0x22] ss:$0 sm:$0xff] }
0x1016   :  { %v4175_v21 = vpop.f32.mrb[64].mxu1 }
0x1017   :  { %4475 = vrot.lane.b32.xlu0 %v4175_v21, %s6046_s2  ;;  %v5549_v25 = vpop.f32.mrb[65].mxu1 }
0x101f   :  { %v4248_v35 = vpop.f32.mrb[46].mxu0 }
0x1020   :  { %4481 = vrot.lane.b32.xlu1 %v4248_v35, %s6047_s22  ;;  %v5554_v37 = vpop.f32.mrb[47].mxu0  ;;  %v2632_v35 = vld [vmem:[#allocation6 + $0x430] sm:$0xff] }
0x1021   :  { %v2633_v37 = vld [vmem:[#allocation6 + $0x4a8] sm:$0xff] }
0x1022   :  { %v4321_v33 = vpop.f32.mrb[66].mxu1 }
0x1023   :  { %v4394_v34 = vpop.f32.mrb[48].mxu0  ;;  %v5559_v27 = vpop.f32.mrb[67].mxu1 }
0x1024   :  { %4483 = vrot.lane.b32.xlu1 %v4321_v33, %s6047_s22  ;;  %4489 = vrot.lane.b32.xlu0 %v4394_v34, %s6048_s23  ;;  %v5564_v38 = vpop.f32.mrb[49].mxu0  ;;  %v5798_v33 = vpack.c.bf16 %v2633_v37, %v2632_v35  ;;  %v2634_v34 = vld [vmem:[#allocation6 + $0x520] sm:$0xff]  ;;  %v2635_v27 = vld [vmem:[#allocation6 + $0x598] sm:$0xff] }
0x1025   :  { %v5802_v38 = vpack.c.bf16 %v2635_v27, %v2634_v34 }
0x1026   :  { %v4467_v39 = vpop.f32.mrb[68].mxu1  ;;  %5799 = vmatprep.subr.bf16.mxu0 %v5798_v33 }
0x1027   :  { %v5569_v41 = vpop.f32.mrb[69].mxu1 }
0x1028   :  { %4491 = vrot.lane.b32.xlu1 %v4467_v39, %s6048_s23  ;;  %v2636_v39 = vld [vmem:[#allocation6 + $0x610] sm:$0xff]  ;;  %v2637_v41 = vld [vmem:[#allocation6 + $0x688] sm:$0xff] }
0x1086   :  { %v4474_v40 = vpop.permute.xlu1 %4473 }
0x1087   :  { %v4495_v46 = vsel %vm873_vm4, %v3956_v50, %v4474_v40  ;;  %v5806_v40 = vpack.c.bf16 %v2637_v41, %v2636_v39  ;;  %v5197_v41 = vld [vmem:[#allocation7 + $0x24] ss:$0 sm:$0xff] }
0x1089   :  { %v4476_v42 = vpop.permute.xlu0 %4475 }
0x108a   :  { %v4496_v53 = vsel %vm873_vm4, %v4029_v60, %v4476_v42  ;;  %v2638_v42 = vld [vmem:[#allocation6 + $0x700] sm:$0xff] }
0x1092   :  { %v4482_v44 = vpop.permute.xlu1 %4481 }
0x1093   :  { %v4497_v49 = vsel %vm2196_vm5, %v4495_v46, %v4482_v44  ;;  %v2639_v44 = vld [vmem:[#allocation6 + $0x778] sm:$0xff] }
0x1094   :  { %v5810_v46 = vpack.c.bf16 %v2639_v44, %v2638_v42 }
0x1096   :  { %v4484_v23 = vpop.permute.xlu1 %4483  ;;  %v4490_v30 = vpop.permute.xlu0 %4489 }
0x1097   :  { %v4499_v52 = vsel %vm2199_vm6, %v4497_v49, %v4490_v30  ;;  %v4498_v57 = vsel %vm2196_vm5, %v4496_v53, %v4484_v23  ;;  %v5191_v49 = vld [vmem:[#allocation7 + $0x20] ss:$0 sm:$0xff] }
0x1098   :  { %5578 = vmatprep.mubr.msk.f32.mxu0 %vm189_vm2, %v4499_v52 }
0x109a   :  { %v4492_v58 = vpop.permute.xlu1 %4491 }
0x109b   :  { %v4500_v59 = vsel %vm2199_vm6, %v4498_v57, %v4492_v58 }
0x109c   :  { %5579 = vmatmul.mubr.msk.f32.vlgmr.msra.gmra.mrb[50].mxu0 %vm189_vm2, %v4500_v59 }
0x109d   :  { %5801 = vmatpush3.bf16.msra.mxu0 %v5798_v33 }
0x109e   :  { %5803 = vmatprep.subr.bf16.mxu0 %v5802_v38 }
0x10a1   :  { %5805 = vmatpush3.bf16.msra.mxu0 %v5802_v38 }
0x10a2   :  { %5807 = vmatprep.subr.bf16.mxu0 %v5806_v40 }
0x10a5   :  { %5809 = vmatpush3.bf16.msra.mxu0 %v5806_v40 }
0x10a6   :  { %5811 = vmatprep.subr.bf16.mxu0 %v5810_v46 }
0x10a9   :  { %5813 = vmatpush3.bf16.msra.mxu0 %v5810_v46  ;;  %v5198_v46 = vld [vmem:[#allocation7 + $0x25] ss:$0 sm:$0xff] }
0x116f   :  { %v5580_v62 = vpop.f32.mrb[50].mxu0 }
0x1170   :  { %v4585_v22 = vadd.f32 %v5580_v62, %v5186_v61  ;;  %v4579_v63 = vpop.f32.mrb[51].mxu0 }
0x1171   :  { %v4580_v0 = vadd.f32 %v5186_v61, %v4579_v63 }
0x1172   :  { %v4589_v29 = vadd.f32 %v4585_v22, %v6437_v26 }
0x1173   :  { %v4588_v5 = vadd.f32 %v4580_v0, %v6431_v43  ;;  %v2627_v43 = vld [vmem:[#allocation6 + $0x428] sm:$0xff] }
0x1174   :  { %v4593_v47 = vsel %vm189_vm2, %v4589_v29, 0.0  ;;  %v5790_v8 = vpack.c.bf16 %v2628_v56, %v2627_v43 }
0x1175   :  { %4594 = vadd.xlane.f32.xlu1 %v4593_v47  ;;  %v4590_v6 = vsel %vm189_vm2, %v4588_v5, 0.0 }
0x1176   :  { %4591 = vadd.xlane.f32.xlu0 %v4590_v6  ;;  %5791 = vmatprep.subr.bf16.mxu1 %v5790_v8 }
0x1177   :  { %5793 = vmatpush3.bf16.msra.mxu1 %v5790_v8 }
0x1178   :  { %5795 = vmatprep.subr.bf16.mxu1 %v5794_v14 }
0x117b   :  { %5797 = vmatpush3.bf16.msra.mxu1 %v5794_v14 }
0x1202   :  { %v4595_v20 = vpop.xlane.xlu1 %4594 }
0x1203   :  { %v4597_v54 = vmul.f32 0.03125, %v4595_v20  ;;  %v4592_v45 = vpop.xlane.xlu0 %4591 }
0x1204   :  { %v4596_v36 = vmul.f32 0.03125, %v4592_v45 }
0x1205   :  { %v4599_v7 = vsub.f32 %v4589_v29, %v4597_v54 }
0x1206   :  { %v4598_v1 = vsub.f32 %v4588_v5, %v4596_v36 }
0x1207   :  { %v4601_v11 = vmul.f32 %v4599_v7, %v4599_v7 }
0x1208   :  { %v4600_v51 = vmul.f32 %v4598_v1, %v4598_v1 }
0x1209   :  { %v4605_v26 = vsel %vm189_vm2, %v4601_v11, 0.0 }
0x120a   :  { %v4602_v31 = vsel %vm189_vm2, %v4600_v51, 0.0  ;;  %v5194_v51 = vld [vmem:[#allocation7 + $0x21] ss:$0 sm:$0xff] }
0x120b   :  { %4603 = vadd.xlane.f32.xlu0 %v4602_v31 }
0x120f   :  { %4606 = vadd.xlane.f32.xlu0 %v4605_v26 }
0x1298   :  { %v4604_v48 = vpop.xlane.xlu0 %4603 }
0x1299   :  { %v4608_v10 = vmul.f32 0.03125, %v4604_v48 }
0x129b   :  { %v4610_v50 = vadd.f32 1e-12, %v4608_v10 }
0x129c   :  { %v4607_v32 = vpop.xlane.xlu0 %4606 }
0x129d   :  { %5926 = vrsqrt.f32 %v4610_v50  ;;  %v4609_v60 = vmul.f32 0.03125, %v4607_v32 }
0x129f   :  { %v4611_v12 = vadd.f32 1e-12, %v4609_v60 }
0x12a1   :  { %5928 = vrsqrt.f32 %v4611_v12 }
0x12a7   :  { %v5927_v13 = vpop.eup %5926 }
0x12a8   :  { %v4614_v55 = vmul.f32 %v5927_v13, %v4598_v1 }
0x12aa   :  { %v4622_v19 = vmul.f32 %v5189_v15, %v4614_v55 }
0x12ab   :  { %v5929_v21 = vpop.eup %5928 }
0x12ac   :  { %v4615_v16 = vmul.f32 %v5929_v21, %v4599_v7  ;;  %v4630_v24 = vadd.f32 %v5190_v17, %v4622_v19  ;;  %v4870_v19 = vld [vmem:[#allocation6 + $0x7f8] sm:$0xff] }
0x12ae   :  { %v4623_v25 = vmul.f32 %v5189_v15, %v4615_v16  ;;  %5589 = vmatprep.mubr.msk.f32.mxu1 %vm189_vm2, %v4630_v24  ;;  %v4871_v16 = vld [vmem:[#allocation6 + $0x870] sm:$0xff] }
0x12b0   :  { %v4631_v28 = vadd.f32 %v5190_v17, %v4623_v25  ;;  %v4869_v17 = vld [vmem:[#allocation6 + $0x780] sm:$0xff]  ;;  %v6049_v25 = vmov 0.0|0.0  }
0x12b1   :  { %v5815_v21 = vpack.c.bf16 %v4870_v19, %v4869_v17  ;;  %5814 = vmatprep.subr.bf16.mxu1 %v6049_v25 }
0x12b2   :  { %5590 = vmatmul.mubr.msk.f32.vlgmr.msra.gmra.mrb[70].mxu1 %vm189_vm2, %v4631_v28 }
0x12b3   :  { %5619 = vmatprep.mubr.msk.f32.mxu1 %vm6044_vm3, %v6043_v18  ;;  %5816 = vmatpush3.bf16.msra.mxu1 %v5815_v21 }
0x12b4   :  { %5817 = vmatprep.subr.bf16.mxu1 %v6049_v25 }
0x1385   :  { %v5591_v23 = vpop.f32.mrb[70].mxu1 }
0x1386   :  { %v4716_v30 = vadd.f32 %v5591_v23, %v5191_v49  ;;  %v4710_v52 = vpop.f32.mrb[71].mxu1 }
0x1387   :  { %v4711_v53 = vadd.f32 %v5191_v49, %v4710_v52 }
0x1388   :  { %v4722_v57 = vmul.f32 0.044715, %v4716_v30  ;;  %v4720_v36 = vmul.f32 0.5, %v4716_v30 }
0x1389   :  { %v4721_v58 = vmul.f32 0.044715, %v4711_v53  ;;  %v4719_v54 = vmul.f32 0.5, %v4711_v53 }
0x138a   :  { %v4724_v59 = vmul.f32 %v4722_v57, %v4716_v30 }
0x138b   :  { %v4723_v61 = vmul.f32 %v4721_v58, %v4711_v53  ;;  %v4874_v58 = vld [vmem:[#allocation6 + $0x790] sm:$0xff] }
0x138c   :  { %v4726_v62 = vmul.f32 %v4724_v59, %v4716_v30  ;;  %v4876_v59 = vld [vmem:[#allocation6 + $0x808] sm:$0xff] }
0x138d   :  { %v4725_v22 = vmul.f32 %v4723_v61, %v4711_v53  ;;  %v4873_v61 = vld [vmem:[#allocation6 + $0x788] sm:$0xff] }
0x138e   :  { %v4728_v63 = vadd.f32 %v4726_v62, %v4716_v30  ;;  %v5820_v62 = vpack.c.bf16 %v4876_v59, %v4874_v58 }
0x138f   :  { %v4727_v0 = vadd.f32 %v4725_v22, %v4711_v53  ;;  %v4875_v22 = vld [vmem:[#allocation6 + $0x800] sm:$0xff] }
0x1390   :  { %v4730_v29 = vmul.f32 0.7978846, %v4728_v63  ;;  %v4878_v63 = vld [vmem:[#allocation6 + $0x880] sm:$0xff] }
0x1391   :  { %v4729_v5 = vmul.f32 0.7978846, %v4727_v0  ;;  %v4880_v0 = vld [vmem:[#allocation6 + $0x8f8] sm:$0xff] }
0x1392   :  { %5930 = vtanh.f32 %v4730_v29  ;;  %v5822_v29 = vpack.c.bf16 %v4875_v22, %v4873_v61 }
0x1393   :  { %5932 = vtanh.f32 %v4729_v5  ;;  %v5824_v5 = vpack.c.bf16 %v4880_v0, %v4878_v63 }
0x139c   :  { %v5931_v47 = vpop.eup %5930 }
0x139d   :  { %v5933_v6 = vpop.eup %5932  ;;  %v4734_v20 = vadd.f32 1.0, %v5931_v47  ;;  %v4877_v47 = vld [vmem:[#allocation6 + $0x878] sm:$0xff] }
0x139e   :  { %v4733_v45 = vadd.f32 1.0, %v5933_v6  ;;  %v4879_v6 = vld [vmem:[#allocation6 + $0x8f0] sm:$0xff] }
0x139f   :  { %v4736_v1 = vmul.f32 %v4734_v20, %v4720_v36  ;;  %v5826_v20 = vpack.c.bf16 %v4879_v6, %v4877_v47 }
0x13a0   :  { %v4735_v7 = vmul.f32 %v4733_v45, %v4719_v54  ;;  %v5199_v54 = vld [vmem:[#allocation7 + $0x28] ss:$0 sm:$0xff] }
0x13a2   :  { %5608 = vmatprep.mubr.msk.f32.mxu0 %vm2444_vm7, %v4735_v7 }
0x13a3   :  { %5609 = vmatmul.mubr.msk.f32.vlgmr.msra.gmra.mrb[52].mxu0 %vm2444_vm7, %v4736_v1  ;;  %v4882_v1 = vld [vmem:[#allocation7 + $0x29] sm:$0x3] }
0x1476   :  { %v5610_v31 = vpop.f32.mrb[52].mxu0 }
0x1477   :  { %v4821_v11 = vadd.f32 %v5610_v31, %v5194_v51  ;;  %v4815_v26 = vpop.f32.mrb[53].mxu0  ;;  %v4883_v31 = vld [vmem:[#allocation7 + $0x2b] sm:$0x3] }
0x1478   :  { %v4816_v43 = vadd.f32 %v5194_v51, %v4815_v26  ;;  %v4973_v51 = vrot.slane %v4882_v1, %v6132_v2 }
0x1479   :  { %v4825_v56 = vadd.f32 %v4821_v11, %v4631_v28  ;;  %v4977_v11 = vrot.slane %v4882_v1, %v6135_v3 }
0x147a   :  { %v4824_v8 = vadd.f32 %v4816_v43, %v4630_v24  ;;  %v4872_v24 = vld [vmem:[#allocation6 + $0x8e8] sm:$0xff] }
0x147b   :  { %v4829_v4 = vsel %vm189_vm2, %v4825_v56, 0.0  ;;  %v5818_v28 = vpack.c.bf16 %v4872_v24, %v4871_v16 }
0x147c   :  { %4830 = vadd.xlane.f32.xlu1 %v4829_v4  ;;  %v4826_v9 = vsel %vm189_vm2, %v4824_v8, 0.0 }
0x147d   :  { %4827 = vadd.xlane.f32.xlu0 %v4826_v9  ;;  %5819 = vmatpush3.bf16.msra.mxu1 %v5818_v28  ;;  %v5064_v9 = vrot.slane %v4883_v31, %v6135_v3 }
0x147e   :  { %5821 = vmatprep.subr.bf16.mxu1 %v5820_v62 }
0x1509   :  { %v4831_v14 = vpop.xlane.xlu1 %4830 }
0x150a   :  { %v4833_v48 = vmul.f32 0.03125, %v4831_v14  ;;  %v4828_v10 = vpop.xlane.xlu0 %4827 }
0x150b   :  { %v4832_v50 = vmul.f32 0.03125, %v4828_v10 }
0x150c   :  { %v4835_v32 = vsub.f32 %v4825_v56, %v4833_v48  ;;  %v5060_v56 = vrot.slane %v4883_v31, %v6132_v2 }
0x150d   :  { %v4834_v60 = vsub.f32 %v4824_v8, %v4832_v50 }
0x150e   :  { %v4837_v12 = vmul.f32 %v4835_v32, %v4835_v32 }
0x150f   :  { %v4836_v13 = vmul.f32 %v4834_v60, %v4834_v60 }
0x1510   :  { %v4841_v15 = vsel %vm189_vm2, %v4837_v12, 0.0 }
0x1511   :  { %4842 = vadd.xlane.f32.xlu1 %v4841_v15  ;;  %v4838_v55 = vsel %vm189_vm2, %v4836_v13, 0.0  ;;  %v6050_v13 = vmov 0   ;;  %v5202_v15 = vld [vmem:[#allocation7 + $0x2d] ss:$0 sm:$0xff] }
0x1512   :  { %4839 = vadd.xlane.f32.xlu0 %v4838_v55 }
0x1513   :  { %5845 = vset.pattern.permute.xlu0 %v6050_v13 }
0x159e   :  { %v4843_v35 = vpop.xlane.xlu1 %4842 }
0x159f   :  { %v4845_v37 = vmul.f32 0.03125, %v4843_v35  ;;  %v4840_v33 = vpop.xlane.xlu0 %4839 }
0x15a0   :  { %v4844_v34 = vmul.f32 0.03125, %v4840_v33 }
0x15a1   :  { %v4847_v27 = vadd.f32 1e-12, %v4845_v37 }
0x15a2   :  { %v4846_v38 = vadd.f32 1e-12, %v4844_v34 }
0x15a3   :  { %5934 = vrsqrt.f32 %v4847_v27 }
0x15a4   :  { %5936 = vrsqrt.f32 %v4846_v38 }
0x15ad   :  { %v5935_v39 = vpop.eup %5934 }
0x15ae   :  { %v5937_v40 = vpop.eup %5936  ;;  %v4851_v42 = vmul.f32 %v5935_v39, %v4835_v32 }
0x15af   :  { %v4850_v44 = vmul.f32 %v5937_v40, %v4834_v60 }
0x15b0   :  { %v4859_v49 = vmul.f32 %v5197_v41, %v4851_v42 }
0x15b1   :  { %v4858_v23 = vmul.f32 %v5197_v41, %v4850_v44 }
0x15b2   :  { %v4867_v30 = vadd.f32 %v5198_v46, %v4859_v49 }
0x15b3   :  { %v4866_v52 = vadd.f32 %v5198_v46, %v4858_v23 }
0x15b4   :  { %v4893_v53 = vrot.slane %v4867_v30, 7 }
0x15b6   :  { %v4895_v57 = vsel %vm4894_vm8, %v4893_v53, %v4866_v52 }
0x15b7   :  { %5620 = vmatmul.mubr.msk.f32.vlgmr.msra.gmra.mrb[72].mxu1 %vm189_vm2, %v4895_v57 }
0x15b8   :  { %5047 = vmatprep.mubr.f32.mxu1 %v6043_v18  ;;  %5823 = vmatpush1.bf16.msra.mxu1 %v5822_v29 }
0x15b9   :  { %5825 = vmatprep.subr.bf16.mxu1 %v5824_v5 }
0x15bc   :  { %5827 = vmatpush1.bf16.msra.mxu1 %v5826_v20 }
0x168a   :  { %v4964_v45 = vpop.f32.mrb[72].mxu1 }
0x168b   :  { %v4965_v36 = vadd.f32 %v5199_v54, %v4964_v45  ;;  %v5621_v18 = vpop.f32.mrb[73].mxu1 }
0x168d   :  { %5938 = vtanh.f32 %v4965_v36 }
0x1697   :  { %v5939_v7 = vpop.eup %5938 }
0x1698   :  { %5201 = vmatmul.mubr.msk.f32.vlgmr.msra.gmra.mrb[74].mxu1 %vm189_vm2, %v5939_v7 }
0x176b   :  { %v5049_v26 = vpop.f32.mrb[74].mxu1 }
0x176c   :  { %v5050_v43 = vadd.f32 %v5049_v26, %v4973_v51  ;;  %v5051_v8 = vpop.f32.mrb[75].mxu1 }
0x176d   :  { %v5052_v4 = vadd.f32 %v5051_v8, %v4977_v11 }
0x176e   :  { %v5054_v14 = vmax.f32 %v5050_v43, 0.0 }
0x176f   :  { %v5055_v48 = vmax.f32 %v5052_v4, 0.0 }
0x1770   :  { %v5067_v10 = vmul.f32 %v5060_v56, %v5054_v14 }
0x1771   :  { %v5068_v50 = vmul.f32 %v5064_v9, %v5055_v48 }
0x1772   :  { %v5070_v32 = vsel %vm5069_vm9, %v5067_v10, 0.0 }
0x1773   :  { %v5071_v60 = vsel %vm5069_vm9, %v5068_v50, 0.0 }
0x1774   :  { %v5072_v12 = vadd.f32 %v5071_v60, %v5070_v32 }
0x1776   :  { %5073 = vadd.xlane.f32.xlu1 %v5072_v12 }
0x1803   :  { %v5074_v55 = vpop.xlane.xlu1 %5073 }
0x1804   :  { %v5081_v17 = vadd.f32 %v5202_v15, %v5074_v55 }
0x1806   :  { %5084 = vperm.xlu0 %5845, %v5081_v17  }
0x1885   :  { %v5085_v2 = vpop.permute.xlu0 %5084 }
0x1886   :  { %5087 = vst [vmem:[%s6644_s5] sm:$0x3] %v5085_v2 }
0x1887   :  { %5092 = vsyncpa [#allocation3], 1 }
0x1888   :  { %5093 = vsyncpa [#allocation5], 1 }
0x1889   :  { %5094 = vsyncpa [#allocation8], 1 }

</bundles_post_ra>
